<compile_context>
chip_gen: v7x
topology: tpu7x:2x2x1
jax: 0.10.0
libtpu: 0.0.40
codegen_flags: <defaults>
</compile_context>

<pallas_src>
import functools

import numpy as np
import jax
import jax.numpy as jnp
from jax.experimental import pallas as pl
from jax.experimental.pallas import tpu as pltpu

BN_EPS = 1e-5
_VMEM = pl.BlockSpec(memory_space=pltpu.MemorySpace.VMEM)


def _round_up(n, m):
    return (n + m - 1) // m * m


# ----------------------------------------------------------------------------
# The single fused Pallas kernel
# ----------------------------------------------------------------------------
def _make_net_kernel(*, B, H, W, M, Mp, k, n_blocks, common_ch, n_moves, p_ch,
                     out_lanes, pad8):
    taps = k * k
    inv_m = 1.0 / float(M)
    center = (k // 2) * k + (k // 2)
    Cc = common_ch
    n_convs = 1 + 2 * n_blocks            # trunk KxK convs (== trunk BN count)

    def kernel(x_ref, masks_ref, et_ref, w_ref, par_ref, hw_ref, out_ref, ybuf):
        x0 = x_ref[...]                   # [Mp, Cc]   flattened NHWC input, pads = 0
        masks = masks_ref[...]            # [Mp, taps] per-tap neighbour validity
        et = et_ref[...]                  # [B, Mp]    batch-selection matrix
        row_mask = masks[:, center:center + 1]          # [Mp, 1] valid-row mask

        # Zero the shifted-read margins once (avoid 0 * NaN from uninit VMEM).
        zmargin = jnp.zeros((pad8, taps * Cc), jnp.float32)
        ybuf[0:pad8, :] = zmargin
        ybuf[pad8 + Mp:pad8 + Mp + pad8, :] = zmargin

        def conv_same(xin, conv_idx):
            # same-padded KxK conv as ONE matmul + `taps` masked shifted reads:
            #   Y = xin @ W_all ;  out[p] = sum_t mask[p,t] * Y[p+off_t, t*Cc:(t+1)*Cc]
            # The shift is a static sublane-offset read from the zero-margined
            # scratch (load/XLU work only; the MXU sees a single matmul).
            y = jnp.dot(xin, w_ref[conv_idx],
                        preferred_element_type=jnp.float32)        # [Mp, taps*Cc]
            ybuf[pad8:pad8 + Mp, :] = y
            acc = jnp.zeros((Mp, Cc), jnp.float32)
            for t in range(taps):
                dh = t // k - k // 2
                dw = t % k - k // 2
                start = pad8 + dh * W + dw                          # static int
                rows = ybuf[start:start + Mp, :]                    # shifted view
                acc = acc + masks[:, t:t + 1] * rows[:, t * Cc:(t + 1) * Cc]
            return acc

        def batchnorm(acc, gamma, beta):
            # Training-mode BatchNorm2d: biased stats over the M valid rows.
            # Input pad rows are zero, so plain sums are valid-row sums; one-pass
            # variance (E[x^2] - mean^2) in f32.  Output re-zeroed on pad rows so
            # downstream convs / residuals / head matmuls keep the zero-pad
            # invariant (their BN stats stay unpolluted).
            mean = jnp.sum(acc, axis=0, keepdims=True) * inv_m
            msq = jnp.sum(acc * acc, axis=0, keepdims=True) * inv_m
            var = msq - mean * mean
            scale = gamma * jax.lax.rsqrt(var + BN_EPS)
            return (acc * scale + (beta - mean * scale)) * row_mask

        # conv1 -> bn1 -> relu
        bn = par_ref[0]                                   # [2, sw]: gamma; beta
        x1 = jnp.maximum(batchnorm(conv_same(x0, 0), bn[0:1, :Cc], bn[1:2, :Cc]),
                         0.0)

        # ResNet blocks: conv->bn->relu, conv->bn, +identity, relu
        for blk in range(n_blocks):
            ca, cb = 1 + 2 * blk, 2 + 2 * blk
            bna = par_ref[ca]
            bnb = par_ref[cb]
            h = jnp.maximum(
                batchnorm(conv_same(x1, ca), bna[0:1, :Cc], bna[1:2, :Cc]), 0.0)
            h = batchnorm(conv_same(h, cb), bnb[0:1, :Cc], bnb[1:2, :Cc])
            x1 = jnp.maximum(h + x1, 0.0)

        # Both heads' 1x1 convs + BNs fused: channels [p0, p1, z].
        hz = jnp.dot(x1, w_ref[n_convs][:, 0:3],
                     preferred_element_type=jnp.float32)            # [Mp, 3]
        bnh = par_ref[n_convs]
        hz = jnp.maximum(batchnorm(hz, bnh[0:1, 0:3], bnh[1:2, 0:3]), 0.0)

        misc1 = par_ref[n_convs + 1]      # row0: policy Linear bias, row1: value Linear-1 bias
        misc2 = par_ref[n_convs + 2]      # row0: value Linear-2 weight row, row1[0]: its bias
        hw = hw_ref[...]                  # [Mp, 2*n_moves + p_ch] batch-tiled head weights

        # Transpose-free NCHW-flatten + Linear for both heads.
        tp = (hz[:, 0:1] * hw[:, 0:n_moves]
              + hz[:, 1:2] * hw[:, n_moves:2 * n_moves])             # [Mp, n_moves]
        tz = hz[:, 2:3] * hw[:, 2 * n_moves:2 * n_moves + p_ch]      # [Mp, p_ch]
        p_out = (jnp.dot(et, tp, preferred_element_type=jnp.float32)
                 + misc1[0:1, 0:n_moves])                            # [B, n_moves]
        z1 = jnp.maximum(
            jnp.dot(et, tz, preferred_element_type=jnp.float32)
            + misc1[1:2, 0:p_ch], 0.0)                               # [B, p_ch]
        z2 = jnp.tanh(jnp.sum(z1 * misc2[0:1, 0:p_ch], axis=1, keepdims=True)
                      + misc2[1:2, 0:1])                             # [B, 1]

        # Single lane-padded output: policy in lanes [0, n_moves), value in lane n_moves.
        out_ref[...] = jnp.concatenate(
            [p_out, z2,
             jnp.zeros((B, out_lanes - n_moves - 1), jnp.float32)], axis=1)

    return kernel


# ----------------------------------------------------------------------------
# Parameter construction (deterministic, synthetic, torch-layout-compatible)
# ----------------------------------------------------------------------------
def init_params(key, *, x_sz=6, y_sz=7, n_ch=2, k_sz=3, n_resnet=2,
                common_ch=32, p_ch=32, n_moves=7):
    """Conv weights stored [k*k, cin, cout] with tap t = kh*k + kw, i.e.
    w[t, ci, co] == torch_conv.weight[co, ci, kh, kw].  Linear weights stored
    [in_features, out_features] (transpose of torch); the policy Linear's input
    rows follow torch's NCHW-flatten order (c*H*W + h*W + w).  Conv biases are
    omitted: exactly cancelled by training-mode BatchNorm mean subtraction.
    Matching the PyTorch Net, there are n_resnet - 1 ResNetBlocks (resnets[0]
    in the torch module is conv1 itself)."""
    def conv_w(key, cin, cout, k):
        return 0.1 * jax.random.normal(key, (k * k, cin, cout), jnp.float32)

    keys = iter(jax.random.split(key, 64))
    params = {
        "conv1_w": conv_w(next(keys), n_ch, common_ch, k_sz),
        "bn1_g": jnp.ones((common_ch,), jnp.float32),
        "bn1_b": jnp.zeros((common_ch,), jnp.float32),
        "resnets": [],
    }
    for _ in range(1, n_resnet):
        params["resnets"].append({
            "w1": conv_w(next(keys), common_ch, common_ch, k_sz),
            "g1": jnp.ones((common_ch,), jnp.float32),
            "be1": jnp.zeros((common_ch,), jnp.float32),
            "w2": conv_w(next(keys), common_ch, common_ch, k_sz),
            "g2": jnp.ones((common_ch,), jnp.float32),
            "be2": jnp.zeros((common_ch,), jnp.float32),
        })
    # policy head
    params["p_cn_w"] = 0.1 * jax.random.normal(next(keys), (common_ch, 2), jnp.float32)
    params["p_bn_g"] = jnp.ones((2,), jnp.float32)
    params["p_bn_b"] = jnp.zeros((2,), jnp.float32)
    params["p_ln_w"] = 0.1 * jax.random.normal(next(keys), (x_sz * y_sz * 2, n_moves),
                                               jnp.float32)
    params["p_ln_b"] = jnp.zeros((n_moves,), jnp.float32)
    # value head
    params["z_cn_w"] = 0.1 * jax.random.normal(next(keys), (common_ch, 1), jnp.float32)
    params["z_bn_g"] = jnp.ones((1,), jnp.float32)
    params["z_bn_b"] = jnp.zeros((1,), jnp.float32)
    params["z_ln1_w"] = 0.1 * jax.random.normal(next(keys), (x_sz * y_sz, p_ch),
                                                jnp.float32)
    params["z_ln1_b"] = jnp.zeros((p_ch,), jnp.float32)
    params["z_ln2_w"] = 0.1 * jax.random.normal(next(keys), (p_ch, 1), jnp.float32)
    params["z_ln2_b"] = jnp.zeros((1,), jnp.float32)
    return params


# ----------------------------------------------------------------------------
# One-time packing of parameters + geometry constants (hoisted out of the
# per-call path -- the jitted forward only flattens/pads the input).
# ----------------------------------------------------------------------------
def prepare_params(params, *, batch_size, x_sz, y_sz, k_sz=3):
    H, W = x_sz, y_sz
    HW = H * W
    M = batch_size * HW
    Mp = _round_up(M, 8)
    taps = k_sz * k_sz
    common_ch = params["conv1_w"].shape[2]
    n_ch = params["conv1_w"].shape[1]
    assert n_ch <= common_ch, "input channels padded up to common_ch"
    n_moves = params["p_ln_w"].shape[1]
    p_ch = params["z_ln1_w"].shape[1]
    sw = max(common_ch, p_ch, n_moves, 8)

    # Per-tap neighbour-validity masks [Mp, taps]; the centre tap doubles as the
    # valid-row mask.  O(Mp) instead of the old O(Mp^2) shift matrices.
    masks = np.zeros((Mp, taps), np.float32)
    r = k_sz // 2
    for b in range(batch_size):
        for h in range(H):
            for w in range(W):
                p = b * HW + h * W + w
                for t in range(taps):
                    dh, dw = t // k_sz - r, t % k_sz - r
                    if 0 <= h + dh < H and 0 <= w + dw < W:
                        masks[p, t] = 1.0

    # Batch-selection matrix [B, Mp].
    et = np.zeros((batch_size, Mp), np.float32)
    for b in range(batch_size):
        et[b, b * HW:(b + 1) * HW] = 1.0

    # Conv weight slab [n_convs + 1, common_ch, taps*common_ch]:
    #   W_all[ci, t*Cout + co] = w[t, ci, co]   (Cin zero-padded to common_ch)
    #   last entry holds both heads' 1x1 conv weights in lanes 0:3.
    def pack_conv(w):
        t_, cin, cout = w.shape
        wpad = jnp.zeros((t_, common_ch, cout), jnp.float32).at[:, :cin, :].set(w)
        wall = jnp.transpose(wpad, (1, 0, 2)).reshape(common_ch, t_ * cout)
        if wall.shape[1] < taps * common_ch:
            wall = jnp.pad(wall, ((0, 0), (0, taps * common_ch - wall.shape[1])))
        return wall

    conv_entries = [pack_conv(params["conv1_w"])]
    for blk in params["resnets"]:
        conv_entries.append(pack_conv(blk["w1"]))
        conv_entries.append(pack_conv(blk["w2"]))
    head_cn = jnp.concatenate([params["p_cn_w"], params["z_cn_w"]], axis=1)  # [Cc, 3]
    conv_entries.append(
        jnp.zeros((common_ch, taps * common_ch), jnp.float32).at[:, :3].set(head_cn))
    w_slab = jnp.stack(conv_entries, axis=0)

    # Scalar-parameter slab [n_convs + 3, 2, sw]:
    #   trunk BNs (gamma; beta), fused head BN, [p_ln bias; z_ln1 bias],
    #   [z_ln2 weight row; z_ln2 bias].
    def entry(row0, row1):
        e = jnp.zeros((2, sw), jnp.float32)
        e = e.at[0, :row0.shape[0]].set(row0)
        e = e.at[1, :row1.shape[0]].set(row1)
        return e

    par_entries = [entry(params["bn1_g"], params["bn1_b"])]
    for blk in params["resnets"]:
        par_entries.append(entry(blk["g1"], blk["be1"]))
        par_entries.append(entry(blk["g2"], blk["be2"]))
    par_entries.append(entry(jnp.concatenate([params["p_bn_g"], params["z_bn_g"]]),
                             jnp.concatenate([params["p_bn_b"], params["z_bn_b"]])))
    par_entries.append(entry(params["p_ln_b"], params["z_ln1_b"]))
    par_entries.append(entry(params["z_ln2_w"][:, 0], params["z_ln2_b"]))
    par_slab = jnp.stack(par_entries, axis=0)

    # Batch-tiled head Linear weights [Mp, 2*n_moves + p_ch]:
    #   cols [0,n_moves)      : policy Linear rows for channel 0, tiled over batch
    #   cols [n_moves,2*n_m)  : policy Linear rows for channel 1, tiled over batch
    #   cols [2*n_m, +p_ch)   : value Linear-1 rows, tiled over batch
    wp = params["p_ln_w"]
    wz = params["z_ln1_w"]
    hw = jnp.concatenate([jnp.tile(wp[:HW], (batch_size, 1)),
                          jnp.tile(wp[HW:], (batch_size, 1)),
                          jnp.tile(wz, (batch_size, 1))], axis=1)
    hw_slab = jnp.pad(hw, ((0, Mp - M), (0, 0)))

    return {"masks": jnp.asarray(masks), "et": jnp.asarray(et),
            "w_slab": w_slab, "par_slab": par_slab, "hw_slab": hw_slab}


# ----------------------------------------------------------------------------
# Full forward pass (matches Net.forward semantics) -- single pallas_call
# ----------------------------------------------------------------------------
@functools.partial(jax.jit, static_argnames=("k_sz", "n_moves", "p_ch"))
def net_forward(prepared, x_nchw, k_sz=3, n_moves=7, p_ch=32):
    B, n_ch, H, W = x_nchw.shape
    HW = H * W
    M = B * HW
    Mp = prepared["hw_slab"].shape[0]
    common_ch = prepared["w_slab"].shape[1]
    taps = k_sz * k_sz
    n_convs = prepared["w_slab"].shape[0] - 1
    n_blocks = (n_convs - 1) // 2
    pad8 = _round_up((k_sz // 2) * (W + 1), 8)
    out_lanes = max(128, _round_up(n_moves + 1, 128))

    # Only per-call glue: NCHW -> flattened (b,h,w) rows x channels, zero-padded
    # to Mp rows / common_ch channels (pad channels hit zero weight columns).
    x0 = jnp.transpose(x_nchw, (0, 2, 3, 1)).astype(jnp.float32).reshape(M, n_ch)
    x0 = jnp.pad(x0, ((0, Mp - M), (0, common_ch - n_ch)))

    kernel = _make_net_kernel(B=B, H=H, W=W, M=M, Mp=Mp, k=k_sz,
                              n_blocks=n_blocks, common_ch=common_ch,
                              n_moves=n_moves, p_ch=p_ch,
                              out_lanes=out_lanes, pad8=pad8)
    out = pl.pallas_call(
        kernel,
        out_shape=jax.ShapeDtypeStruct((B, out_lanes), jnp.float32),
        in_specs=[_VMEM] * 6,
        out_specs=_VMEM,
        scratch_shapes=[pltpu.VMEM((pad8 + Mp + pad8, taps * common_ch),
                                   jnp.float32)],
    )(x0, prepared["masks"], prepared["et"], prepared["w_slab"],
      prepared["par_slab"], prepared["hw_slab"])
    return out[:, :n_moves], out[:, n_moves:n_moves + 1]


if __name__ == "__main__":
    key = jax.random.PRNGKey(0)
    pkey, xkey = jax.random.split(key)

    # Net defaults: x_sz=6, y_sz=7, n_ch=2 -> input [B, 2, 6, 7] (NCHW)
    B, n_ch, x_sz, y_sz = 2, 2, 6, 7
    params = init_params(pkey, x_sz=x_sz, y_sz=y_sz, n_ch=n_ch)
    prepared = prepare_params(params, batch_size=B, x_sz=x_sz, y_sz=y_sz, k_sz=3)
    x = jax.random.normal(xkey, (B, n_ch, x_sz, y_sz), jnp.float32)

    p, z = net_forward(prepared, x, k_sz=3, n_moves=7, p_ch=32)
    jax.block_until_ready((p, z))

    assert p.shape == (B, 7) and z.shape == (B, 1)
    assert bool(jnp.isfinite(p).all()) and bool(jnp.isfinite(z).all())
    print("KERNEL_OK")
</pallas_src>

<mosaic_0001>
module attributes {stable_mosaic.version = 11 : i64} {
  func.func @kernel(%arg0: memref<88x32xf32, #tpu.memory_space<vmem>>, %arg1: memref<88x9xf32, #tpu.memory_space<vmem>>, %arg2: memref<2x88xf32, #tpu.memory_space<vmem>>, %arg3: memref<4x32x288xf32, #tpu.memory_space<vmem>>, %arg4: memref<6x2x32xf32, #tpu.memory_space<vmem>>, %arg5: memref<88x46xf32, #tpu.memory_space<vmem>>, %arg6: memref<2x128xf32, #tpu.memory_space<vmem>>, %arg7: memref<104x288xf32, #tpu.memory_space<vmem>>) attributes {dimension_semantics = [], scalar_prefetch = 0 : i64, scratch_operands = 1 : i64, tpu.core_type = #tpu.core_type<tc>} {
    %c0 = arith.constant 0 : index
    %c0_0 = arith.constant 0 : index
    %0 = vector.load %arg0[%c0, %c0_0] : memref<88x32xf32, #tpu.memory_space<vmem>>, vector<88x32xf32>
    %c0_1 = arith.constant 0 : index
    %c0_2 = arith.constant 0 : index
    %1 = vector.load %arg1[%c0_1, %c0_2] : memref<88x9xf32, #tpu.memory_space<vmem>>, vector<88x9xf32>
    %c0_3 = arith.constant 0 : index
    %c0_4 = arith.constant 0 : index
    %2 = vector.load %arg2[%c0_3, %c0_4] : memref<2x88xf32, #tpu.memory_space<vmem>>, vector<2x88xf32>
    %3 = vector.extract_strided_slice %1 {offsets = [0, 4], sizes = [88, 1], strides = [1, 1]} : vector<88x9xf32> to vector<88x1xf32>
    %cst = arith.constant 0.000000e+00 : f32
    %4 = vector.broadcast %cst : f32 to vector<8x288xf32>
    %c0_5 = arith.constant 0 : index
    %c0_6 = arith.constant 0 : index
    %5 = vector.load %arg7[%c0_5, %c0_6] : memref<104x288xf32, #tpu.memory_space<vmem>>, vector<8x288xf32>
    tpu.vector_store %arg7[%c0_5, %c0_6], %4 {strides = array<i32>} : memref<104x288xf32, #tpu.memory_space<vmem>>, vector<8x288xf32>,
    %c96 = arith.constant 96 : index
    %c0_7 = arith.constant 0 : index
    %6 = vector.load %arg7[%c96, %c0_7] : memref<104x288xf32, #tpu.memory_space<vmem>>, vector<8x288xf32>
    tpu.vector_store %arg7[%c96, %c0_7], %4 {strides = array<i32>} : memref<104x288xf32, #tpu.memory_space<vmem>>, vector<8x288xf32>,
    %c0_8 = arith.constant 0 : index
    %c0_9 = arith.constant 0 : index
    %c0_10 = arith.constant 0 : index
    %7 = vector.load %arg4[%c0_8, %c0_9, %c0_10] : memref<6x2x32xf32, #tpu.memory_space<vmem>>, vector<1x2x32xf32>
    %8 = vector.shape_cast %7 : vector<1x2x32xf32> to vector<2x32xf32>
    %c0_11 = arith.constant 0 : index
    %c0_12 = arith.constant 0 : index
    %c0_13 = arith.constant 0 : index
    %9 = vector.load %arg3[%c0_11, %c0_12, %c0_13] : memref<4x32x288xf32, #tpu.memory_space<vmem>>, vector<1x32x288xf32>
    %10 = vector.shape_cast %9 : vector<1x32x288xf32> to vector<32x288xf32>
    %cst_14 = arith.constant dense<0.000000e+00> : vector<88x288xf32>
    %11 = tpu.matmul %0, %10, %cst_14 {dimension_numbers = #tpu.dot_dimension_numbers<[1], [0], [0], [1], [0, 0, 1, 1], [], []>} : vector<88x32xf32>, vector<32x288xf32>, vector<88x288xf32> -> vector<88x288xf32>
    %c8 = arith.constant 8 : index
    %c0_15 = arith.constant 0 : index
    %12 = vector.load %arg7[%c8, %c0_15] : memref<104x288xf32, #tpu.memory_space<vmem>>, vector<88x288xf32>
    tpu.vector_store %arg7[%c8, %c0_15], %11 {strides = array<i32>} : memref<104x288xf32, #tpu.memory_space<vmem>>, vector<88x288xf32>,
    %cst_16 = arith.constant 0.000000e+00 : f32
    %13 = vector.broadcast %cst_16 : f32 to vector<88x32xf32>
    %c0_17 = arith.constant 0 : index
    %c0_18 = arith.constant 0 : index
    %14 = vector.load %arg7[%c0_17, %c0_18] : memref<104x288xf32, #tpu.memory_space<vmem>>, vector<88x288xf32>
    %15 = vector.extract_strided_slice %1 {offsets = [0, 0], sizes = [88, 1], strides = [1, 1]} : vector<88x9xf32> to vector<88x1xf32>
    %16 = vector.extract_strided_slice %14 {offsets = [0, 0], sizes = [88, 32], strides = [1, 1]} : vector<88x288xf32> to vector<88x32xf32>
    %17 = vector.broadcast %15 : vector<88x1xf32> to vector<88x32xf32>
    %18 = arith.mulf %17, %16 : vector<88x32xf32>
    %19 = arith.addf %13, %18 : vector<88x32xf32>
    %c1 = arith.constant 1 : index
    %c0_19 = arith.constant 0 : index
    %20 = vector.load %arg7[%c1, %c0_19] : memref<104x288xf32, #tpu.memory_space<vmem>>, vector<88x288xf32>
    %21 = vector.extract_strided_slice %1 {offsets = [0, 1], sizes = [88, 1], strides = [1, 1]} : vector<88x9xf32> to vector<88x1xf32>
    %22 = vector.extract_strided_slice %20 {offsets = [0, 32], sizes = [88, 32], strides = [1, 1]} : vector<88x288xf32> to vector<88x32xf32>
    %23 = vector.broadcast %21 : vector<88x1xf32> to vector<88x32xf32>
    %24 = arith.mulf %23, %22 : vector<88x32xf32>
    %25 = arith.addf %19, %24 : vector<88x32xf32>
    %c2 = arith.constant 2 : index
    %c0_20 = arith.constant 0 : index
    %26 = vector.load %arg7[%c2, %c0_20] : memref<104x288xf32, #tpu.memory_space<vmem>>, vector<88x288xf32>
    %27 = vector.extract_strided_slice %1 {offsets = [0, 2], sizes = [88, 1], strides = [1, 1]} : vector<88x9xf32> to vector<88x1xf32>
    %28 = vector.extract_strided_slice %26 {offsets = [0, 64], sizes = [88, 32], strides = [1, 1]} : vector<88x288xf32> to vector<88x32xf32>
    %29 = vector.broadcast %27 : vector<88x1xf32> to vector<88x32xf32>
    %30 = arith.mulf %29, %28 : vector<88x32xf32>
    %31 = arith.addf %25, %30 : vector<88x32xf32>
    %c7 = arith.constant 7 : index
    %c0_21 = arith.constant 0 : index
    %32 = vector.load %arg7[%c7, %c0_21] : memref<104x288xf32, #tpu.memory_space<vmem>>, vector<88x288xf32>
    %33 = vector.extract_strided_slice %1 {offsets = [0, 3], sizes = [88, 1], strides = [1, 1]} : vector<88x9xf32> to vector<88x1xf32>
    %34 = vector.extract_strided_slice %32 {offsets = [0, 96], sizes = [88, 32], strides = [1, 1]} : vector<88x288xf32> to vector<88x32xf32>
    %35 = vector.broadcast %33 : vector<88x1xf32> to vector<88x32xf32>
    %36 = arith.mulf %35, %34 : vector<88x32xf32>
    %37 = arith.addf %31, %36 : vector<88x32xf32>
    %c8_22 = arith.constant 8 : index
    %c0_23 = arith.constant 0 : index
    %38 = vector.load %arg7[%c8_22, %c0_23] : memref<104x288xf32, #tpu.memory_space<vmem>>, vector<88x288xf32>
    %39 = vector.extract_strided_slice %1 {offsets = [0, 4], sizes = [88, 1], strides = [1, 1]} : vector<88x9xf32> to vector<88x1xf32>
    %40 = vector.extract_strided_slice %38 {offsets = [0, 128], sizes = [88, 32], strides = [1, 1]} : vector<88x288xf32> to vector<88x32xf32>
    %41 = vector.broadcast %39 : vector<88x1xf32> to vector<88x32xf32>
    %42 = arith.mulf %41, %40 : vector<88x32xf32>
    %43 = arith.addf %37, %42 : vector<88x32xf32>
    %c9 = arith.constant 9 : index
    %c0_24 = arith.constant 0 : index
    %44 = vector.load %arg7[%c9, %c0_24] : memref<104x288xf32, #tpu.memory_space<vmem>>, vector<88x288xf32>
    %45 = vector.extract_strided_slice %1 {offsets = [0, 5], sizes = [88, 1], strides = [1, 1]} : vector<88x9xf32> to vector<88x1xf32>
    %46 = vector.extract_strided_slice %44 {offsets = [0, 160], sizes = [88, 32], strides = [1, 1]} : vector<88x288xf32> to vector<88x32xf32>
    %47 = vector.broadcast %45 : vector<88x1xf32> to vector<88x32xf32>
    %48 = arith.mulf %47, %46 : vector<88x32xf32>
    %49 = arith.addf %43, %48 : vector<88x32xf32>
    %c14 = arith.constant 14 : index
    %c0_25 = arith.constant 0 : index
    %50 = vector.load %arg7[%c14, %c0_25] : memref<104x288xf32, #tpu.memory_space<vmem>>, vector<88x288xf32>
    %51 = vector.extract_strided_slice %1 {offsets = [0, 6], sizes = [88, 1], strides = [1, 1]} : vector<88x9xf32> to vector<88x1xf32>
    %52 = vector.extract_strided_slice %50 {offsets = [0, 192], sizes = [88, 32], strides = [1, 1]} : vector<88x288xf32> to vector<88x32xf32>
    %53 = vector.broadcast %51 : vector<88x1xf32> to vector<88x32xf32>
    %54 = arith.mulf %53, %52 : vector<88x32xf32>
    %55 = arith.addf %49, %54 : vector<88x32xf32>
    %c15 = arith.constant 15 : index
    %c0_26 = arith.constant 0 : index
    %56 = vector.load %arg7[%c15, %c0_26] : memref<104x288xf32, #tpu.memory_space<vmem>>, vector<88x288xf32>
    %57 = vector.extract_strided_slice %1 {offsets = [0, 7], sizes = [88, 1], strides = [1, 1]} : vector<88x9xf32> to vector<88x1xf32>
    %58 = vector.extract_strided_slice %56 {offsets = [0, 224], sizes = [88, 32], strides = [1, 1]} : vector<88x288xf32> to vector<88x32xf32>
    %59 = vector.broadcast %57 : vector<88x1xf32> to vector<88x32xf32>
    %60 = arith.mulf %59, %58 : vector<88x32xf32>
    %61 = arith.addf %55, %60 : vector<88x32xf32>
    %c16 = arith.constant 16 : index
    %c0_27 = arith.constant 0 : index
    %62 = vector.load %arg7[%c16, %c0_27] : memref<104x288xf32, #tpu.memory_space<vmem>>, vector<88x288xf32>
    %63 = vector.extract_strided_slice %1 {offsets = [0, 8], sizes = [88, 1], strides = [1, 1]} : vector<88x9xf32> to vector<88x1xf32>
    %64 = vector.extract_strided_slice %62 {offsets = [0, 256], sizes = [88, 32], strides = [1, 1]} : vector<88x288xf32> to vector<88x32xf32>
    %65 = vector.broadcast %63 : vector<88x1xf32> to vector<88x32xf32>
    %66 = arith.mulf %65, %64 : vector<88x32xf32>
    %67 = arith.addf %61, %66 : vector<88x32xf32>
    %68 = vector.extract_strided_slice %8 {offsets = [0, 0], sizes = [1, 32], strides = [1, 1]} : vector<2x32xf32> to vector<1x32xf32>
    %69 = vector.extract_strided_slice %8 {offsets = [1, 0], sizes = [1, 32], strides = [1, 1]} : vector<2x32xf32> to vector<1x32xf32>
    %cst_28 = arith.constant dense<0.000000e+00> : vector<32xf32>
    %70 = vector.multi_reduction <add>, %67, %cst_28 [0] : vector<88x32xf32> to vector<32xf32>
    %71 = vector.shape_cast %70 : vector<32xf32> to vector<1x32xf32>
    %cst_29 = arith.constant 0.0119047621 : f32
    %72 = vector.broadcast %cst_29 : f32 to vector<1x32xf32>
    %73 = arith.mulf %71, %72 : vector<1x32xf32>
    %74 = arith.mulf %67, %67 : vector<88x32xf32>
    %cst_30 = arith.constant dense<0.000000e+00> : vector<32xf32>
    %75 = vector.multi_reduction <add>, %74, %cst_30 [0] : vector<88x32xf32> to vector<32xf32>
    %76 = vector.shape_cast %75 : vector<32xf32> to vector<1x32xf32>
    %cst_31 = arith.constant 0.0119047621 : f32
    %77 = vector.broadcast %cst_31 : f32 to vector<1x32xf32>
    %78 = arith.mulf %76, %77 : vector<1x32xf32>
    %79 = arith.mulf %73, %73 : vector<1x32xf32>
    %80 = arith.subf %78, %79 : vector<1x32xf32>
    %cst_32 = arith.constant 9.99999974E-6 : f32
    %81 = vector.broadcast %cst_32 : f32 to vector<1x32xf32>
    %82 = arith.addf %80, %81 : vector<1x32xf32>
    %83 = math.rsqrt %82 : vector<1x32xf32>
    %84 = arith.mulf %68, %83 : vector<1x32xf32>
    %85 = vector.broadcast %84 : vector<1x32xf32> to vector<88x32xf32>
    %86 = arith.mulf %67, %85 : vector<88x32xf32>
    %87 = arith.mulf %73, %84 : vector<1x32xf32>
    %88 = arith.subf %69, %87 : vector<1x32xf32>
    %89 = vector.broadcast %88 : vector<1x32xf32> to vector<88x32xf32>
    %90 = arith.addf %86, %89 : vector<88x32xf32>
    %91 = vector.broadcast %3 : vector<88x1xf32> to vector<88x32xf32>
    %92 = arith.mulf %90, %91 : vector<88x32xf32>
    %cst_33 = arith.constant 0.000000e+00 : f32
    %93 = vector.broadcast %cst_33 : f32 to vector<88x32xf32>
    %94 = arith.maximumf %92, %93 : vector<88x32xf32>
    %c1_34 = arith.constant 1 : index
    %c0_35 = arith.constant 0 : index
    %c0_36 = arith.constant 0 : index
    %95 = vector.load %arg4[%c1_34, %c0_35, %c0_36] : memref<6x2x32xf32, #tpu.memory_space<vmem>>, vector<1x2x32xf32>
    %96 = vector.shape_cast %95 : vector<1x2x32xf32> to vector<2x32xf32>
    %c2_37 = arith.constant 2 : index
    %c0_38 = arith.constant 0 : index
    %c0_39 = arith.constant 0 : index
    %97 = vector.load %arg4[%c2_37, %c0_38, %c0_39] : memref<6x2x32xf32, #tpu.memory_space<vmem>>, vector<1x2x32xf32>
    %98 = vector.shape_cast %97 : vector<1x2x32xf32> to vector<2x32xf32>
    %c1_40 = arith.constant 1 : index
    %c0_41 = arith.constant 0 : index
    %c0_42 = arith.constant 0 : index
    %99 = vector.load %arg3[%c1_40, %c0_41, %c0_42] : memref<4x32x288xf32, #tpu.memory_space<vmem>>, vector<1x32x288xf32>
    %100 = vector.shape_cast %99 : vector<1x32x288xf32> to vector<32x288xf32>
    %cst_43 = arith.constant dense<0.000000e+00> : vector<88x288xf32>
    %101 = tpu.matmul %94, %100, %cst_43 {dimension_numbers = #tpu.dot_dimension_numbers<[1], [0], [0], [1], [0, 0, 1, 1], [], []>} : vector<88x32xf32>, vector<32x288xf32>, vector<88x288xf32> -> vector<88x288xf32>
    %c8_44 = arith.constant 8 : index
    %c0_45 = arith.constant 0 : index
    %102 = vector.load %arg7[%c8_44, %c0_45] : memref<104x288xf32, #tpu.memory_space<vmem>>, vector<88x288xf32>
    tpu.vector_store %arg7[%c8_44, %c0_45], %101 {strides = array<i32>} : memref<104x288xf32, #tpu.memory_space<vmem>>, vector<88x288xf32>,
    %cst_46 = arith.constant 0.000000e+00 : f32
    %103 = vector.broadcast %cst_46 : f32 to vector<88x32xf32>
    %c0_47 = arith.constant 0 : index
    %c0_48 = arith.constant 0 : index
    %104 = vector.load %arg7[%c0_47, %c0_48] : memref<104x288xf32, #tpu.memory_space<vmem>>, vector<88x288xf32>
    %105 = vector.extract_strided_slice %1 {offsets = [0, 0], sizes = [88, 1], strides = [1, 1]} : vector<88x9xf32> to vector<88x1xf32>
    %106 = vector.extract_strided_slice %104 {offsets = [0, 0], sizes = [88, 32], strides = [1, 1]} : vector<88x288xf32> to vector<88x32xf32>
    %107 = vector.broadcast %105 : vector<88x1xf32> to vector<88x32xf32>
    %108 = arith.mulf %107, %106 : vector<88x32xf32>
    %109 = arith.addf %103, %108 : vector<88x32xf32>
    %c1_49 = arith.constant 1 : index
    %c0_50 = arith.constant 0 : index
    %110 = vector.load %arg7[%c1_49, %c0_50] : memref<104x288xf32, #tpu.memory_space<vmem>>, vector<88x288xf32>
    %111 = vector.extract_strided_slice %1 {offsets = [0, 1], sizes = [88, 1], strides = [1, 1]} : vector<88x9xf32> to vector<88x1xf32>
    %112 = vector.extract_strided_slice %110 {offsets = [0, 32], sizes = [88, 32], strides = [1, 1]} : vector<88x288xf32> to vector<88x32xf32>
    %113 = vector.broadcast %111 : vector<88x1xf32> to vector<88x32xf32>
    %114 = arith.mulf %113, %112 : vector<88x32xf32>
    %115 = arith.addf %109, %114 : vector<88x32xf32>
    %c2_51 = arith.constant 2 : index
    %c0_52 = arith.constant 0 : index
    %116 = vector.load %arg7[%c2_51, %c0_52] : memref<104x288xf32, #tpu.memory_space<vmem>>, vector<88x288xf32>
    %117 = vector.extract_strided_slice %1 {offsets = [0, 2], sizes = [88, 1], strides = [1, 1]} : vector<88x9xf32> to vector<88x1xf32>
    %118 = vector.extract_strided_slice %116 {offsets = [0, 64], sizes = [88, 32], strides = [1, 1]} : vector<88x288xf32> to vector<88x32xf32>
    %119 = vector.broadcast %117 : vector<88x1xf32> to vector<88x32xf32>
    %120 = arith.mulf %119, %118 : vector<88x32xf32>
    %121 = arith.addf %115, %120 : vector<88x32xf32>
    %c7_53 = arith.constant 7 : index
    %c0_54 = arith.constant 0 : index
    %122 = vector.load %arg7[%c7_53, %c0_54] : memref<104x288xf32, #tpu.memory_space<vmem>>, vector<88x288xf32>
    %123 = vector.extract_strided_slice %1 {offsets = [0, 3], sizes = [88, 1], strides = [1, 1]} : vector<88x9xf32> to vector<88x1xf32>
    %124 = vector.extract_strided_slice %122 {offsets = [0, 96], sizes = [88, 32], strides = [1, 1]} : vector<88x288xf32> to vector<88x32xf32>
    %125 = vector.broadcast %123 : vector<88x1xf32> to vector<88x32xf32>
    %126 = arith.mulf %125, %124 : vector<88x32xf32>
    %127 = arith.addf %121, %126 : vector<88x32xf32>
    %c8_55 = arith.constant 8 : index
    %c0_56 = arith.constant 0 : index
    %128 = vector.load %arg7[%c8_55, %c0_56] : memref<104x288xf32, #tpu.memory_space<vmem>>, vector<88x288xf32>
    %129 = vector.extract_strided_slice %1 {offsets = [0, 4], sizes = [88, 1], strides = [1, 1]} : vector<88x9xf32> to vector<88x1xf32>
    %130 = vector.extract_strided_slice %128 {offsets = [0, 128], sizes = [88, 32], strides = [1, 1]} : vector<88x288xf32> to vector<88x32xf32>
    %131 = vector.broadcast %129 : vector<88x1xf32> to vector<88x32xf32>
    %132 = arith.mulf %131, %130 : vector<88x32xf32>
    %133 = arith.addf %127, %132 : vector<88x32xf32>
    %c9_57 = arith.constant 9 : index
    %c0_58 = arith.constant 0 : index
    %134 = vector.load %arg7[%c9_57, %c0_58] : memref<104x288xf32, #tpu.memory_space<vmem>>, vector<88x288xf32>
    %135 = vector.extract_strided_slice %1 {offsets = [0, 5], sizes = [88, 1], strides = [1, 1]} : vector<88x9xf32> to vector<88x1xf32>
    %136 = vector.extract_strided_slice %134 {offsets = [0, 160], sizes = [88, 32], strides = [1, 1]} : vector<88x288xf32> to vector<88x32xf32>
    %137 = vector.broadcast %135 : vector<88x1xf32> to vector<88x32xf32>
    %138 = arith.mulf %137, %136 : vector<88x32xf32>
    %139 = arith.addf %133, %138 : vector<88x32xf32>
    %c14_59 = arith.constant 14 : index
    %c0_60 = arith.constant 0 : index
    %140 = vector.load %arg7[%c14_59, %c0_60] : memref<104x288xf32, #tpu.memory_space<vmem>>, vector<88x288xf32>
    %141 = vector.extract_strided_slice %1 {offsets = [0, 6], sizes = [88, 1], strides = [1, 1]} : vector<88x9xf32> to vector<88x1xf32>
    %142 = vector.extract_strided_slice %140 {offsets = [0, 192], sizes = [88, 32], strides = [1, 1]} : vector<88x288xf32> to vector<88x32xf32>
    %143 = vector.broadcast %141 : vector<88x1xf32> to vector<88x32xf32>
    %144 = arith.mulf %143, %142 : vector<88x32xf32>
    %145 = arith.addf %139, %144 : vector<88x32xf32>
    %c15_61 = arith.constant 15 : index
    %c0_62 = arith.constant 0 : index
    %146 = vector.load %arg7[%c15_61, %c0_62] : memref<104x288xf32, #tpu.memory_space<vmem>>, vector<88x288xf32>
    %147 = vector.extract_strided_slice %1 {offsets = [0, 7], sizes = [88, 1], strides = [1, 1]} : vector<88x9xf32> to vector<88x1xf32>
    %148 = vector.extract_strided_slice %146 {offsets = [0, 224], sizes = [88, 32], strides = [1, 1]} : vector<88x288xf32> to vector<88x32xf32>
    %149 = vector.broadcast %147 : vector<88x1xf32> to vector<88x32xf32>
    %150 = arith.mulf %149, %148 : vector<88x32xf32>
    %151 = arith.addf %145, %150 : vector<88x32xf32>
    %c16_63 = arith.constant 16 : index
    %c0_64 = arith.constant 0 : index
    %152 = vector.load %arg7[%c16_63, %c0_64] : memref<104x288xf32, #tpu.memory_space<vmem>>, vector<88x288xf32>
    %153 = vector.extract_strided_slice %1 {offsets = [0, 8], sizes = [88, 1], strides = [1, 1]} : vector<88x9xf32> to vector<88x1xf32>
    %154 = vector.extract_strided_slice %152 {offsets = [0, 256], sizes = [88, 32], strides = [1, 1]} : vector<88x288xf32> to vector<88x32xf32>
    %155 = vector.broadcast %153 : vector<88x1xf32> to vector<88x32xf32>
    %156 = arith.mulf %155, %154 : vector<88x32xf32>
    %157 = arith.addf %151, %156 : vector<88x32xf32>
    %158 = vector.extract_strided_slice %96 {offsets = [0, 0], sizes = [1, 32], strides = [1, 1]} : vector<2x32xf32> to vector<1x32xf32>
    %159 = vector.extract_strided_slice %96 {offsets = [1, 0], sizes = [1, 32], strides = [1, 1]} : vector<2x32xf32> to vector<1x32xf32>
    %cst_65 = arith.constant dense<0.000000e+00> : vector<32xf32>
    %160 = vector.multi_reduction <add>, %157, %cst_65 [0] : vector<88x32xf32> to vector<32xf32>
    %161 = vector.shape_cast %160 : vector<32xf32> to vector<1x32xf32>
    %cst_66 = arith.constant 0.0119047621 : f32
    %162 = vector.broadcast %cst_66 : f32 to vector<1x32xf32>
    %163 = arith.mulf %161, %162 : vector<1x32xf32>
    %164 = arith.mulf %157, %157 : vector<88x32xf32>
    %cst_67 = arith.constant dense<0.000000e+00> : vector<32xf32>
    %165 = vector.multi_reduction <add>, %164, %cst_67 [0] : vector<88x32xf32> to vector<32xf32>
    %166 = vector.shape_cast %165 : vector<32xf32> to vector<1x32xf32>
    %cst_68 = arith.constant 0.0119047621 : f32
    %167 = vector.broadcast %cst_68 : f32 to vector<1x32xf32>
    %168 = arith.mulf %166, %167 : vector<1x32xf32>
    %169 = arith.mulf %163, %163 : vector<1x32xf32>
    %170 = arith.subf %168, %169 : vector<1x32xf32>
    %cst_69 = arith.constant 9.99999974E-6 : f32
    %171 = vector.broadcast %cst_69 : f32 to vector<1x32xf32>
    %172 = arith.addf %170, %171 : vector<1x32xf32>
    %173 = math.rsqrt %172 : vector<1x32xf32>
    %174 = arith.mulf %158, %173 : vector<1x32xf32>
    %175 = vector.broadcast %174 : vector<1x32xf32> to vector<88x32xf32>
    %176 = arith.mulf %157, %175 : vector<88x32xf32>
    %177 = arith.mulf %163, %174 : vector<1x32xf32>
    %178 = arith.subf %159, %177 : vector<1x32xf32>
    %179 = vector.broadcast %178 : vector<1x32xf32> to vector<88x32xf32>
    %180 = arith.addf %176, %179 : vector<88x32xf32>
    %181 = vector.broadcast %3 : vector<88x1xf32> to vector<88x32xf32>
    %182 = arith.mulf %180, %181 : vector<88x32xf32>
    %cst_70 = arith.constant 0.000000e+00 : f32
    %183 = vector.broadcast %cst_70 : f32 to vector<88x32xf32>
    %184 = arith.maximumf %182, %183 : vector<88x32xf32>
    %c2_71 = arith.constant 2 : index
    %c0_72 = arith.constant 0 : index
    %c0_73 = arith.constant 0 : index
    %185 = vector.load %arg3[%c2_71, %c0_72, %c0_73] : memref<4x32x288xf32, #tpu.memory_space<vmem>>, vector<1x32x288xf32>
    %186 = vector.shape_cast %185 : vector<1x32x288xf32> to vector<32x288xf32>
    %cst_74 = arith.constant dense<0.000000e+00> : vector<88x288xf32>
    %187 = tpu.matmul %184, %186, %cst_74 {dimension_numbers = #tpu.dot_dimension_numbers<[1], [0], [0], [1], [0, 0, 1, 1], [], []>} : vector<88x32xf32>, vector<32x288xf32>, vector<88x288xf32> -> vector<88x288xf32>
    %c8_75 = arith.constant 8 : index
    %c0_76 = arith.constant 0 : index
    %188 = vector.load %arg7[%c8_75, %c0_76] : memref<104x288xf32, #tpu.memory_space<vmem>>, vector<88x288xf32>
    tpu.vector_store %arg7[%c8_75, %c0_76], %187 {strides = array<i32>} : memref<104x288xf32, #tpu.memory_space<vmem>>, vector<88x288xf32>,
    %cst_77 = arith.constant 0.000000e+00 : f32
    %189 = vector.broadcast %cst_77 : f32 to vector<88x32xf32>
    %c0_78 = arith.constant 0 : index
    %c0_79 = arith.constant 0 : index
    %190 = vector.load %arg7[%c0_78, %c0_79] : memref<104x288xf32, #tpu.memory_space<vmem>>, vector<88x288xf32>
    %191 = vector.extract_strided_slice %1 {offsets = [0, 0], sizes = [88, 1], strides = [1, 1]} : vector<88x9xf32> to vector<88x1xf32>
    %192 = vector.extract_strided_slice %190 {offsets = [0, 0], sizes = [88, 32], strides = [1, 1]} : vector<88x288xf32> to vector<88x32xf32>
    %193 = vector.broadcast %191 : vector<88x1xf32> to vector<88x32xf32>
    %194 = arith.mulf %193, %192 : vector<88x32xf32>
    %195 = arith.addf %189, %194 : vector<88x32xf32>
    %c1_80 = arith.constant 1 : index
    %c0_81 = arith.constant 0 : index
    %196 = vector.load %arg7[%c1_80, %c0_81] : memref<104x288xf32, #tpu.memory_space<vmem>>, vector<88x288xf32>
    %197 = vector.extract_strided_slice %1 {offsets = [0, 1], sizes = [88, 1], strides = [1, 1]} : vector<88x9xf32> to vector<88x1xf32>
    %198 = vector.extract_strided_slice %196 {offsets = [0, 32], sizes = [88, 32], strides = [1, 1]} : vector<88x288xf32> to vector<88x32xf32>
    %199 = vector.broadcast %197 : vector<88x1xf32> to vector<88x32xf32>
    %200 = arith.mulf %199, %198 : vector<88x32xf32>
    %201 = arith.addf %195, %200 : vector<88x32xf32>
    %c2_82 = arith.constant 2 : index
    %c0_83 = arith.constant 0 : index
    %202 = vector.load %arg7[%c2_82, %c0_83] : memref<104x288xf32, #tpu.memory_space<vmem>>, vector<88x288xf32>
    %203 = vector.extract_strided_slice %1 {offsets = [0, 2], sizes = [88, 1], strides = [1, 1]} : vector<88x9xf32> to vector<88x1xf32>
    %204 = vector.extract_strided_slice %202 {offsets = [0, 64], sizes = [88, 32], strides = [1, 1]} : vector<88x288xf32> to vector<88x32xf32>
    %205 = vector.broadcast %203 : vector<88x1xf32> to vector<88x32xf32>
    %206 = arith.mulf %205, %204 : vector<88x32xf32>
    %207 = arith.addf %201, %206 : vector<88x32xf32>
    %c7_84 = arith.constant 7 : index
    %c0_85 = arith.constant 0 : index
    %208 = vector.load %arg7[%c7_84, %c0_85] : memref<104x288xf32, #tpu.memory_space<vmem>>, vector<88x288xf32>
    %209 = vector.extract_strided_slice %1 {offsets = [0, 3], sizes = [88, 1], strides = [1, 1]} : vector<88x9xf32> to vector<88x1xf32>
    %210 = vector.extract_strided_slice %208 {offsets = [0, 96], sizes = [88, 32], strides = [1, 1]} : vector<88x288xf32> to vector<88x32xf32>
    %211 = vector.broadcast %209 : vector<88x1xf32> to vector<88x32xf32>
    %212 = arith.mulf %211, %210 : vector<88x32xf32>
    %213 = arith.addf %207, %212 : vector<88x32xf32>
    %c8_86 = arith.constant 8 : index
    %c0_87 = arith.constant 0 : index
    %214 = vector.load %arg7[%c8_86, %c0_87] : memref<104x288xf32, #tpu.memory_space<vmem>>, vector<88x288xf32>
    %215 = vector.extract_strided_slice %1 {offsets = [0, 4], sizes = [88, 1], strides = [1, 1]} : vector<88x9xf32> to vector<88x1xf32>
    %216 = vector.extract_strided_slice %214 {offsets = [0, 128], sizes = [88, 32], strides = [1, 1]} : vector<88x288xf32> to vector<88x32xf32>
    %217 = vector.broadcast %215 : vector<88x1xf32> to vector<88x32xf32>
    %218 = arith.mulf %217, %216 : vector<88x32xf32>
    %219 = arith.addf %213, %218 : vector<88x32xf32>
    %c9_88 = arith.constant 9 : index
    %c0_89 = arith.constant 0 : index
    %220 = vector.load %arg7[%c9_88, %c0_89] : memref<104x288xf32, #tpu.memory_space<vmem>>, vector<88x288xf32>
    %221 = vector.extract_strided_slice %1 {offsets = [0, 5], sizes = [88, 1], strides = [1, 1]} : vector<88x9xf32> to vector<88x1xf32>
    %222 = vector.extract_strided_slice %220 {offsets = [0, 160], sizes = [88, 32], strides = [1, 1]} : vector<88x288xf32> to vector<88x32xf32>
    %223 = vector.broadcast %221 : vector<88x1xf32> to vector<88x32xf32>
    %224 = arith.mulf %223, %222 : vector<88x32xf32>
    %225 = arith.addf %219, %224 : vector<88x32xf32>
    %c14_90 = arith.constant 14 : index
    %c0_91 = arith.constant 0 : index
    %226 = vector.load %arg7[%c14_90, %c0_91] : memref<104x288xf32, #tpu.memory_space<vmem>>, vector<88x288xf32>
    %227 = vector.extract_strided_slice %1 {offsets = [0, 6], sizes = [88, 1], strides = [1, 1]} : vector<88x9xf32> to vector<88x1xf32>
    %228 = vector.extract_strided_slice %226 {offsets = [0, 192], sizes = [88, 32], strides = [1, 1]} : vector<88x288xf32> to vector<88x32xf32>
    %229 = vector.broadcast %227 : vector<88x1xf32> to vector<88x32xf32>
    %230 = arith.mulf %229, %228 : vector<88x32xf32>
    %231 = arith.addf %225, %230 : vector<88x32xf32>
    %c15_92 = arith.constant 15 : index
    %c0_93 = arith.constant 0 : index
    %232 = vector.load %arg7[%c15_92, %c0_93] : memref<104x288xf32, #tpu.memory_space<vmem>>, vector<88x288xf32>
    %233 = vector.extract_strided_slice %1 {offsets = [0, 7], sizes = [88, 1], strides = [1, 1]} : vector<88x9xf32> to vector<88x1xf32>
    %234 = vector.extract_strided_slice %232 {offsets = [0, 224], sizes = [88, 32], strides = [1, 1]} : vector<88x288xf32> to vector<88x32xf32>
    %235 = vector.broadcast %233 : vector<88x1xf32> to vector<88x32xf32>
    %236 = arith.mulf %235, %234 : vector<88x32xf32>
    %237 = arith.addf %231, %236 : vector<88x32xf32>
    %c16_94 = arith.constant 16 : index
    %c0_95 = arith.constant 0 : index
    %238 = vector.load %arg7[%c16_94, %c0_95] : memref<104x288xf32, #tpu.memory_space<vmem>>, vector<88x288xf32>
    %239 = vector.extract_strided_slice %1 {offsets = [0, 8], sizes = [88, 1], strides = [1, 1]} : vector<88x9xf32> to vector<88x1xf32>
    %240 = vector.extract_strided_slice %238 {offsets = [0, 256], sizes = [88, 32], strides = [1, 1]} : vector<88x288xf32> to vector<88x32xf32>
    %241 = vector.broadcast %239 : vector<88x1xf32> to vector<88x32xf32>
    %242 = arith.mulf %241, %240 : vector<88x32xf32>
    %243 = arith.addf %237, %242 : vector<88x32xf32>
    %244 = vector.extract_strided_slice %98 {offsets = [0, 0], sizes = [1, 32], strides = [1, 1]} : vector<2x32xf32> to vector<1x32xf32>
    %245 = vector.extract_strided_slice %98 {offsets = [1, 0], sizes = [1, 32], strides = [1, 1]} : vector<2x32xf32> to vector<1x32xf32>
    %cst_96 = arith.constant dense<0.000000e+00> : vector<32xf32>
    %246 = vector.multi_reduction <add>, %243, %cst_96 [0] : vector<88x32xf32> to vector<32xf32>
    %247 = vector.shape_cast %246 : vector<32xf32> to vector<1x32xf32>
    %cst_97 = arith.constant 0.0119047621 : f32
    %248 = vector.broadcast %cst_97 : f32 to vector<1x32xf32>
    %249 = arith.mulf %247, %248 : vector<1x32xf32>
    %250 = arith.mulf %243, %243 : vector<88x32xf32>
    %cst_98 = arith.constant dense<0.000000e+00> : vector<32xf32>
    %251 = vector.multi_reduction <add>, %250, %cst_98 [0] : vector<88x32xf32> to vector<32xf32>
    %252 = vector.shape_cast %251 : vector<32xf32> to vector<1x32xf32>
    %cst_99 = arith.constant 0.0119047621 : f32
    %253 = vector.broadcast %cst_99 : f32 to vector<1x32xf32>
    %254 = arith.mulf %252, %253 : vector<1x32xf32>
    %255 = arith.mulf %249, %249 : vector<1x32xf32>
    %256 = arith.subf %254, %255 : vector<1x32xf32>
    %cst_100 = arith.constant 9.99999974E-6 : f32
    %257 = vector.broadcast %cst_100 : f32 to vector<1x32xf32>
    %258 = arith.addf %256, %257 : vector<1x32xf32>
    %259 = math.rsqrt %258 : vector<1x32xf32>
    %260 = arith.mulf %244, %259 : vector<1x32xf32>
    %261 = vector.broadcast %260 : vector<1x32xf32> to vector<88x32xf32>
    %262 = arith.mulf %243, %261 : vector<88x32xf32>
    %263 = arith.mulf %249, %260 : vector<1x32xf32>
    %264 = arith.subf %245, %263 : vector<1x32xf32>
    %265 = vector.broadcast %264 : vector<1x32xf32> to vector<88x32xf32>
    %266 = arith.addf %262, %265 : vector<88x32xf32>
    %267 = vector.broadcast %3 : vector<88x1xf32> to vector<88x32xf32>
    %268 = arith.mulf %266, %267 : vector<88x32xf32>
    %269 = arith.addf %268, %94 : vector<88x32xf32>
    %cst_101 = arith.constant 0.000000e+00 : f32
    %270 = vector.broadcast %cst_101 : f32 to vector<88x32xf32>
    %271 = arith.maximumf %269, %270 : vector<88x32xf32>
    %c3 = arith.constant 3 : index
    %c0_102 = arith.constant 0 : index
    %c0_103 = arith.constant 0 : index
    %272 = vector.load %arg3[%c3, %c0_102, %c0_103] : memref<4x32x288xf32, #tpu.memory_space<vmem>>, vector<1x32x288xf32>
    %273 = vector.shape_cast %272 : vector<1x32x288xf32> to vector<32x288xf32>
    %274 = vector.extract_strided_slice %273 {offsets = [0, 0], sizes = [32, 3], strides = [1, 1]} : vector<32x288xf32> to vector<32x3xf32>
    %cst_104 = arith.constant dense<0.000000e+00> : vector<88x3xf32>
    %275 = tpu.matmul %271, %274, %cst_104 {dimension_numbers = #tpu.dot_dimension_numbers<[1], [0], [0], [1], [0, 0, 1, 1], [], []>} : vector<88x32xf32>, vector<32x3xf32>, vector<88x3xf32> -> vector<88x3xf32>
    %c3_105 = arith.constant 3 : index
    %c0_106 = arith.constant 0 : index
    %c0_107 = arith.constant 0 : index
    %276 = vector.load %arg4[%c3_105, %c0_106, %c0_107] : memref<6x2x32xf32, #tpu.memory_space<vmem>>, vector<1x2x32xf32>
    %277 = vector.shape_cast %276 : vector<1x2x32xf32> to vector<2x32xf32>
    %278 = vector.extract_strided_slice %277 {offsets = [0, 0], sizes = [1, 3], strides = [1, 1]} : vector<2x32xf32> to vector<1x3xf32>
    %279 = vector.extract_strided_slice %277 {offsets = [1, 0], sizes = [1, 3], strides = [1, 1]} : vector<2x32xf32> to vector<1x3xf32>
    %cst_108 = arith.constant dense<0.000000e+00> : vector<3xf32>
    %280 = vector.multi_reduction <add>, %275, %cst_108 [0] : vector<88x3xf32> to vector<3xf32>
    %281 = vector.shape_cast %280 : vector<3xf32> to vector<1x3xf32>
    %cst_109 = arith.constant 0.0119047621 : f32
    %282 = vector.broadcast %cst_109 : f32 to vector<1x3xf32>
    %283 = arith.mulf %281, %282 : vector<1x3xf32>
    %284 = arith.mulf %275, %275 : vector<88x3xf32>
    %cst_110 = arith.constant dense<0.000000e+00> : vector<3xf32>
    %285 = vector.multi_reduction <add>, %284, %cst_110 [0] : vector<88x3xf32> to vector<3xf32>
    %286 = vector.shape_cast %285 : vector<3xf32> to vector<1x3xf32>
    %cst_111 = arith.constant 0.0119047621 : f32
    %287 = vector.broadcast %cst_111 : f32 to vector<1x3xf32>
    %288 = arith.mulf %286, %287 : vector<1x3xf32>
    %289 = arith.mulf %283, %283 : vector<1x3xf32>
    %290 = arith.subf %288, %289 : vector<1x3xf32>
    %cst_112 = arith.constant 9.99999974E-6 : f32
    %291 = vector.broadcast %cst_112 : f32 to vector<1x3xf32>
    %292 = arith.addf %290, %291 : vector<1x3xf32>
    %293 = math.rsqrt %292 : vector<1x3xf32>
    %294 = arith.mulf %278, %293 : vector<1x3xf32>
    %295 = vector.broadcast %294 : vector<1x3xf32> to vector<88x3xf32>
    %296 = arith.mulf %275, %295 : vector<88x3xf32>
    %297 = arith.mulf %283, %294 : vector<1x3xf32>
    %298 = arith.subf %279, %297 : vector<1x3xf32>
    %299 = vector.broadcast %298 : vector<1x3xf32> to vector<88x3xf32>
    %300 = arith.addf %296, %299 : vector<88x3xf32>
    %301 = vector.broadcast %3 : vector<88x1xf32> to vector<88x3xf32>
    %302 = arith.mulf %300, %301 : vector<88x3xf32>
    %cst_113 = arith.constant 0.000000e+00 : f32
    %303 = vector.broadcast %cst_113 : f32 to vector<88x3xf32>
    %304 = arith.maximumf %302, %303 : vector<88x3xf32>
    %c4 = arith.constant 4 : index
    %c0_114 = arith.constant 0 : index
    %c0_115 = arith.constant 0 : index
    %305 = vector.load %arg4[%c4, %c0_114, %c0_115] : memref<6x2x32xf32, #tpu.memory_space<vmem>>, vector<1x2x32xf32>
    %306 = vector.shape_cast %305 : vector<1x2x32xf32> to vector<2x32xf32>
    %c5 = arith.constant 5 : index
    %c0_116 = arith.constant 0 : index
    %c0_117 = arith.constant 0 : index
    %307 = vector.load %arg4[%c5, %c0_116, %c0_117] : memref<6x2x32xf32, #tpu.memory_space<vmem>>, vector<1x2x32xf32>
    %308 = vector.shape_cast %307 : vector<1x2x32xf32> to vector<2x32xf32>
    %c0_118 = arith.constant 0 : index
    %c0_119 = arith.constant 0 : index
    %309 = vector.load %arg5[%c0_118, %c0_119] : memref<88x46xf32, #tpu.memory_space<vmem>>, vector<88x46xf32>
    %310 = vector.extract_strided_slice %304 {offsets = [0, 0], sizes = [88, 1], strides = [1, 1]} : vector<88x3xf32> to vector<88x1xf32>
    %311 = vector.extract_strided_slice %309 {offsets = [0, 0], sizes = [88, 7], strides = [1, 1]} : vector<88x46xf32> to vector<88x7xf32>
    %312 = vector.broadcast %310 : vector<88x1xf32> to vector<88x7xf32>
    %313 = arith.mulf %312, %311 : vector<88x7xf32>
    %314 = vector.extract_strided_slice %304 {offsets = [0, 1], sizes = [88, 1], strides = [1, 1]} : vector<88x3xf32> to vector<88x1xf32>
    %315 = vector.extract_strided_slice %309 {offsets = [0, 7], sizes = [88, 7], strides = [1, 1]} : vector<88x46xf32> to vector<88x7xf32>
    %316 = vector.broadcast %314 : vector<88x1xf32> to vector<88x7xf32>
    %317 = arith.mulf %316, %315 : vector<88x7xf32>
    %318 = arith.addf %313, %317 : vector<88x7xf32>
    %319 = vector.extract_strided_slice %304 {offsets = [0, 2], sizes = [88, 1], strides = [1, 1]} : vector<88x3xf32> to vector<88x1xf32>
    %320 = vector.extract_strided_slice %309 {offsets = [0, 14], sizes = [88, 32], strides = [1, 1]} : vector<88x46xf32> to vector<88x32xf32>
    %321 = vector.broadcast %319 : vector<88x1xf32> to vector<88x32xf32>
    %322 = arith.mulf %321, %320 : vector<88x32xf32>
    %cst_120 = arith.constant dense<0.000000e+00> : vector<2x7xf32>
    %323 = tpu.matmul %2, %318, %cst_120 {dimension_numbers = #tpu.dot_dimension_numbers<[1], [0], [0], [1], [0, 0, 1, 1], [], []>} : vector<2x88xf32>, vector<88x7xf32>, vector<2x7xf32> -> vector<2x7xf32>
    %324 = vector.extract_strided_slice %306 {offsets = [0, 0], sizes = [1, 7], strides = [1, 1]} : vector<2x32xf32> to vector<1x7xf32>
    %325 = vector.broadcast %324 : vector<1x7xf32> to vector<2x7xf32>
    %326 = arith.addf %323, %325 : vector<2x7xf32>
    %cst_121 = arith.constant dense<0.000000e+00> : vector<2x32xf32>
    %327 = tpu.matmul %2, %322, %cst_121 {dimension_numbers = #tpu.dot_dimension_numbers<[1], [0], [0], [1], [0, 0, 1, 1], [], []>} : vector<2x88xf32>, vector<88x32xf32>, vector<2x32xf32> -> vector<2x32xf32>
    %328 = vector.extract_strided_slice %306 {offsets = [1, 0], sizes = [1, 32], strides = [1, 1]} : vector<2x32xf32> to vector<1x32xf32>
    %329 = vector.broadcast %328 : vector<1x32xf32> to vector<2x32xf32>
    %330 = arith.addf %327, %329 : vector<2x32xf32>
    %cst_122 = arith.constant 0.000000e+00 : f32
    %331 = vector.broadcast %cst_122 : f32 to vector<2x32xf32>
    %332 = arith.maximumf %330, %331 : vector<2x32xf32>
    %333 = vector.extract_strided_slice %308 {offsets = [0, 0], sizes = [1, 32], strides = [1, 1]} : vector<2x32xf32> to vector<1x32xf32>
    %334 = vector.broadcast %333 : vector<1x32xf32> to vector<2x32xf32>
    %335 = arith.mulf %332, %334 : vector<2x32xf32>
    %cst_123 = arith.constant dense<0.000000e+00> : vector<2xf32>
    %336 = vector.multi_reduction <add>, %335, %cst_123 [1] : vector<2x32xf32> to vector<2xf32>
    %337 = vector.shape_cast %336 : vector<2xf32> to vector<2x1xf32>
    %338 = vector.extract_strided_slice %308 {offsets = [1, 0], sizes = [1, 1], strides = [1, 1]} : vector<2x32xf32> to vector<1x1xf32>
    %339 = vector.broadcast %338 : vector<1x1xf32> to vector<2x1xf32>
    %340 = arith.addf %337, %339 : vector<2x1xf32>
    %341 = math.tanh %340 : vector<2x1xf32>
    %cst_124 = arith.constant 0.000000e+00 : f32
    %342 = vector.broadcast %cst_124 : f32 to vector<2x120xf32>
    %343 = tpu.concatenate %326, %341, %342 in 1 : vector<2x7xf32>, vector<2x1xf32>, vector<2x120xf32> -> vector<2x128xf32>
    %c0_125 = arith.constant 0 : index
    %c0_126 = arith.constant 0 : index
    %344 = vector.load %arg6[%c0_125, %c0_126] : memref<2x128xf32, #tpu.memory_space<vmem>>, vector<2x128xf32>
    tpu.vector_store %arg6[%c0_125, %c0_126], %343 {strides = array<i32>} : memref<2x128xf32, #tpu.memory_space<vmem>>, vector<2x128xf32>,
    return
  }
}

</mosaic_0001>

<bundles_post_ra>
// kernel: net_forward.1
= control target key start
LH: loop header
LB: loop body
LE: loop exit
PB: predicated region body
PF: predicated region fallthrough
CT: control target
= control target key end

     0   :  { %vm48_vm0 = vcmask 261120   ;;  %v8288_v0 = vmov 1   ;;  %v5101_v4 = vmov 0.0   ;;  %v8282_v13 = vmov 0   ;;  %s5112_s16 = smov 32   ;;  %s5113_s17 = smov 64   ;;  %s8275_s1 = inlined_call_operand.vmem [shape: f32[88,9], index: 1, kind: input, shape index: {}]   ;;  %s8276_s3 = inlined_call_operand.vmem [shape: f32[4,32,288], index: 3, kind: input, shape index: {}]   ;;  %s8277_s0 = inlined_call_operand.vmem [shape: f32[88,32], index: 0, kind: input, shape index: {}]   ;;  %s8278_s4 = inlined_call_operand.vmem [shape: f32[6,2,32], index: 4, kind: input, shape index: {}]   ;;  %s8279_s5 = inlined_call_operand.vmem [shape: f32[88,46], index: 5, kind: input, shape index: {}]   ;;  %s8280_s2 = inlined_call_operand.vmem [shape: f32[2,88], index: 2, kind: input, shape index: {}]   ;;  %s8281_s6 = inlined_call_operand.vmem [shape: f32[2,128], index: 6, kind: output, shape index: {}]  }
   0x1   :  { %4981 = vset.pattern.permute.xlu1 %v8288_v0  ;;  %v5157_v1 = vld [vmem:[%s8275_s1] sm:$0xff]  ;;  %v55_v2 = vld [vmem:[%s8276_s3 + $0x8] sm:$0xff]  ;;  %163 = vmatprep.mubr.f32.mxu0 %v5101_v4  ;;  %46 = vst [vmem:[#allocation2] sm:$0xff] %v5101_v4  ;;  %51 = vst [vmem:[#allocation2 + $0x128] sm:$0xff] %v5101_v4  ;;  %v8286_v23 = vmov 0.0|0.0   ;;  %v8284_v29 = vmov 2  }
   0x2   :  { %v58_v3 = vld [vmem:[%s8276_s3 + $0x20] sm:$0xff]  ;;  %52 = vst.msk [vmem:[#allocation2 + $0x130] sm:$0xff] %vm48_vm0, %v5101_v4  ;;  %484 = vperm.xlu1 %4981, %v5157_v1   ;;  %v57_v7 = vld [vmem:[%s8276_s3 + $0x18] sm:$0xff]  ;;  %v5180_v8 = vld [vmem:[%s8275_s1 + $0x8] sm:$0xff]  ;;  %217 = vmatprep.mubr.f32.mxu1 %v5101_v4  ;;  %vm5105_vm1 = vmmov 0   ;;  %v5106_v36 = vmov 3  }
   0x3   :  { %v4880_v5 = vpack.c.bf16 %v58_v3, %v55_v2  ;;  %v54_v6 = vld [vmem:[%s8276_s3] sm:$0xff]  ;;  %v61_v10 = vld [vmem:[%s8276_s3 + $0x38] sm:$0xff]  ;;  %v64_v11 = vld [vmem:[%s8276_s3 + $0x50] sm:$0xff]  ;;  %4980 = vset.pattern.permute.xlu0 %v8282_v13  ;;  %v8297_v46 = vmov 4   ;;  %v8292_v47 = vmov 5   ;;  %v8294_v48 = vmov 6  }
   0x4   :  { %v4882_v9 = vpack.c.bf16 %v57_v7, %v54_v6  ;;  %v60_v12 = vld [vmem:[%s8276_s3 + $0x30] sm:$0xff]  ;;  %v4884_v14 = vpack.c.bf16 %v64_v11, %v61_v10  ;;  %v63_v15 = vld [vmem:[%s8276_s3 + $0x48] sm:$0xff]  ;;  %396 = vperm.xlu0 %4980, %v5157_v1   ;;  %v23_v20 = vld [vmem:[%s8277_s0] sm:$0xff]  ;;  %v8300_v49 = vmov 7   ;;  %v8290_v56 = vmov 8   ;;  %s5114_s18 = smov 96  }
   0x5   :  { %4881 = vmatprep.subr.bf16.mxu0 %v4880_v5  ;;  %4958 = vmatprep.subr.bf16.mxu1 %v4880_v5  ;;  %v4886_v16 = vpack.c.bf16 %v63_v15, %v60_v12  ;;  %v5200_v17 = vld [vmem:[%s8275_s1 + $0x10] sm:$0xff]  ;;  %v59_v19 = vld [vmem:[%s8276_s3 + $0x28] sm:$0xff]  ;;  %v62_v24 = vld [vmem:[%s8276_s3 + $0x40] sm:$0xff]  ;;  %vm793_vm2 = vcmask 1040384   ;;  %vm666_vm3 = vcmask 1045504   ;;  %vm539_vm4 = vcmask 1046528  }
   0x6   :  { %4883 = vmatpush1.bf16.msra.mxu0 %v4882_v9  ;;  %4960 = vmatpush1.bf16.msra.mxu1 %v4882_v9  ;;  %v56_v18 = vld [vmem:[%s8276_s3 + $0x10] sm:$0xff]  ;;  %v5215_v21 = vld [vmem:[%s8277_s0 + $0x48] sm:$0xff]  ;;  %v65_v25 = vld [vmem:[%s8276_s3 + $0x58] sm:$0xff]  ;;  %vm1143_vm5 = vcmask 1041408   ;;  %vm3869_vm6 = vcmask 23552   ;;  %s5115_s28 = smov 121  }
   0x7   :  { %488 = vperm.xlu1 %4981, %v5180_v8   ;;  %4885 = vmatprep.subr.bf16.mxu0 %v4884_v14  ;;  %v4889_v22 = vpack.c.bf16 %v59_v19, %v56_v18  ;;  %v24_v26 = vld [vmem:[%s8277_s0 + $0x8] sm:$0xff]  ;;  %v5236_v27 = vld [vmem:[%s8277_s0 + $0x50] sm:$0xff]  ;;  %v4892_v28 = vpack.c.bf16 %v65_v25, %v62_v24  ;;  %v5249_v30 = vld [vmem:[%s8275_s1 + $0x18] sm:$0xff]  ;;  %vm4249_vm7 = vcmask 719872   ;;  %vm4447_vm8 = vcmask 254976   ;;  %s5117_s21 = smov 7  }
   0x8   :  { %4959 = vmatprep.subr.bf16.mxu1 %v4884_v14  ;;  %401 = vperm.xlu0 %4980, %v5180_v8   ;;  %v25_v31 = vld [vmem:[%s8277_s0 + $0x10] sm:$0xff]  ;;  %v26_v32 = vld [vmem:[%s8277_s0 + $0x18] sm:$0xff]  ;;  %v5268_v33 = vld [vmem:[%s8275_s1 + $0x28] sm:$0xff]  ;;  %vm4461_vm9 = vcmask 56320   ;;  %vm4463_vm10 = vcmask 64512  }
   0x9   :  { %v27_v34 = vld [vmem:[%s8277_s0 + $0x20] sm:$0xff]  ;;  %v5284_v35 = vld [vmem:[%s8275_s1 + $0x38] sm:$0xff]  ;;  %v28_v37 = vld [vmem:[%s8277_s0 + $0x28] sm:$0xff] }
   0xa   :  { %4887 = vmatpush1.bf16.msra.mxu0 %v4886_v16  ;;  %4961 = vmatpush1.bf16.msra.mxu1 %v4886_v16  ;;  %v5305_v38 = vld [vmem:[%s8275_s1 + $0x20] sm:$0xff]  ;;  %v29_v39 = vld [vmem:[%s8277_s0 + $0x30] sm:$0xff]  ;;  %v30_v41 = vld [vmem:[%s8277_s0 + $0x38] sm:$0xff] }
   0xb   :  { %492 = vperm.xlu1 %4981, %v5200_v17   ;;  %4888 = vmatprep.subr.bf16.mxu1 %v8286_v23  ;;  %8529 = vst [vmem:[#allocation3_spill] sm:$0xff] %v5305_v38  ;;  %v5318_v40 = vld [vmem:[%s8275_s1 + $0x30] sm:$0xff]  ;;  %v5337_v42 = vld [vmem:[%s8275_s1 + $0x40] sm:$0xff]  ;;  %v5352_v44 = vld [vmem:[%s8275_s1 + $0x48] sm:$0xff] }
   0xc   :  { %406 = vperm.xlu0 %4980, %v5200_v17   ;;  %v31_v43 = vld [vmem:[%s8277_s0 + $0x40] sm:$0xff]  ;;  %v5359_v45 = vld [vmem:[%s8275_s1 + $0x50] sm:$0xff] }
   0xd   :  { %4470 = vmatmul.mubr.msk.f32.vlgmr.msra.gmra.mrb[0].mxu0 %vm48_vm0, %v23_v20  ;;  %4479 = vmatmul.mubr.msk.f32.vlgmr.msra.gmra.mrb[0].mxu1 %vm48_vm0, %v5215_v21  ;;  %v745_v7 = vld [vmem:[#allocation2] sm:$0x80] }
   0xe   :  { %169 = vmatprep.mubr.f32.mxu0 %v5101_v4  ;;  %4890 = vmatpush3.bf16.msra.mxu1 %v4889_v22  ;;  %v794_v10 = vrot.slane %v745_v7, 7 }
   0xf   :  { %4982 = vset.pattern.permute.xlu1 %v8284_v29  ;;  %223 = vmatprep.mubr.f32.mxu1 %v5101_v4 }
  0x10   :  { %625 = vperm.xlu1 %4982, %v5180_v8   ;;  %4891 = vmatprep.subr.bf16.mxu1 %v8286_v23 }
  0x11   :  { %4471 = vmatmul.mubr.msk.f32.gmra.mrb[2].mxu0 %vm48_vm0, %v24_v26  ;;  %4480 = vmatmul.mubr.msk.f32.gmra.mrb[2].mxu1 %vm48_vm0, %v5236_v27 }
  0x12   :  { %175 = vmatprep.mubr.f32.mxu0 %v5101_v4  ;;  %4893 = vmatpush3.bf16.msra.mxu1 %v4892_v28 }
  0x13   :  { %4674 = vmatprep.mubr.msk.f32.mxu1 %vm5105_vm1, %v5101_v4  ;;  %4902 = vmatprep.subr.bf16.mxu1 %v8286_v23 }
  0x14   :  { %4983 = vset.pattern.permute.xlu1 %v8282_v13  ;;  %421 = vperm.xlu0 %4980, %v5268_v33  }
  0x15   :  { %411 = vperm.xlu1 %4983, %v5249_v30   ;;  %4472 = vmatmul.mubr.msk.f32.gmra.mrb[4].mxu0 %vm48_vm0, %v25_v31 }
  0x16   :  { %181 = vmatprep.mubr.f32.mxu0 %v5101_v4  ;;  %4675 = vmatmul.mubr.msk.f32.vlgmr.msra.gmra.mrb[4].mxu1 %vm48_vm0, %v23_v20 }
  0x17   :  { %4677 = vmatprep.mubr.msk.f32.mxu1 %vm5105_vm1, %v5101_v4 }
  0x18   :  { %431 = vperm.xlu0 %4980, %v5284_v35  }
  0x19   :  { %4984 = vset.pattern.permute.xlu1 %v8284_v29  ;;  %4473 = vmatmul.mubr.msk.f32.gmra.mrb[6].mxu0 %vm48_vm0, %v26_v32 }
  0x1a   :  { %629 = vperm.xlu1 %4984, %v5200_v17   ;;  %187 = vmatprep.mubr.f32.mxu0 %v5101_v4 }
  0x1b   :  { %4678 = vmatmul.mubr.msk.f32.gmra.mrb[6].mxu1 %vm48_vm0, %v24_v26 }
  0x1c   :  { %4680 = vmatprep.mubr.msk.f32.mxu1 %vm5105_vm1, %v5101_v4  ;;  %4999 = vset.pattern.permute.xlu0 %v8288_v0 }
  0x1d   :  { %4474 = vmatmul.mubr.msk.f32.gmra.mrb[8].mxu0 %vm48_vm0, %v27_v34  ;;  %496 = vperm.xlu0 %4999, %v5249_v30  }
  0x1e   :  { %4985 = vset.pattern.permute.xlu1 %v5106_v36  ;;  %193 = vmatprep.mubr.f32.mxu0 %v5101_v4 }
  0x1f   :  { %748 = vperm.xlu1 %4985, %v5157_v1   ;;  %4681 = vmatmul.mubr.msk.f32.gmra.mrb[8].mxu1 %vm48_vm0, %v25_v31 }
  0x20   :  { %4683 = vmatprep.mubr.msk.f32.mxu1 %vm5105_vm1, %v5101_v4 }
  0x21   :  { %4475 = vmatmul.mubr.msk.f32.gmra.mrb[10].mxu0 %vm48_vm0, %v28_v37  ;;  %508 = vperm.xlu0 %4999, %v5318_v40  }
  0x22   :  { %199 = vmatprep.mubr.f32.mxu0 %v5101_v4 }
  0x23   :  { %4986 = vset.pattern.permute.xlu1 %v8282_v13  ;;  %4684 = vmatmul.mubr.msk.f32.gmra.mrb[10].mxu1 %vm48_vm0, %v26_v32 }
  0x24   :  { %416 = vperm.xlu1 %4986, %v5305_v38   ;;  %4686 = vmatprep.mubr.msk.f32.mxu1 %vm5105_vm1, %v5101_v4 }
  0x25   :  { %4476 = vmatmul.mubr.msk.f32.gmra.mrb[12].mxu0 %vm48_vm0, %v29_v39  ;;  %516 = vperm.xlu0 %4999, %v5337_v42  }
  0x26   :  { %205 = vmatprep.mubr.f32.mxu0 %v5101_v4 }
  0x27   :  { %4687 = vmatmul.mubr.msk.f32.gmra.mrb[12].mxu1 %vm48_vm0, %v27_v34 }
  0x28   :  { %4987 = vset.pattern.permute.xlu1 %v8288_v0  ;;  %4689 = vmatprep.mubr.msk.f32.mxu1 %vm5105_vm1, %v5101_v4 }
  0x29   :  { %500 = vperm.xlu1 %4987, %v5305_v38   ;;  %4477 = vmatmul.mubr.msk.f32.gmra.mrb[14].mxu0 %vm48_vm0, %v30_v41 }
  0x2a   :  { %211 = vmatprep.mubr.f32.mxu0 %v5101_v4  ;;  %520 = vperm.xlu0 %4999, %v5352_v44  }
  0x2b   :  { %4690 = vmatmul.mubr.msk.f32.gmra.mrb[14].mxu1 %vm48_vm0, %v28_v37 }
  0x2c   :  { %4692 = vmatprep.mubr.msk.f32.mxu1 %vm5105_vm1, %v5101_v4 }
  0x2d   :  { %4988 = vset.pattern.permute.xlu1 %v5106_v36  ;;  %4478 = vmatmul.mubr.msk.f32.gmra.mrb[16].mxu0 %vm48_vm0, %v31_v43 }
  0x2e   :  { %756 = vperm.xlu1 %4988, %v5200_v17   ;;  %1668 = vmatprep.mubr.f32.mxu0 %v5101_v4 }
  0x2f   :  { %4693 = vmatmul.mubr.msk.f32.gmra.mrb[16].mxu1 %vm48_vm0, %v29_v39  ;;  %524 = vperm.xlu0 %4999, %v5359_v45  }
  0x30   :  { %4695 = vmatprep.mubr.msk.f32.mxu1 %vm5105_vm1, %v5101_v4 }
  0x32   :  { %4989 = vset.pattern.permute.xlu1 %v8297_v46 }
  0x33   :  { %884 = vperm.xlu1 %4989, %v5157_v1   ;;  %4696 = vmatmul.mubr.msk.f32.gmra.mrb[18].mxu1 %vm48_vm0, %v30_v41 }
  0x34   :  { %4698 = vmatprep.mubr.msk.f32.mxu1 %vm5105_vm1, %v5101_v4  ;;  %5018 = vset.pattern.permute.xlu0 %v8284_v29 }
  0x35   :  { %621 = vperm.xlu0 %5018, %v5157_v1  }
  0x37   :  { %4990 = vset.pattern.permute.xlu1 %v8288_v0  ;;  %4699 = vmatmul.mubr.msk.f32.gmra.mrb[20].mxu1 %vm48_vm0, %v31_v43  ;;  %v471_v43 = vld [vmem:[#allocation2] sm:$0xfe] }
  0x38   :  { %504 = vperm.xlu1 %4990, %v5268_v33   ;;  %4701 = vmatprep.mubr.msk.f32.mxu1 %vm5105_vm1, %v5101_v4 }
  0x39   :  { %633 = vperm.xlu0 %5018, %v5249_v30  }
  0x3b   :  { %4702 = vmatmul.mubr.msk.f32.gmra.mrb[22].mxu1 %vm48_vm0, %v5215_v21 }
  0x3c   :  { %4991 = vset.pattern.permute.xlu1 %v8284_v29  ;;  %4704 = vmatprep.mubr.msk.f32.mxu1 %vm5105_vm1, %v5101_v4 }
  0x3d   :  { %637 = vperm.xlu1 %4991, %v5305_v38   ;;  %661 = vperm.xlu0 %5018, %v5359_v45  }
  0x3f   :  { %4705 = vmatmul.mubr.msk.f32.gmra.mrb[24].mxu1 %vm48_vm0, %v5236_v27 }
  0x40   :  { %4715 = vmatprep.mubr.msk.f32.mxu1 %vm5105_vm1, %v5101_v4 }
  0x41   :  { %4992 = vset.pattern.permute.xlu1 %v8297_v46  ;;  %5024 = vset.pattern.permute.xlu0 %v8292_v47 }
  0x42   :  { %892 = vperm.xlu1 %4992, %v5200_v17   ;;  %966 = vperm.xlu0 %5024, %v5180_v8  }
  0x46   :  { %4993 = vset.pattern.permute.xlu1 %v8292_v47  ;;  %990 = vperm.xlu0 %5024, %v5284_v35  }
  0x47   :  { %962 = vperm.xlu1 %4993, %v5157_v1  }
  0x4a   :  { %5027 = vset.pattern.permute.xlu0 %v5106_v36 }
  0x4b   :  { %4994 = vset.pattern.permute.xlu1 %v8282_v13  ;;  %752 = vperm.xlu0 %5027, %v5180_v8  }
  0x4c   :  { %426 = vperm.xlu1 %4994, %v5318_v40  }
  0x4f   :  { %760 = vperm.xlu0 %5027, %v5249_v30  }
  0x50   :  { %4995 = vset.pattern.permute.xlu1 %v8284_v29 }
  0x51   :  { %641 = vperm.xlu1 %4995, %v5268_v33  }
  0x53   :  { %768 = vperm.xlu0 %5027, %v5268_v33  }
  0x55   :  { %4996 = vset.pattern.permute.xlu1 %v5106_v36 }
  0x56   :  { %764 = vperm.xlu1 %4996, %v5305_v38  }
  0x5a   :  { %4997 = vset.pattern.permute.xlu1 %v8292_v47 }
  0x5b   :  { %970 = vperm.xlu1 %4997, %v5200_v17  }
  0x5f   :  { %4998 = vset.pattern.permute.xlu1 %v8294_v48 }
  0x60   :  { %1098 = vperm.xlu1 %4998, %v5157_v1  }
  0x64   :  { %5000 = vset.pattern.permute.xlu1 %v8288_v0  ;;  %v5565_v0 = vld [vmem:[#allocation2] sm:$0xfc] }
  0x65   :  { %512 = vperm.xlu1 %5000, %v5284_v35  }
  0x69   :  { %5001 = vset.pattern.permute.xlu1 %v8284_v29 }
  0x6a   :  { %645 = vperm.xlu1 %5001, %v5318_v40  }
  0x6e   :  { %5002 = vset.pattern.permute.xlu1 %v8297_v46 }
  0x6f   :  { %900 = vperm.xlu1 %5002, %v5305_v38  }
  0x73   :  { %5003 = vset.pattern.permute.xlu1 %v8292_v47 }
  0x74   :  { %974 = vperm.xlu1 %5003, %v5249_v30  }
  0x78   :  { %5004 = vset.pattern.permute.xlu1 %v8300_v49 }
  0x79   :  { %1225 = vperm.xlu1 %5004, %v5157_v1  }
  0x7d   :  { %1229 = vperm.xlu1 %5004, %v5180_v8  }
  0x81   :  { %5005 = vset.pattern.permute.xlu1 %v8282_v13  ;;  %v5424_v50 = vpop.permute.xlu1 %484 }
  0x82   :  { %436 = vperm.xlu1 %5005, %v5337_v42   ;;  %8530 = vst [vmem:[#allocation4_spill] sm:$0xff] %v5424_v50 }
  0x86   :  { %5006 = vset.pattern.permute.xlu1 %v8284_v29  ;;  %v5427_v51 = vpop.permute.xlu1 %488 }
  0x87   :  { %8531 = vst [vmem:[#allocation5_spill] sm:$0xff] %v5427_v51  ;;  %649 = vperm.xlu1 %5006, %v5284_v35  }
  0x8a   :  { %v5430_v52 = vpop.permute.xlu1 %492 }
  0x8b   :  { %8532 = vst [vmem:[#allocation6_spill] sm:$0xff] %v5430_v52  ;;  %5007 = vset.pattern.permute.xlu1 %v5106_v36 }
  0x8c   :  { %772 = vperm.xlu1 %5007, %v5318_v40  }
  0x8f   :  { %v5434_v53 = vpop.permute.xlu1 %625 }
  0x90   :  { %8533 = vst [vmem:[#allocation7_spill] sm:$0xff] %v5434_v53  ;;  %5008 = vset.pattern.permute.xlu1 %v8292_v47 }
  0x91   :  { %978 = vperm.xlu1 %5008, %v5305_v38  }
  0x94   :  { %v5438_v54 = vpop.permute.xlu1 %411 }
  0x95   :  { %8534 = vst [vmem:[#allocation8_spill] sm:$0xff] %v5438_v54  ;;  %5009 = vset.pattern.permute.xlu1 %v8294_v48 }
  0x96   :  { %1110 = vperm.xlu1 %5009, %v5249_v30  }
  0x99   :  { %v5442_v55 = vpop.permute.xlu1 %629 }
  0x9a   :  { %8535 = vst [vmem:[#allocation9_spill] sm:$0xff] %v5442_v55  ;;  %5010 = vset.pattern.permute.xlu1 %v8290_v56 }
  0x9b   :  { %1360 = vperm.xlu1 %5010, %v5157_v1  }
  0x9e   :  { %v5446_v57 = vpop.permute.xlu1 %748 }
  0x9f   :  { %8536 = vst [vmem:[#allocation10_spill] sm:$0xff] %v5446_v57  ;;  %1364 = vperm.xlu1 %5010, %v5180_v8  }
  0xa3   :  { %5011 = vset.pattern.permute.xlu1 %v8282_v13  ;;  %v5450_v58 = vpop.permute.xlu1 %416 }
  0xa4   :  { %8537 = vst [vmem:[#allocation11_spill] sm:$0xff] %v5450_v58  ;;  %441 = vperm.xlu1 %5011, %v5352_v44  }
  0xa8   :  { %5012 = vset.pattern.permute.xlu1 %v8284_v29  ;;  %v5454_v59 = vpop.permute.xlu1 %500 }
  0xa9   :  { %8538 = vst [vmem:[#allocation12_spill] sm:$0xff] %v5454_v59  ;;  %653 = vperm.xlu1 %5012, %v5337_v42  }
  0xad   :  { %5013 = vset.pattern.permute.xlu1 %v5106_v36  ;;  %v5458_v60 = vpop.permute.xlu1 %756 }
  0xae   :  { %8539 = vst [vmem:[#allocation13_spill] sm:$0xff] %v5458_v60  ;;  %776 = vperm.xlu1 %5013, %v5284_v35  }
  0xb2   :  { %5014 = vset.pattern.permute.xlu1 %v8292_v47  ;;  %v5462_v61 = vpop.permute.xlu1 %884 }
  0xb3   :  { %8540 = vst [vmem:[#allocation14_spill] sm:$0xff] %v5462_v61  ;;  %982 = vperm.xlu1 %5014, %v5268_v33  }
  0xb7   :  { %5015 = vset.pattern.permute.xlu1 %v8294_v48  ;;  %v5466_v62 = vpop.permute.xlu1 %504 }
  0xb8   :  { %8541 = vst [vmem:[#allocation15_spill] sm:$0xff] %v5466_v62  ;;  %1114 = vperm.xlu1 %5015, %v5305_v38  }
  0xbc   :  { %5016 = vset.pattern.permute.xlu1 %v8290_v56  ;;  %v5470_v63 = vpop.permute.xlu1 %637 }
  0xbd   :  { %8542 = vst [vmem:[#allocation16_spill] sm:$0xff] %v5470_v63  ;;  %1368 = vperm.xlu1 %5016, %v5200_v17  }
  0xc1   :  { %5017 = vset.pattern.permute.xlu1 %v8282_v13  ;;  %v5474_v1 = vpop.permute.xlu1 %892 }
  0xc2   :  { %8543 = vst [vmem:[#allocation17_spill] sm:$0xff] %v5474_v1  ;;  %446 = vperm.xlu1 %5017, %v5359_v45  }
  0xc6   :  { %5019 = vset.pattern.permute.xlu1 %v8284_v29  ;;  %v5478_v2 = vpop.permute.xlu1 %962 }
  0xc7   :  { %8544 = vst [vmem:[#allocation18_spill] sm:$0xff] %v5478_v2  ;;  %657 = vperm.xlu1 %5019, %v5352_v44  }
  0xcb   :  { %5020 = vset.pattern.permute.xlu1 %v5106_v36  ;;  %v5482_v3 = vpop.permute.xlu1 %426 }
  0xcc   :  { %8545 = vst [vmem:[#allocation19_spill] sm:$0xff] %v5482_v3  ;;  %780 = vperm.xlu1 %5020, %v5337_v42   ;;  %v8562_v3 = vmov 7  }
  0xd0   :  { %5021 = vset.pattern.permute.xlu1 %v8292_v47  ;;  %v5486_v4 = vpop.permute.xlu1 %641 }
  0xd1   :  { %8546 = vst [vmem:[#allocation20_spill] sm:$0xff] %v5486_v4  ;;  %986 = vperm.xlu1 %5021, %v5318_v40  }
  0xd5   :  { %5022 = vset.pattern.permute.xlu1 %v8294_v48  ;;  %v5490_v5 = vpop.permute.xlu1 %764 }
  0xd6   :  { %8547 = vst [vmem:[#allocation21_spill] sm:$0xff] %v5490_v5  ;;  %1118 = vperm.xlu1 %5022, %v5268_v33  }
  0xda   :  { %5023 = vset.pattern.permute.xlu1 %v8290_v56  ;;  %v5494_v6 = vpop.permute.xlu1 %970 }
  0xdb   :  { %8548 = vst [vmem:[#allocation22_spill] sm:$0xff] %v5494_v6  ;;  %1372 = vperm.xlu1 %5023, %v5249_v30  }
  0xdf   :  { %5025 = vset.pattern.permute.xlu1 %v5106_v36  ;;  %v5498_v9 = vpop.permute.xlu1 %1098 }
  0xe0   :  { %8549 = vst [vmem:[#allocation23_spill] sm:$0xff] %v5498_v9  ;;  %784 = vperm.xlu1 %5025, %v5352_v44   ;;  %v5501_v11 = vpop.f32.mrb[0].mxu0  ;;  %v5503_v12 = vpop.f32.mrb[0].mxu1 }
  0xe1   :  { %8550 = vst [vmem:[#allocation24_spill] sm:$0xff] %v5501_v11  ;;  %v5505_v14 = vpop.f32.mrb[1].mxu0  ;;  %v795_v15 = vrot.slane %v5501_v11, 7  ;;  %377 = vst [vmem:[#allocation2 + $0xf0] sm:$0xff] %v5503_v12  ;;  %v5509_v16 = vpop.f32.mrb[1].mxu1  ;;  %v8296_v19 = vrot.slane %v5501_v11, 2 }
  0xe2   :  { %8551 = vst [vmem:[#allocation25_spill] sm:$0xff] %v5505_v14  ;;  %351 = vst [vmem:[#allocation2 + $0x20] sm:$0xff] %v5505_v14  ;;  %v8299_v20 = vrot.slane %v5501_v11, 1  ;;  %v8303_v32 = vrot.slane %v5509_v16, 1  ;;  %v8565_v14 = vrot.slane %v5501_v11, 1 }
  0xe3   :  { %378 = vst [vmem:[#allocation2 + $0xf8] sm:$0xff] %v5509_v16  ;;  %v796_v18 = vsel %vm793_vm2, %v794_v10, %v795_v15 }
  0xe4   :  { %5026 = vset.pattern.permute.xlu1 %v8297_v46  ;;  %v5517_v21 = vpop.permute.xlu1 %512  ;;  %v5519_v22 = vpop.f32.mrb[2].mxu0  ;;  %817 = vrot.lane.b32.xlu0 %v796_v18, %s5112_s16 }
  0xe5   :  { %8552 = vst [vmem:[#allocation26_spill] sm:$0xff] %v5517_v21  ;;  %8553 = vst [vmem:[#allocation27_spill] sm:$0xff] %v5519_v22  ;;  %916 = vperm.xlu1 %5026, %v5337_v42   ;;  %v5523_v24 = vpop.f32.mrb[3].mxu0  ;;  %v670_v25 = vrot.slane %v5519_v22, 2  ;;  %v797_v26 = vrot.slane %v5519_v22, 7  ;;  %v543_v27 = vrot.slane %v5519_v22, 1 }
  0xe6   :  { %v225_v28 = vpop.f32.mrb[2].mxu1  ;;  %354 = vst [vmem:[#allocation2 + $0x38] sm:$0xff] %v5523_v24  ;;  %v1271_v7 = vrot.slane %v5523_v24, 7  ;;  %v8309_v10 = vrot.slane %v5523_v24, 1  ;;  %v8561_v4 = vrot.slane %v5523_v24, 6 }
  0xe7   :  { %380 = vst [vmem:[#allocation2 + $0x108] sm:$0xff] %v225_v28  ;;  %v5529_v31 = vpop.f32.mrb[3].mxu1  ;;  %v671_v34 = vsel %vm666_vm3, %v8296_v19, %v670_v25  ;;  %v5538_v36 = vsel %vm539_vm4, %v8299_v20, %v543_v27  ;;  %v5541_v37 = vsel %vm793_vm2, %v795_v15, %v797_v26 }
  0xe8   :  { %8554 = vst [vmem:[#allocation28_spill] sm:$0xff] %v5529_v31  ;;  %381 = vst [vmem:[#allocation2 + $0x110] sm:$0xff] %v5529_v31  ;;  %v8302_v39 = vrot.slane %v5529_v31, 1  ;;  %v5545_v41 = vpop.f32.mrb[4].mxu0  ;;  %692 = vrot.lane.b32.xlu0 %v671_v34, %s5113_s17 }
  0xe9   :  { %8555 = vst [vmem:[#allocation29_spill] sm:$0xff] %v5545_v41  ;;  %5028 = vset.pattern.permute.xlu1 %v8294_v48  ;;  %v5552_v15 = vpop.permute.xlu1 %645  ;;  %v5554_v28 = vpop.f32.mrb[5].mxu0  ;;  %v1222_v13 = vld [vmem:[#allocation2 + $0x20] sm:$0x80]  ;;  %v799_v29 = vrot.slane %v5545_v41, 7  ;;  %v545_v46 = vrot.slane %v5545_v41, 1 }
  0xea   :  { %8556 = vst [vmem:[#allocation30_spill] sm:$0xff] %v5552_v15  ;;  %8557 = vst [vmem:[#allocation31_spill] sm:$0xff] %v5554_v28  ;;  %v5562_v34 = vsel %vm539_vm4, %v8303_v32, %v8302_v39  ;;  %1122 = vperm.xlu1 %5028, %v5318_v40   ;;  %v1270_v23 = vrot.slane %v1222_v13, 7  ;;  %v1020_v56 = vrot.slane %v5554_v28, 1  ;;  %v1147_v47 = vrot.slane %v5554_v28, 6  ;;  %v5569_v48 = vpop.permute.xlu0 %396  ;;  %v296_v49 = vpop.f32.mrb[4].mxu1 }
  0xeb   :  { %8558 = vst [vmem:[#allocation32_spill] sm:$0xff] %v5562_v34  ;;  %8559 = vst [vmem:[#allocation33_spill] sm:$0xff] %v5569_v48  ;;  %v800_v19 = vsel %vm793_vm2, %v797_v26, %v799_v29  ;;  %v672_v20 = vrot.slane %v5545_v41, 2  ;;  %v540_v32 = vrot.slane %v471_v43, 1  ;;  %v4676_v26 = vpop.f32.mrb[5].mxu1  ;;  %v667_v49 = vrot.slane %v5565_v0, 2 }
  0xec   :  { %v5574_v39 = vpop.f32.mrb[6].mxu0  ;;  %v1272_v13 = vsel %vm793_vm2, %v1270_v23, %v1271_v7  ;;  %v1021_v18 = vsel %vm539_vm4, %v8309_v10, %v1020_v56  ;;  %v5583_v6 = vsel %vm1143_vm5, %v8561_v4, %v1147_v47  ;;  %v5589_v43 = vsel %vm539_vm4, %v543_v27, %v545_v46  ;;  %v949_v1 = vld [vmem:[#allocation2 + $0x20] sm:$0xfe] }
  0xed   :  { %8560 = vst [vmem:[#allocation34_spill] sm:$0xff] %v5574_v39  ;;  %v185_v15 = vpop.f32.mrb[7].mxu0  ;;  %1293 = vrot.lane.b32.xlu0 %v1272_v13, %s5112_s16  ;;  %v801_v62 = vrot.slane %v5574_v39, 7  ;;  %v547_v23 = vrot.slane %v5574_v39, 1  ;;  %v5596_v26 = vsel %vm666_vm3, %v670_v25, %v672_v20  ;;  %v1273_v13 = vrot.slane %v5554_v28, 7 }
  0xee   :  { %5029 = vset.pattern.permute.xlu1 %v8562_v3  ;;  %v5593_v10 = vpop.permute.xlu1 %900  ;;  %360 = vst [vmem:[#allocation2 + $0x68] sm:$0xff] %v185_v15  ;;  %v1022_v4 = vrot.slane %v185_v15, 1  ;;  %v301_v54 = vpop.f32.mrb[6].mxu1  ;;  %v674_v0 = vrot.slane %v5574_v39, 2  ;;  %v1149_v2 = vrot.slane %v185_v15, 6  ;;  %v1275_v61 = vrot.slane %v185_v15, 7 }
  0xef   :  { %8563 = vst [vmem:[#allocation35_spill] sm:$0xff] %v5593_v10  ;;  %1245 = vperm.xlu1 %5029, %v5268_v33   ;;  %v5602_v27 = vsel %vm793_vm2, %v799_v29, %v801_v62  ;;  %355 = vst.msk [vmem:[#allocation2 + $0x40] sm:$0xff] %vm48_vm0, %v301_v54  ;;  %v4679_v41 = vpop.f32.mrb[7].mxu1  ;;  %v5606_v9 = vsel %vm539_vm4, %v545_v46, %v547_v23  ;;  %v542_v53 = vsel %vm539_vm4, %v540_v32, %v8565_v14  ;;  %v5631_v14 = vpop.permute.xlu0 %401  ;;  %v1095_v22 = vld [vmem:[#allocation2 + $0x20] sm:$0xc0] }
  0xf0   :  { %v5608_v25 = vpop.f32.mrb[8].mxu0  ;;  %v5614_v57 = vsel %vm539_vm4, %v1020_v56, %v1022_v4  ;;  %v5617_v29 = vsel %vm793_vm2, %v1271_v7, %v1273_v13  ;;  %v5620_v54 = vsel %vm666_vm3, %v672_v20, %v674_v0  ;;  %v5628_v51 = vsel %vm1143_vm5, %v1147_v47, %v1149_v2  ;;  %8567 = vst [vmem:[#allocation38_spill] sm:$0xff] %v5631_v14 }
  0xf1   :  { %8564 = vst [vmem:[#allocation36_spill] sm:$0xff] %v5608_v25  ;;  %v5622_v41 = vpop.f32.mrb[9].mxu0  ;;  %821 = vrot.lane.b32.xlu0 %v800_v19, %s5112_s16  ;;  %v549_v46 = vrot.slane %v5608_v25, 1  ;;  %v676_v15 = vrot.slane %v5608_v25, 2  ;;  %v803_v56 = vrot.slane %v5608_v25, 7  ;;  %v5636_v21 = vsel %vm793_vm2, %v1273_v13, %v1275_v61 }
  0xf2   :  { %8566 = vst [vmem:[#allocation37_spill] sm:$0xff] %v5622_v41  ;;  %v1024_v32 = vrot.slane %v5622_v41, 1  ;;  %v306_v7 = vpop.f32.mrb[8].mxu1  ;;  %v1151_v20 = vrot.slane %v5622_v41, 6  ;;  %v1277_v19 = vrot.slane %v5622_v41, 7  ;;  %v1144_v38 = vrot.slane %v1095_v22, 6 }
  0xf3   :  { %v5639_v48 = vpop.permute.xlu1 %974  ;;  %563 = vrot.lane.b32.xlu1 %v542_v53, %s5114_s18  ;;  %v5643_v47 = vsel %vm539_vm4, %v547_v23, %v549_v46  ;;  %358 = vst.msk [vmem:[#allocation2 + $0x58] sm:$0xff] %vm48_vm0, %v306_v7  ;;  %v5647_v25 = vsel %vm666_vm3, %v674_v0, %v676_v15  ;;  %v5650_v14 = vsel %vm793_vm2, %v801_v62, %v803_v56  ;;  %v4682_v13 = vpop.f32.mrb[9].mxu1  ;;  %v8570_v53 = vmov 4  }
  0xf4   :  { %8568 = vst [vmem:[#allocation39_spill] sm:$0xff] %v5639_v48  ;;  %v5652_v50 = vpop.f32.mrb[10].mxu0  ;;  %v5655_v34 = vsel %vm539_vm4, %v1022_v4, %v1024_v32  ;;  %v5658_v48 = vsel %vm1143_vm5, %v1149_v2, %v1151_v20  ;;  %5031 = vset.pattern.permute.xlu1 %v8570_v53  ;;  %v5662_v23 = vsel %vm793_vm2, %v1275_v61, %v1277_v19  ;;  %v8572_v4 = vrot.slane %v5501_v11, 2  ;;  %v5671_v61 = vpop.permute.xlu0 %406 }
  0xf5   :  { %8569 = vst [vmem:[#allocation40_spill] sm:$0xff] %v5652_v50  ;;  %8571 = vst [vmem:[#allocation41_spill] sm:$0xff] %v5662_v23  ;;  %v197_v7 = vpop.f32.mrb[11].mxu0  ;;  %1042 = vrot.lane.b32.xlu0 %v1021_v18, %s5114_s18  ;;  %v551_v62 = vrot.slane %v5652_v50, 1  ;;  %v678_v0 = vrot.slane %v5652_v50, 2  ;;  %v805_v13 = vrot.slane %v5652_v50, 7 }
  0xf6   :  { %v669_v10 = vsel %vm666_vm3, %v667_v49, %v8572_v4  ;;  %366 = vst [vmem:[#allocation2 + $0x98] sm:$0xff] %v197_v7  ;;  %v311_v2 = vpop.f32.mrb[10].mxu1  ;;  %v1026_v41 = vrot.slane %v197_v7, 1  ;;  %v1153_v5 = vrot.slane %v197_v7, 6  ;;  %v1279_v63 = vrot.slane %v197_v7, 7  ;;  %8573 = vst [vmem:[#allocation42_spill] sm:$0xff] %v5671_v61 }
  0xf7   :  { %690 = vrot.lane.b32.xlu1 %v669_v10, %s5113_s17  ;;  %v5675_v18 = vsel %vm539_vm4, %v549_v46, %v551_v62  ;;  %v5678_v58 = vsel %vm666_vm3, %v676_v15, %v678_v0  ;;  %v5681_v50 = vsel %vm793_vm2, %v803_v56, %v805_v13  ;;  %361 = vst.msk [vmem:[#allocation2 + $0x70] sm:$0xff] %vm48_vm0, %v311_v2  ;;  %v4685_v4 = vpop.f32.mrb[11].mxu1  ;;  %v8582_v61 = vrot.slane %v5529_v31, 7 }
  0xf8   :  { %v5685_v11 = vpop.permute.xlu1 %1225  ;;  %v5687_v7 = vpop.f32.mrb[12].mxu0  ;;  %v5690_v10 = vsel %vm539_vm4, %v1024_v32, %v1026_v41  ;;  %v5693_v46 = vsel %vm1143_vm5, %v1151_v20, %v1153_v5  ;;  %v5697_v56 = vsel %vm793_vm2, %v1277_v19, %v1279_v63  ;;  %v1287_v19 = vrot.slane %v5509_v16, 7 }
  0xf9   :  { %8574 = vst [vmem:[#allocation43_spill] sm:$0xff] %v5685_v11  ;;  %8575 = vst [vmem:[#allocation44_spill] sm:$0xff] %v5687_v7  ;;  %v203_v39 = vpop.f32.mrb[13].mxu0  ;;  %1169 = vrot.lane.b32.xlu0 %v5583_v6, %s5113_s17  ;;  %v680_v2 = vrot.slane %v5687_v7, 2  ;;  %v807_v4 = vrot.slane %v5687_v7, 7  ;;  %v553_v49 = vrot.slane %v5687_v7, 1  ;;  %v5708_v6 = vpop.permute.xlu0 %421 }
  0xfa   :  { %369 = vst [vmem:[#allocation2 + $0xb0] sm:$0xff] %v203_v39  ;;  %v316_v20 = vpop.f32.mrb[12].mxu1  ;;  %v1028_v11 = vrot.slane %v203_v39, 1  ;;  %v1155_v59 = vrot.slane %v203_v39, 6  ;;  %v1281_v15 = vrot.slane %v203_v39, 7  ;;  %8576 = vst [vmem:[#allocation45_spill] sm:$0xff] %v5708_v6 }
  0xfb   :  { %565 = vrot.lane.b32.xlu1 %v5538_v36, %s5114_s18  ;;  %v5711_v28 = vsel %vm666_vm3, %v678_v0, %v680_v2  ;;  %v5714_v7 = vsel %vm793_vm2, %v805_v13, %v807_v4  ;;  %v5717_v32 = vsel %vm539_vm4, %v551_v62, %v553_v49  ;;  %364 = vst.msk [vmem:[#allocation2 + $0x88] sm:$0xff] %vm48_vm0, %v316_v20  ;;  %v1161_v39 = vrot.slane %v5509_v16, 6  ;;  %v4688_v60 = vpop.f32.mrb[13].mxu1 }
  0xfc   :  { %v5721_v55 = vpop.permute.xlu1 %1229  ;;  %v5723_v36 = vpop.f32.mrb[14].mxu0  ;;  %v5726_v6 = vsel %vm539_vm4, %v1026_v41, %v1028_v11  ;;  %v5729_v0 = vsel %vm1143_vm5, %v1153_v5, %v1155_v59  ;;  %v5732_v13 = vsel %vm793_vm2, %v1279_v63, %v1281_v15  ;;  %v5745_v5 = vsel %vm793_vm2, %v1287_v19, %v8582_v61 }
  0xfd   :  { %8577 = vst [vmem:[#allocation46_spill] sm:$0xff] %v5721_v55  ;;  %8578 = vst [vmem:[#allocation47_spill] sm:$0xff] %v5723_v36  ;;  %823 = vrot.lane.b32.xlu0 %v5602_v27, %s5112_s16  ;;  %v5737_v20 = vpop.f32.mrb[15].mxu0  ;;  %v555_v60 = vrot.slane %v5723_v36, 1  ;;  %v682_v55 = vrot.slane %v5723_v36, 2  ;;  %v809_v41 = vrot.slane %v5723_v36, 7 }
  0xfe   :  { %8579 = vst [vmem:[#allocation48_spill] sm:$0xff] %v5729_v0  ;;  %8580 = vst [vmem:[#allocation49_spill] sm:$0xff] %v5732_v13  ;;  %v1017_v63 = vrot.slane %v949_v1, 1  ;;  %v1030_v62 = vrot.slane %v5737_v20, 1  ;;  %v1157_v52 = vrot.slane %v5737_v20, 6  ;;  %v1283_v27 = vrot.slane %v5737_v20, 7 }
  0xff   :  { %8581 = vst [vmem:[#allocation50_spill] sm:$0xff] %v5737_v20  ;;  %8583 = vst [vmem:[#allocation51_spill] sm:$0xff] %v5745_v5  ;;  %819 = vrot.lane.b32.xlu1 %v5541_v37, %s5112_s16  ;;  %v5753_v13 = vsel %vm539_vm4, %v553_v49, %v555_v60  ;;  %v5756_v36 = vsel %vm666_vm3, %v680_v2, %v682_v55  ;;  %v5759_v61 = vsel %vm793_vm2, %v807_v4, %v809_v41 }
 0x100   :  { %v5762_v5 = vpop.f32.mrb[16].mxu0  ;;  %v5765_v0 = vsel %vm539_vm4, %v1028_v11, %v1030_v62  ;;  %v5768_v20 = vsel %vm1143_vm5, %v1155_v59, %v1157_v52  ;;  %v5771_v37 = vsel %vm793_vm2, %v1281_v15, %v1283_v27  ;;  %v8587_v49 = vrot.slane %v5529_v31, 6 }
 0x101   :  { %8584 = vst [vmem:[#allocation52_spill] sm:$0xff] %v5762_v5  ;;  %8585 = vst [vmem:[#allocation53_spill] sm:$0xff] %v5768_v20  ;;  %v5778_v4 = vpop.permute.xlu1 %436  ;;  %1044 = vrot.lane.b32.xlu0 %v5614_v57, %s5114_s18  ;;  %v5782_v1 = vpop.f32.mrb[17].mxu0  ;;  %v557_v11 = vrot.slane %v5762_v5, 1  ;;  %v684_v59 = vrot.slane %v5762_v5, 2  ;;  %v811_v15 = vrot.slane %v5762_v5, 7 }
 0x102   :  { %8586 = vst [vmem:[#allocation54_spill] sm:$0xff] %v5771_v37  ;;  %v5776_v2 = vsel %vm1143_vm5, %v1161_v39, %v8587_v49  ;;  %8589 = vst [vmem:[#allocation56_spill] sm:$0xff] %v5778_v4  ;;  %v8591_v20 = vrot.slane %v5523_v24, 1  ;;  %v5790_v49 = vpop.permute.xlu0 %431  ;;  %v1032_v4 = vrot.slane %v5782_v1, 1  ;;  %v1285_v22 = vrot.slane %v5782_v1, 7 }
 0x103   :  { %8588 = vst [vmem:[#allocation55_spill] sm:$0xff] %v5776_v2  ;;  %8590 = vst [vmem:[#allocation57_spill] sm:$0xff] %v5782_v1  ;;  %v1159_v57 = vrot.slane %v5782_v1, 6  ;;  %v558_v2 = vsel %vm539_vm4, %v555_v60, %v557_v11  ;;  %v8593_v37 = vrot.slane %v5503_v12, 1  ;;  %v5801_v23 = vsel %vm666_vm3, %v682_v55, %v684_v59 }
 0x104   :  { %v1019_v31 = vsel %vm539_vm4, %v1017_v63, %v8591_v20  ;;  %8592 = vst [vmem:[#allocation58_spill] sm:$0xff] %v5790_v49  ;;  %v8594_v20 = vrot.slane %v5503_v12, 2  ;;  %v5809_v49 = vsel %vm793_vm2, %v809_v41, %v811_v15  ;;  %v5812_v1 = vsel %vm539_vm4, %v1030_v62, %v1032_v4 }
 0x105   :  { %1040 = vrot.lane.b32.xlu1 %v1019_v31, %s5114_s18  ;;  %v560_v5 = vsel %vm539_vm4, %v557_v11, %v8593_v37  ;;  %v8595_v31 = vrot.slane %v5503_v12, 7  ;;  %v8596_v37 = vrot.slane %v5509_v16, 1  ;;  %571 = vrot.lane.b32.xlu0 %v5643_v47, %s5114_s18  ;;  %v5827_v11 = vsel %vm793_vm2, %v1283_v27, %v1285_v22 }
 0x106   :  { %v5806_v63 = vsel %vm666_vm3, %v684_v59, %v8594_v20  ;;  %v5830_v41 = vsel %vm1143_vm5, %v1157_v52, %v1159_v57  ;;  %v5833_v62 = vsel %vm793_vm2, %v1285_v22, %v1287_v19  ;;  %v5836_v59 = vsel %vm1143_vm5, %v1159_v57, %v1161_v39  ;;  %v5844_v47 = vpop.permute.xlu0 %496 }
 0x107   :  { %v5817_v60 = vsel %vm793_vm2, %v811_v15, %v8595_v31  ;;  %v5822_v55 = vsel %vm539_vm4, %v1032_v4, %v8596_v37  ;;  %v5838_v15 = vpop.permute.xlu1 %649  ;;  %v8598_v16 = vrot.slane %v5523_v24, 6  ;;  %8599 = vst [vmem:[#allocation60_spill] sm:$0xff] %v5844_v47  ;;  %v8626_v27 = vmov 5  }
 0x108   :  { %8597 = vst [vmem:[#allocation59_spill] sm:$0xff] %v5838_v15  ;;  %v8630_v31 = vmov 8  }
 0x109   :  { %v1146_v4 = vsel %vm1143_vm5, %v1144_v38, %v8598_v16  ;;  %1046 = vrot.lane.b32.xlu0 %v5655_v34, %s5114_s18 }
 0x10a   :  { %1167 = vrot.lane.b32.xlu1 %v1146_v4, %s5113_s17  ;;  %v5854_v19 = vpop.permute.xlu0 %508 }
 0x10b   :  { %v5848_v52 = vpop.permute.xlu1 %772  ;;  %8601 = vst [vmem:[#allocation62_spill] sm:$0xff] %v5854_v19 }
 0x10c   :  { %8600 = vst [vmem:[#allocation61_spill] sm:$0xff] %v5848_v52 }
 0x10d   :  { %573 = vrot.lane.b32.xlu0 %v5675_v18, %s5114_s18 }
 0x10e   :  { %567 = vrot.lane.b32.xlu1 %v5589_v43, %s5114_s18  ;;  %v5864_v24 = vpop.permute.xlu0 %516 }
 0x10f   :  { %8603 = vst [vmem:[#allocation64_spill] sm:$0xff] %v5864_v24 }
 0x110   :  { %v5858_v38 = vpop.permute.xlu1 %978 }
 0x111   :  { %8602 = vst [vmem:[#allocation63_spill] sm:$0xff] %v5858_v38  ;;  %700 = vrot.lane.b32.xlu0 %v5678_v58, %s5113_s17 }
 0x112   :  { %694 = vrot.lane.b32.xlu1 %v5596_v26, %s5113_s17  ;;  %v5876_v26 = vpop.permute.xlu0 %520 }
 0x113   :  { %8606 = vst [vmem:[#allocation67_spill] sm:$0xff] %v5876_v26 }
 0x115   :  { %v5866_v34 = vpop.permute.xlu1 %1110  ;;  %702 = vrot.lane.b32.xlu0 %v5711_v28, %s5113_s17 }
 0x116   :  { %1295 = vrot.lane.b32.xlu1 %v5617_v29, %s5112_s16  ;;  %8604 = vst [vmem:[#allocation65_spill] sm:$0xff] %v5866_v34  ;;  %v5886_v28 = vpop.permute.xlu0 %524 }
 0x117   :  { %8608 = vst [vmem:[#allocation69_spill] sm:$0xff] %v5886_v28 }
 0x119   :  { %829 = vrot.lane.b32.xlu0 %v5714_v7, %s5112_s16 }
 0x11a   :  { %569 = vrot.lane.b32.xlu1 %v5606_v9, %s5114_s18  ;;  %v5874_v43 = vpop.permute.xlu1 %1360  ;;  %v5895_v29 = vpop.permute.xlu0 %621 }
 0x11b   :  { %8605 = vst [vmem:[#allocation66_spill] sm:$0xff] %v5874_v43  ;;  %8610 = vst [vmem:[#allocation71_spill] sm:$0xff] %v5895_v29 }
 0x11d   :  { %1173 = vrot.lane.b32.xlu0 %v5658_v48, %s5113_s17 }
 0x11e   :  { %696 = vrot.lane.b32.xlu1 %v5620_v54, %s5113_s17  ;;  %v5882_v58 = vpop.permute.xlu1 %1364 }
 0x11f   :  { %8607 = vst [vmem:[#allocation68_spill] sm:$0xff] %v5882_v58 }
 0x121   :  { %788 = vperm.xlu0 %5027, %v5359_v45  }
 0x122   :  { %1171 = vrot.lane.b32.xlu1 %v5628_v51, %s5113_s17  ;;  %v5904_v51 = vpop.permute.xlu0 %633 }
 0x123   :  { %v5889_v9 = vpop.permute.xlu1 %441  ;;  %8612 = vst [vmem:[#allocation73_spill] sm:$0xff] %v5904_v51 }
 0x124   :  { %8609 = vst [vmem:[#allocation70_spill] sm:$0xff] %v5889_v9 }
 0x125   :  { %5030 = vset.pattern.permute.xlu0 %v8570_v53 }
 0x126   :  { %698 = vrot.lane.b32.xlu1 %v5647_v25, %s5113_s17  ;;  %888 = vperm.xlu0 %5030, %v5180_v8   ;;  %v5914_v25 = vpop.permute.xlu0 %661 }
 0x127   :  { %8615 = vst [vmem:[#allocation76_spill] sm:$0xff] %v5914_v25  ;;  %v619_v25 = vld [vmem:[#allocation2 + $0x108] sm:$0x3] }
 0x128   :  { %v5899_v48 = vpop.permute.xlu1 %653 }
 0x129   :  { %8611 = vst [vmem:[#allocation72_spill] sm:$0xff] %v5899_v48 }
 0x12a   :  { %825 = vrot.lane.b32.xlu1 %v5650_v14, %s5112_s16  ;;  %896 = vperm.xlu0 %5030, %v5249_v30   ;;  %v5922_v14 = vpop.permute.xlu0 %966 }
 0x12b   :  { %8617 = vst [vmem:[#allocation78_spill] sm:$0xff] %v5922_v14 }
 0x12d   :  { %v5906_v54 = vpop.permute.xlu1 %776 }
 0x12e   :  { %827 = vrot.lane.b32.xlu1 %v5681_v50, %s5112_s16  ;;  %8613 = vst [vmem:[#allocation74_spill] sm:$0xff] %v5906_v54  ;;  %904 = vperm.xlu0 %5030, %v5268_v33   ;;  %v5931_v18 = vpop.permute.xlu0 %990 }
 0x12f   :  { %8619 = vst [vmem:[#allocation80_spill] sm:$0xff] %v5931_v18 }
 0x132   :  { %575 = vrot.lane.b32.xlu1 %v5717_v32, %s5114_s18  ;;  %v5911_v8 = vpop.permute.xlu1 %982  ;;  %908 = vperm.xlu0 %5030, %v5318_v40   ;;  %v5941_v32 = vpop.permute.xlu0 %752 }
 0x133   :  { %8614 = vst [vmem:[#allocation75_spill] sm:$0xff] %v5911_v8  ;;  %8621 = vst [vmem:[#allocation82_spill] sm:$0xff] %v5941_v32 }
 0x136   :  { %577 = vrot.lane.b32.xlu1 %v5753_v13, %s5114_s18  ;;  %912 = vperm.xlu0 %5030, %v5284_v35   ;;  %v8623_v13 = vmov 6  }
 0x137   :  { %v5919_v50 = vpop.permute.xlu1 %1114 }
 0x138   :  { %8616 = vst [vmem:[#allocation77_spill] sm:$0xff] %v5919_v50 }
 0x13a   :  { %579 = vrot.lane.b32.xlu1 %v558_v2, %s5114_s18  ;;  %581 = vrot.lane.b32.xlu0 %v560_v5, %s5114_s18  ;;  %v5949_v5 = vpop.permute.xlu0 %760 }
 0x13b   :  { %8624 = vst [vmem:[#allocation84_spill] sm:$0xff] %v5949_v5 }
 0x13c   :  { %v5927_v53 = vpop.permute.xlu1 %1368 }
 0x13d   :  { %8618 = vst [vmem:[#allocation79_spill] sm:$0xff] %v5927_v53  ;;  %v960_v53 = vld [vmem:[#allocation2 + $0x128] sm:$0x1] }
 0x13e   :  { %704 = vrot.lane.b32.xlu1 %v5756_v36, %s5113_s17  ;;  %831 = vrot.lane.b32.xlu0 %v5759_v61, %s5112_s16  ;;  %v321_v36 = vpop.f32.mrb[14].mxu1  ;;  %v5963_v57 = vpop.permute.xlu0 %768 }
 0x13f   :  { %367 = vst.msk [vmem:[#allocation2 + $0xa0] sm:$0xff] %vm48_vm0, %v321_v36  ;;  %8628 = vst [vmem:[#allocation87_spill] sm:$0xff] %v5963_v57 }
 0x141   :  { %v5935_v7 = vpop.permute.xlu1 %446 }
 0x142   :  { %1048 = vrot.lane.b32.xlu1 %v5690_v10, %s5114_s18  ;;  %8620 = vst [vmem:[#allocation81_spill] sm:$0xff] %v5935_v7  ;;  %1175 = vrot.lane.b32.xlu0 %v5693_v46, %s5113_s17  ;;  %v4691_v10 = vpop.f32.mrb[15].mxu1  ;;  %v8638_v7 = vrot.slane %v5503_v12, 1 }
 0x143   :  { %v326_v61 = vpop.f32.mrb[16].mxu1 }
 0x144   :  { %370 = vst.msk [vmem:[#allocation2 + $0xb8] sm:$0xff] %vm48_vm0, %v326_v61  ;;  %v4694_v2 = vpop.f32.mrb[17].mxu1 }
 0x145   :  { %v331_v36 = vpop.f32.mrb[18].mxu1  ;;  %v482_v2 = vld [vmem:[#allocation2 + $0x108] sm:$0x1] }
 0x146   :  { %1297 = vrot.lane.b32.xlu1 %v5636_v21, %s5112_s16  ;;  %v5943_v39 = vpop.permute.xlu1 %657  ;;  %924 = vperm.xlu0 %5030, %v5359_v45   ;;  %v5090_v21 = vld [vmem:[%s8275_s1 + $0x8] sm:$0xff]  ;;  %373 = vst.msk [vmem:[#allocation2 + $0xd0] sm:$0xff] %vm48_vm0, %v331_v36  ;;  %v561_v36 = vrot.slane %v482_v2, 1 }
 0x147   :  { %8622 = vst [vmem:[#allocation83_spill] sm:$0xff] %v5943_v39  ;;  %v688_v39 = vrot.slane %v619_v25, 2 }
 0x148   :  { %v562_v28 = vsel %vm539_vm4, %v8638_v7, %v561_v36 }
 0x14a   :  { %920 = vperm.xlu1 %5031, %v5352_v44   ;;  %5035 = vset.pattern.permute.xlu0 %v8623_v13 }
 0x14b   :  { %v5951_v46 = vpop.permute.xlu1 %780  ;;  %1102 = vperm.xlu0 %5035, %v5090_v21  }
 0x14c   :  { %8625 = vst [vmem:[#allocation85_spill] sm:$0xff] %v5951_v46 }
 0x14e   :  { %5032 = vset.pattern.permute.xlu1 %v8626_v27 }
 0x14f   :  { %994 = vperm.xlu1 %5032, %v5337_v42   ;;  %1106 = vperm.xlu0 %5035, %v5200_v17  }
 0x150   :  { %v5960_v22 = vpop.permute.xlu1 %986 }
 0x151   :  { %8627 = vst [vmem:[#allocation86_spill] sm:$0xff] %v5960_v22 }
 0x153   :  { %5033 = vset.pattern.permute.xlu1 %v8562_v3  ;;  %1126 = vperm.xlu0 %5035, %v5284_v35  }
 0x154   :  { %1249 = vperm.xlu1 %5033, %v5318_v40  }
 0x155   :  { %v5967_v20 = vpop.permute.xlu1 %1118 }
 0x156   :  { %8629 = vst [vmem:[#allocation88_spill] sm:$0xff] %v5967_v20  ;;  %v5971_v37 = vpop.permute.xlu0 %817 }
 0x157   :  { %708 = vrot.lane.b32.xlu0 %v5806_v63, %s5113_s17  ;;  %v8633_v63 = vld [vmem:[#allocation41_spill] sm:$0xff] }
 0x158   :  { %5034 = vset.pattern.permute.xlu1 %v8630_v31 }
 0x159   :  { %1380 = vperm.xlu1 %5034, %v5268_v33  }
 0x15a   :  { %v5975_v17 = vpop.permute.xlu1 %1372  ;;  %v5979_v16 = vpop.permute.xlu0 %692 }
 0x15b   :  { %8631 = vst [vmem:[#allocation89_spill] sm:$0xff] %v5975_v17  ;;  %1052 = vrot.lane.b32.xlu0 %v5765_v0, %s5114_s18 }
 0x15d   :  { %706 = vrot.lane.b32.xlu1 %v5801_v23, %s5113_s17 }
 0x15e   :  { %5036 = vset.pattern.permute.xlu1 %v8626_v27 }
 0x15f   :  { %v5986_v33 = vpop.permute.xlu1 %784  ;;  %v5988_v4 = vpop.permute.xlu0 %1293  ;;  %1301 = vrot.lane.b32.xlu0 %v5697_v56, %s5112_s16  ;;  %v5091_v56 = vld [vmem:[%s8275_s1 + $0x10] sm:$0xff] }
 0x160   :  { %8632 = vst [vmem:[#allocation90_spill] sm:$0xff] %v5986_v33 }
 0x161   :  { %1050 = vrot.lane.b32.xlu1 %v5726_v6, %s5114_s18  ;;  %v4697_v6 = vpop.f32.mrb[19].mxu1 }
 0x163   :  { %v5994_v23 = vpop.permute.xlu0 %821  ;;  %1134 = vperm.xlu0 %5035, %v5352_v44  }
 0x164   :  { %v5997_v0 = vpop.permute.xlu1 %916 }
 0x165   :  { %1299 = vrot.lane.b32.xlu1 %v8633_v63, %s5112_s16  ;;  %8634 = vst [vmem:[#allocation41_spill] sm:$0xff] %v5997_v0 }
 0x167   :  { %v6001_v10 = vpop.permute.xlu0 %1042  ;;  %5040 = vset.pattern.permute.xlu0 %v8562_v3 }
 0x168   :  { %1233 = vperm.xlu0 %5040, %v5091_v56   ;;  %v8637_v56 = vld [vmem:[#allocation3_spill] sm:$0xff] }
 0x169   :  { %998 = vperm.xlu1 %5036, %v5352_v44   ;;  %v6007_v21 = vpop.permute.xlu1 %1122 }
 0x16a   :  { %8635 = vst [vmem:[#allocation91_spill] sm:$0xff] %v6007_v21  ;;  %v8645_v21 = vld [vmem:[#allocation9_spill] sm:$0xff] }
 0x16b   :  { %v6011_v61 = vpop.permute.xlu0 %1169 }
 0x16c   :  { %1237 = vperm.xlu0 %5040, %v5249_v30  }
 0x16d   :  { %5037 = vset.pattern.permute.xlu1 %v8623_v13 }
 0x16e   :  { %1130 = vperm.xlu1 %5037, %v5337_v42   ;;  %v6014_v63 = vpop.permute.xlu1 %1245 }
 0x16f   :  { %8636 = vst [vmem:[#allocation92_spill] sm:$0xff] %v6014_v63  ;;  %v6017_v6 = vpop.permute.xlu0 %823  ;;  %v8643_v63 = vld [vmem:[#allocation27_spill] sm:$0xff] }
 0x170   :  { %1241 = vperm.xlu0 %5040, %v8637_v56  }
 0x172   :  { %5038 = vset.pattern.permute.xlu1 %v8630_v31  ;;  %v6021_v33 = vpop.permute.xlu1 %563 }
 0x173   :  { %1384 = vperm.xlu1 %5038, %v5318_v40   ;;  %v6026_v30 = vpop.permute.xlu0 %1044  ;;  %v8639_v40 = vrot.slane %v5503_v12, 2 }
 0x174   :  { %1253 = vperm.xlu0 %5040, %v5284_v35  }
 0x175   :  { %v689_v9 = vsel %vm666_vm3, %v8639_v40, %v688_v39  ;;  %v336_v39 = vpop.f32.mrb[20].mxu1 }
 0x176   :  { %v6031_v2 = vpop.permute.xlu1 %690  ;;  %376 = vst.msk [vmem:[#allocation2 + $0xe8] sm:$0xff] %vm48_vm0, %v336_v39  ;;  %v5092_v39 = vld [vmem:[%s8275_s1 + $0x38] sm:$0xff] }
 0x177   :  { %583 = vrot.lane.b32.xlu1 %v562_v28, %s5114_s18  ;;  %v6038_v26 = vpop.permute.xlu0 %571  ;;  %v8640_v28 = vld [vmem:[#allocation48_spill] sm:$0xff] }
 0x178   :  { %5039 = vset.pattern.permute.xlu1 %v8626_v27  ;;  %710 = vrot.lane.b32.xlu0 %v689_v9, %s5113_s17  ;;  %v4700_v9 = vpop.f32.mrb[21].mxu1 }
 0x17a   :  { %v6041_v25 = vpop.permute.xlu1 %565 }
 0x17b   :  { %833 = vrot.lane.b32.xlu1 %v5809_v49, %s5112_s16  ;;  %v6049_v7 = vpop.permute.xlu0 %1046  ;;  %v8641_v49 = vld [vmem:[#allocation49_spill] sm:$0xff] }
 0x17c   :  { %1054 = vrot.lane.b32.xlu0 %v5812_v1, %s5114_s18 }
 0x17e   :  { %v6047_v35 = vpop.permute.xlu1 %819 }
 0x17f   :  { %1177 = vrot.lane.b32.xlu1 %v8640_v28, %s5113_s17  ;;  %v6058_v36 = vpop.permute.xlu0 %573 }
 0x180   :  { %1303 = vrot.lane.b32.xlu0 %v8641_v49, %s5112_s16  ;;  %v8642_v49 = vld [vmem:[#allocation6_spill] sm:$0xff] }
 0x182   :  { %v6055_v27 = vpop.permute.xlu1 %1040 }
 0x183   :  { %1002 = vperm.xlu1 %5039, %v5359_v45   ;;  %v6067_v28 = vpop.permute.xlu0 %700 }
 0x184   :  { %1261 = vperm.xlu0 %5040, %v5352_v44  }
 0x186   :  { %v6062_v1 = vpop.permute.xlu1 %1167 }
 0x187   :  { %5041 = vset.pattern.permute.xlu1 %v8562_v3  ;;  %v6081_v8 = vpop.permute.xlu0 %702 }
 0x188   :  { %1257 = vperm.xlu1 %5041, %v5337_v42   ;;  %5044 = vset.pattern.permute.xlu0 %v8630_v31  ;;  %v8644_v42 = vld [vmem:[#allocation42_spill] sm:$0xff] }
 0x189   :  { %1376 = vperm.xlu0 %5044, %v8637_v56   ;;  %v451_v20 = vmul.f32 %v8644_v42, %v8643_v63  ;;  %v8647_v63 = vld [vmem:[#allocation54_spill] sm:$0xff] }
 0x18a   :  { %v568_v40 = vpop.permute.xlu1 %567 }
 0x18b   :  { %v598_v9 = vmul.f32 %v568_v40, %v8642_v49 }
 0x18c   :  { %5042 = vset.pattern.permute.xlu1 %v8630_v31 }
 0x18d   :  { %1388 = vperm.xlu1 %5042, %v5092_v39   ;;  %1056 = vrot.lane.b32.xlu0 %v5822_v55, %s5114_s18  ;;  %v609_v56 = vadd.f32 %v598_v9, %v451_v20  ;;  %v8646_v39 = vld [vmem:[#allocation13_spill] sm:$0xff]  ;;  %v8649_v20 = vld [vmem:[#allocation31_spill] sm:$0xff] }
 0x18e   :  { %v695_v17 = vpop.permute.xlu1 %694  ;;  %v852_v40 = vmul.f32 %v5994_v23, %v8646_v39  ;;  %v8648_v55 = vld [vmem:[#allocation53_spill] sm:$0xff]  ;;  %v6097_v23 = vpop.permute.xlu0 %829 }
 0x18f   :  { %v725_v18 = vmul.f32 %v695_v17, %v8645_v21  ;;  %v8650_v9 = vld [vmem:[#allocation17_spill] sm:$0xff]  ;;  %v341_v21 = vpop.f32.mrb[22].mxu1  ;;  %8651 = vst [vmem:[#allocation3_spill] sm:$0xff] %v6097_v23 }
 0x190   :  { %v929_v17 = vmul.f32 %v8650_v9, %v8649_v20  ;;  %379 = vst.msk [vmem:[#allocation2 + $0x100] sm:$0xff] %vm48_vm0, %v341_v21  ;;  %v5093_v21 = vld [vmem:[%s8275_s1 + $0x40] sm:$0xff] }
 0x191   :  { %835 = vrot.lane.b32.xlu1 %v5817_v60, %s5112_s16  ;;  %v736_v49 = vadd.f32 %v725_v18, %v609_v56  ;;  %1305 = vrot.lane.b32.xlu0 %v8647_v63, %s5112_s16  ;;  %v4703_v18 = vpop.f32.mrb[23].mxu1  ;;  %v746_v63 = vld [vmem:[#allocation2 + $0x108] sm:$0x7f]  ;;  %v8658_v9 = vld [vmem:[#allocation12_spill] sm:$0xff] }
 0x192   :  { %5043 = vset.pattern.permute.xlu1 %v8623_v13  ;;  %v6087_v42 = vpop.permute.xlu1 %1295  ;;  %v8656_v18 = vrot.slane %v5503_v12, 7  ;;  %v8660_v12 = vld [vmem:[#allocation11_spill] sm:$0xff] }
 0x193   :  { %v863_v60 = vadd.f32 %v852_v40, %v736_v49  ;;  %v1038_v49 = vrot.slane %v960_v53, 1 }
 0x195   :  { %1179 = vrot.lane.b32.xlu1 %v8648_v55, %s5113_s17  ;;  %v6093_v13 = vadd.f32 %v929_v17, %v863_v60  ;;  %1396 = vperm.xlu0 %5044, %v5352_v44   ;;  %v815_v44 = vrot.slane %v746_v63, 7  ;;  %v8652_v55 = vmov 1   ;;  %v6111_v60 = vpop.permute.xlu0 %1173 }
 0x196   :  { %v6099_v56 = vpop.permute.xlu1 %569  ;;  %8653 = vst [vmem:[#allocation48_spill] sm:$0xff] %v6111_v60  ;;  %v8678_v60 = vld [vmem:[#allocation5_spill] sm:$0xff] }
 0x197   :  { %v816_v63 = vsel %vm793_vm2, %v8656_v18, %v815_v44  ;;  %v8661_v44 = vld [vmem:[#allocation16_spill] sm:$0xff] }
 0x199   :  { %1138 = vperm.xlu1 %5043, %v5359_v45   ;;  %1307 = vrot.lane.b32.xlu0 %v5827_v11, %s5112_s16  ;;  %v8654_v45 = vld [vmem:[#allocation28_spill] sm:$0xff]  ;;  %v346_v11 = vpop.f32.mrb[24].mxu1 }
 0x19a   :  { %v6104_v40 = vpop.permute.xlu1 %696  ;;  %5048 = vset.pattern.permute.xlu0 %v8652_v55  ;;  %v8655_v20 = vrot.slane %v8654_v45, 1  ;;  %382 = vst.msk [vmem:[#allocation2 + $0x118] sm:$0xff] %vm48_vm0, %v346_v11  ;;  %v4706_v39 = vpop.f32.mrb[25].mxu1 }
 0x19c   :  { %v1039_v53 = vsel %vm539_vm4, %v8655_v20, %v1038_v49  ;;  %v600_v49 = vmul.f32 %v6038_v26, %v8658_v9  ;;  %v8664_v9 = vld [vmem:[#allocation21_spill] sm:$0xff] }
 0x19d   :  { %5045 = vset.pattern.permute.xlu1 %v8630_v31  ;;  %1060 = vrot.lane.b32.xlu0 %v1039_v53, %s5114_s18  ;;  %v8659_v53 = vld [vmem:[#allocation34_spill] sm:$0xff] }
 0x19e   :  { %1392 = vperm.xlu1 %5045, %v5093_v21   ;;  %v6117_v17 = vpop.permute.xlu1 %1171  ;;  %v453_v22 = vmul.f32 %v8660_v12, %v8659_v53  ;;  %v8668_v12 = vld [vmem:[#allocation32_spill] sm:$0xff] }
 0x1a0   :  { %v6125_v21 = vpop.permute.xlu0 %788  ;;  %v611_v39 = vadd.f32 %v600_v49, %v453_v22 }
 0x1a1   :  { %8657 = vst [vmem:[#allocation49_spill] sm:$0xff] %v6125_v21  ;;  %1309 = vrot.lane.b32.xlu0 %v5833_v62, %s5112_s16  ;;  %v5094_v62 = vld [vmem:[%s8275_s1 + $0x50] sm:$0xff] }
 0x1a2   :  { %837 = vrot.lane.b32.xlu1 %v816_v63, %s5112_s16  ;;  %v699_v20 = vpop.permute.xlu1 %698 }
 0x1a3   :  { %5046 = vset.pattern.permute.xlu1 %v8562_v3  ;;  %v727_v18 = vmul.f32 %v699_v20, %v8661_v44  ;;  %v8663_v3 = vld [vmem:[#allocation51_spill] sm:$0xff]  ;;  %v8666_v44 = vld [vmem:[#allocation37_spill] sm:$0xff] }
 0x1a5   :  { %v6136_v11 = vpop.permute.xlu0 %888  ;;  %1311 = vrot.lane.b32.xlu0 %v8663_v3, %s5112_s16  ;;  %v738_v26 = vadd.f32 %v727_v18, %v611_v39 }
 0x1a6   :  { %1181 = vrot.lane.b32.xlu1 %v5830_v41, %s5113_s17  ;;  %8662 = vst [vmem:[#allocation27_spill] sm:$0xff] %v6136_v11  ;;  %v826_v63 = vpop.permute.xlu1 %825  ;;  %v8667_v41 = vld [vmem:[#allocation35_spill] sm:$0xff] }
 0x1a7   :  { %v854_v21 = vmul.f32 %v826_v63, %v8664_v9  ;;  %v931_v22 = vmul.f32 %v8667_v41, %v8666_v44  ;;  %v8672_v44 = vld [vmem:[#allocation4_spill] sm:$0xff]  ;;  %v1096_v9 = vld [vmem:[#allocation2 + $0x128] sm:$0x3f] }
 0x1a9   :  { %v865_v53 = vadd.f32 %v854_v21, %v738_v26  ;;  %v6144_v20 = vpop.permute.xlu0 %896  ;;  %v596_v26 = vmul.f32 %v6021_v33, %v8672_v44  ;;  %v8677_v33 = vld [vmem:[#allocation55_spill] sm:$0xff] }
 0x1aa   :  { %1265 = vperm.xlu1 %5046, %v5094_v62   ;;  %8665 = vst [vmem:[#allocation54_spill] sm:$0xff] %v6144_v20  ;;  %v6148_v49 = vpop.permute.xlu1 %827 }
 0x1ab   :  { %v6152_v3 = vadd.f32 %v931_v22, %v865_v53  ;;  %v8674_v53 = vld [vmem:[#allocation33_spill] sm:$0xff]  ;;  %v723_v22 = vmul.f32 %v6031_v2, %v5895_v29  ;;  %v8680_v2 = vld [vmem:[#allocation58_spill] sm:$0xff] }
 0x1ad   :  { %8669 = vst [vmem:[#allocation53_spill] sm:$0xff] %v6152_v3  ;;  %v6155_v18 = vpop.permute.xlu0 %904  ;;  %v8676_v3 = vld [vmem:[#allocation26_spill] sm:$0xff] }
 0x1ae   :  { %1058 = vrot.lane.b32.xlu1 %v8668_v12, %s5114_s18  ;;  %8670 = vst [vmem:[#allocation31_spill] sm:$0xff] %v6155_v18  ;;  %v6157_v39 = vpop.permute.xlu1 %575  ;;  %v6165_v12 = vld [vmem:[#allocation2] sm:$0xff] }
 0x1af   :  { %5047 = vset.pattern.permute.xlu1 %v8630_v31  ;;  %8673 = vst [vmem:[#allocation34_spill] sm:$0xff] %v6165_v12  ;;  %v449_v31 = vmul.f32 %v6165_v12, %v8674_v53  ;;  %v597_v53 = vmul.f32 %v6041_v25, %v8678_v60  ;;  %v8679_v12 = vld [vmem:[#allocation44_spill] sm:$0xff] }
 0x1b0   :  { %v456_v29 = vmul.f32 %v8680_v2, %v8679_v12 }
 0x1b1   :  { %v6161_v21 = vpop.permute.xlu0 %908 }
 0x1b2   :  { %1183 = vrot.lane.b32.xlu1 %v5836_v59, %s5113_s17  ;;  %8671 = vst [vmem:[#allocation28_spill] sm:$0xff] %v6161_v21  ;;  %v578_v63 = vpop.permute.xlu1 %577  ;;  %v1165_v59 = vrot.slane %v1096_v9, 6  ;;  %v607_v21 = vadd.f32 %v596_v26, %v449_v31  ;;  %v8682_v9 = vrot.slane %v8654_v45, 6  ;;  %v8683_v31 = vld [vmem:[#allocation10_spill] sm:$0xff] }
 0x1b3   :  { %v603_v18 = vmul.f32 %v578_v63, %v8676_v3  ;;  %v8684_v3 = vld [vmem:[#allocation24_spill] sm:$0xff] }
 0x1b4   :  { %v734_v44 = vadd.f32 %v723_v22, %v607_v21  ;;  %v1166_v63 = vsel %vm1143_vm5, %v8682_v9, %v1165_v59  ;;  %v8686_v59 = vrot.slane %v8654_v45, 7  ;;  %v8687_v9 = vld [vmem:[#allocation7_spill] sm:$0xff] }
 0x1b5   :  { %v6171_v41 = vpop.permute.xlu0 %912  ;;  %v614_v22 = vadd.f32 %v603_v18, %v456_v29  ;;  %v8688_v29 = vld [vmem:[#allocation25_spill] sm:$0xff]  ;;  %v8689_v18 = vld [vmem:[#allocation14_spill] sm:$0xff] }
 0x1b6   :  { %1400 = vperm.xlu1 %5047, %v5094_v62   ;;  %8675 = vst [vmem:[#allocation51_spill] sm:$0xff] %v6171_v41  ;;  %v6173_v50 = vpop.permute.xlu1 %579  ;;  %v1223_v62 = vld [vmem:[#allocation2 + $0x128] sm:$0x7f] }
 0x1b7   :  { %v1291_v26 = vrot.slane %v1223_v62, 7 }
 0x1b9   :  { %v6183_v34 = vpop.permute.xlu0 %581  ;;  %v1292_v62 = vsel %vm793_vm2, %v8686_v59, %v1291_v26  ;;  %v851_v26 = vmul.f32 %v6047_v35, %v5941_v32  ;;  %v873_v59 = vld [vmem:[#allocation2 + $0x38] sm:$0xff]  ;;  %v4499_v32 = vld [vmem:[%s8276_s3 + $0x88] sm:$0xff] }
 0x1ba   :  { %1185 = vrot.lane.b32.xlu1 %v8677_v33, %s5113_s17  ;;  %8681 = vst [vmem:[#allocation37_spill] sm:$0xff] %v6183_v34  ;;  %v705_v38 = vpop.permute.xlu1 %704  ;;  %v850_v33 = vmul.f32 %v5971_v37, %v8683_v31  ;;  %v8695_v35 = vld [vmem:[#allocation43_spill] sm:$0xff] }
 0x1bb   :  { %5049 = vset.pattern.permute.xlu1 %v8652_v55  ;;  %v8685_v55 = vld [vmem:[#allocation38_spill] sm:$0xff]  ;;  %v730_v25 = vmul.f32 %v705_v38, %v5838_v15  ;;  %v927_v38 = vmul.f32 %v8689_v18, %v8688_v29 }
 0x1bc   :  { %v450_v21 = vmul.f32 %v8685_v55, %v8684_v3  ;;  %v861_v12 = vadd.f32 %v850_v33, %v734_v44  ;;  %v724_v3 = vmul.f32 %v5979_v16, %v8687_v9  ;;  %v8690_v15 = vld [vmem:[#allocation18_spill] sm:$0xff] }
 0x1bd   :  { %v741_v60 = vadd.f32 %v730_v25, %v614_v22  ;;  %v832_v34 = vpop.permute.xlu0 %831  ;;  %v1073_v44 = vmul.f32 %v6055_v27, %v8690_v15  ;;  %v4496_v15 = vld [vmem:[%s8276_s3 + $0x70] sm:$0xff] }
 0x1be   :  { %1187 = vrot.lane.b32.xlu1 %v1166_v63, %s5113_s17  ;;  %v608_v2 = vadd.f32 %v597_v53, %v450_v21  ;;  %v6194_v23 = vpop.permute.xlu1 %1048  ;;  %v857_v37 = vmul.f32 %v832_v34, %v5906_v54  ;;  %v8691_v63 = vld [vmem:[#allocation50_spill] sm:$0xff]  ;;  %v938_v34 = vadd.f32 %v927_v38, %v861_v12  ;;  %v8692_v21 = vld [vmem:[#allocation23_spill] sm:$0xff]  ;;  %v1326_v12 = vmul.f32 %v5988_v4, %v8695_v35  ;;  %v1348_v38 = vld [vmem:[#allocation2 + $0x40] sm:$0xff] }
 0x1bf   :  { %v934_v33 = vmul.f32 %v6171_v41, %v8691_v63  ;;  %v1200_v16 = vmul.f32 %v6062_v1, %v8692_v21  ;;  %v1074_v63 = vmul.f32 %v6001_v10, %v5922_v14  ;;  %v8699_v4 = vld [vmem:[#allocation46_spill] sm:$0xff]  ;;  %v4498_v14 = vld [vmem:[%s8276_s3 + $0x80] sm:$0xff]  ;;  %v4497_v21 = vld [vmem:[%s8276_s3 + $0x78] sm:$0xff]  ;;  %v4903_v55 = vpack.c.bf16 %v4499_v32, %v4496_v15 }
 0x1c0   :  { %v868_v53 = vadd.f32 %v857_v37, %v741_v60  ;;  %v735_v45 = vadd.f32 %v724_v3, %v608_v2  ;;  %v928_v60 = vmul.f32 %v6136_v11, %v873_v59  ;;  %v1327_v59 = vmul.f32 %v6087_v42, %v8699_v4  ;;  %v4494_v35 = vld [vmem:[%s8276_s3 + $0x60] sm:$0xff]  ;;  %v4501_v41 = vld [vmem:[%s8276_s3 + $0x98] sm:$0xff]  ;;  %v4504_v11 = vld [vmem:[%s8276_s3 + $0xb0] sm:$0xff] }
 0x1c1   :  { %v6213_v22 = vpop.permute.xlu0 %1175  ;;  %v4896_v31 = vpack.c.bf16 %v4497_v21, %v4494_v35  ;;  %v4500_v18 = vld [vmem:[%s8276_s3 + $0x90] sm:$0xff]  ;;  %v4503_v15 = vld [vmem:[%s8276_s3 + $0xa8] sm:$0xff]  ;;  %4904 = vmatpush3.bf16.msra.mxu1 %v4903_v55 }
 0x1c2   :  { %1313 = vrot.lane.b32.xlu1 %v1292_v62, %s5112_s16  ;;  %v6215_v25 = vpop.permute.xlu1 %1297  ;;  %v6217_v27 = vadd.f32 %v934_v33, %v868_v53  ;;  %v1084_v62 = vadd.f32 %v1073_v44, %v938_v34  ;;  %v862_v37 = vadd.f32 %v851_v26, %v735_v45  ;;  %v1403_v44 = vmul.f32 %v5874_v43, %v1348_v38  ;;  %v1349_v34 = vld [vmem:[#allocation2 + $0x58] sm:$0xff]  ;;  %v4495_v43 = vld [vmem:[%s8276_s3 + $0x68] sm:$0xff] }
 0x1c3   :  { %v1404_v10 = vmul.f32 %v5882_v58, %v1349_v34  ;;  %v4894_v9 = vpack.c.bf16 %v4498_v14, %v4495_v43  ;;  %v4502_v43 = vld [vmem:[%s8276_s3 + $0xa0] sm:$0xff]  ;;  %v4505_v14 = vld [vmem:[%s8276_s3 + $0xb8] sm:$0xff] }
 0x1c4   :  { %v1211_v29 = vadd.f32 %v1200_v16, %v1084_v62  ;;  %v939_v1 = vadd.f32 %v928_v60, %v862_v37 }
 0x1c5   :  { %v6220_v2 = vpop.permute.xlu0 %924  ;;  %4895 = vmatprep.subr.bf16.mxu0 %v4894_v9 }
 0x1c6   :  { %8693 = vst [vmem:[#allocation32_spill] sm:$0xff] %v6220_v2  ;;  %v1337_v54 = vadd.f32 %v1326_v12, %v1211_v29  ;;  %v1085_v45 = vadd.f32 %v1074_v63, %v939_v1  ;;  %4897 = vmatpush1.bf16.msra.mxu0 %v4896_v31  ;;  %v4900_v2 = vpack.c.bf16 %v4503_v15, %v4500_v18  ;;  %v8723_v15 = vld [vmem:[#allocation8_spill] sm:$0xff] }
 0x1c8   :  { %v6235_v16 = vadd.f32 %v1403_v44, %v1337_v54 }
 0x1c9   :  { %v6222_v3 = vpop.permute.xlu1 %920 }
 0x1ca   :  { %8694 = vst [vmem:[#allocation55_spill] sm:$0xff] %v6222_v3  ;;  %v6228_v53 = vpop.permute.xlu0 %1102  ;;  %8698 = vst [vmem:[#allocation25_spill] sm:$0xff] %v6235_v16  ;;  %v1453_v12 = vmul.f32 %v6235_v16, %v6235_v16  ;;  %v1425_v54 = vsel %vm48_vm0, %v6235_v16, 0.0  ;;  %v4898_v16 = vpack.c.bf16 %v4504_v11, %v4501_v41  ;;  %v8714_v11 = vld [vmem:[#allocation47_spill] sm:$0xff]  ;;  %v8715_v41 = vld [vmem:[#allocation56_spill] sm:$0xff] }
 0x1cb   :  { %8696 = vst [vmem:[#allocation44_spill] sm:$0xff] %v6228_v53  ;;  %v1201_v26 = vmul.f32 %v6011_v61, %v6228_v53  ;;  %v457_v35 = vmul.f32 %v8715_v41, %v8714_v11  ;;  %v726_v11 = vmul.f32 %v6104_v40, %v5904_v51 }
 0x1cc   :  { %v1464_v44 = vsel %vm48_vm0, %v1453_v12, 0.0  ;;  %4899 = vmatprep.subr.bf16.mxu0 %v4898_v16 }
 0x1cd   :  { %v1212_v62 = vadd.f32 %v1201_v26, %v1085_v45  ;;  %4901 = vmatpush1.bf16.msra.mxu0 %v4900_v2  ;;  %v599_v2 = vmul.f32 %v6099_v56, %v5844_v47  ;;  %v853_v56 = vmul.f32 %v6017_v6, %v5949_v5  ;;  %v8728_v47 = vld [vmem:[#allocation36_spill] sm:$0xff] }
 0x1ce   :  { %v6231_v33 = vpop.permute.xlu1 %994  ;;  %v6239_v60 = vpop.permute.xlu0 %1106 }
 0x1cf   :  { %8697 = vst [vmem:[#allocation24_spill] sm:$0xff] %v6231_v33  ;;  %8700 = vst [vmem:[#allocation50_spill] sm:$0xff] %v6239_v60  ;;  %v1338_v37 = vadd.f32 %v1327_v59, %v1212_v62 }
 0x1d1   :  { %v6246_v1 = vadd.f32 %v1404_v10, %v1338_v37 }
 0x1d2   :  { %v6248_v61 = vpop.permute.xlu0 %1126 }
 0x1d3   :  { %v6242_v29 = vpop.permute.xlu1 %1249  ;;  %8702 = vst [vmem:[#allocation94_spill] sm:$0xff] %v6246_v1  ;;  %8703 = vst [vmem:[#allocation95_spill] sm:$0xff] %v6248_v61  ;;  %v1426_v42 = vsel %vm48_vm0, %v6246_v1, 0.0  ;;  %v1454_v38 = vmul.f32 %v6246_v1, %v6246_v1  ;;  %v604_v1 = vmul.f32 %v6173_v50, %v5864_v24  ;;  %v4906_v50 = vpack.c.bf16 %v4505_v14, %v4502_v43  ;;  %v8717_v43 = vld [vmem:[#allocation57_spill] sm:$0xff] }
 0x1d4   :  { %8701 = vst [vmem:[#allocation93_spill] sm:$0xff] %v6242_v29  ;;  %v6256_v63 = vadd.f32 %v1426_v42, %v1425_v54 }
 0x1d5   :  { %v1465_v45 = vsel %vm48_vm0, %v1454_v38, 0.0 }
 0x1d6   :  { %v6262_v34 = vpop.permute.xlu0 %708  ;;  %v6264_v59 = vadd.f32 %v1465_v45, %v1464_v44 }
 0x1d8   :  { %v6260_v26 = vpop.permute.xlu1 %1380  ;;  %8705 = vst [vmem:[#allocation97_spill] sm:$0xff] %v6264_v59 }
 0x1d9   :  { %8704 = vst [vmem:[#allocation96_spill] sm:$0xff] %v6260_v26 }
 0x1da   :  { %v6266_v10 = vpop.permute.xlu0 %1052 }
 0x1dc   :  { %v707_v62 = vpop.permute.xlu1 %706 }
 0x1dd   :  { %v731_v24 = vmul.f32 %v707_v62, %v5899_v48  ;;  %v935_v62 = vmul.f32 %v5997_v0, %v8717_v43  ;;  %v8730_v0 = vld [vmem:[#allocation30_spill] sm:$0xff] }
 0x1de   :  { %v6270_v58 = vpop.permute.xlu0 %1301  ;;  %v729_v6 = vmul.f32 %v6081_v8, %v8730_v0  ;;  %v855_v8 = vmul.f32 %v6148_v49, %v5963_v57 }
 0x1e0   :  { %v6268_v37 = vpop.permute.xlu1 %1050 }
 0x1e2   :  { %v6274_v54 = vpop.permute.xlu0 %1134 }
 0x1e3   :  { %8706 = vst [vmem:[#allocation98_spill] sm:$0xff] %v6274_v54  ;;  %v8716_v54 = vmov 0.0|0.0  }
 0x1e4   :  { %v6272_v4 = vpop.permute.xlu1 %1299  ;;  %4905 = vmatprep.subr.bf16.mxu1 %v8716_v54 }
 0x1e5   :  { %4907 = vmatpush3.bf16.msra.mxu1 %v4906_v50 }
 0x1e6   :  { %4916 = vmatprep.subr.bf16.mxu1 %v8716_v54  ;;  %v8726_v54 = vld [vmem:[#allocation19_spill] sm:$0xff] }
 0x1e7   :  { %v6278_v42 = vpop.permute.xlu0 %1233 }
 0x1e8   :  { %v6276_v12 = vpop.permute.xlu1 %998  ;;  %8708 = vst [vmem:[#allocation100_spill] sm:$0xff] %v6278_v42 }
 0x1e9   :  { %8707 = vst [vmem:[#allocation99_spill] sm:$0xff] %v6276_v12  ;;  %v615_v12 = vadd.f32 %v604_v1, %v457_v35 }
 0x1eb   :  { %v6282_v53 = vpop.permute.xlu0 %1237  ;;  %v742_v59 = vadd.f32 %v731_v24, %v615_v12 }
 0x1ec   :  { %8710 = vst [vmem:[#allocation102_spill] sm:$0xff] %v6282_v53  ;;  %v1329_v49 = vmul.f32 %v6272_v4, %v6282_v53  ;;  %v8744_v4 = vld [vmem:[#allocation28_spill] sm:$0xff] }
 0x1ed   :  { %v6280_v38 = vpop.permute.xlu1 %1130 }
 0x1ee   :  { %8709 = vst [vmem:[#allocation101_spill] sm:$0xff] %v6280_v38 }
 0x1ef   :  { %v6286_v45 = vpop.permute.xlu0 %1241 }
 0x1f0   :  { %8712 = vst [vmem:[#allocation104_spill] sm:$0xff] %v6286_v45 }
 0x1f2   :  { %v6284_v44 = vpop.permute.xlu1 %1384 }
 0x1f3   :  { %8711 = vst [vmem:[#allocation103_spill] sm:$0xff] %v6284_v44  ;;  %v6328_v21 = vpop.permute.xlu0 %1253 }
 0x1f4   :  { %8713 = vst [vmem:[#allocation105_spill] sm:$0xff] %v6328_v21 }
 0x1f6   :  { %v6326_v32 = vpop.permute.xlu1 %583 }
 0x1f7   :  { %v6334_v3 = vpop.permute.xlu0 %710 }
 0x1fa   :  { %v834_v38 = vpop.permute.xlu1 %833 }
 0x1fb   :  { %v858_v9 = vmul.f32 %v834_v38, %v5951_v46  ;;  %v6342_v14 = vpop.permute.xlu0 %1054  ;;  %v8722_v38 = vld [vmem:[#allocation29_spill] sm:$0xff] }
 0x1fc   :  { %v452_v50 = vmul.f32 %v8723_v15, %v8722_v38  ;;  %v875_v46 = vld [vmem:[#allocation2 + $0x68] sm:$0xff]  ;;  %v8725_v38 = vld [vmem:[#allocation40_spill] sm:$0xff] }
 0x1fd   :  { %v869_v55 = vadd.f32 %v858_v9, %v742_v59  ;;  %v930_v48 = vmul.f32 %v6144_v20, %v875_v46  ;;  %v455_v40 = vmul.f32 %v8726_v54, %v8725_v38  ;;  %v8732_v46 = vld [vmem:[#allocation22_spill] sm:$0xff] }
 0x1fe   :  { %v6340_v31 = vpop.permute.xlu1 %1177  ;;  %v610_v9 = vadd.f32 %v599_v2, %v452_v50  ;;  %v8727_v2 = vld [vmem:[#allocation15_spill] sm:$0xff]  ;;  %v1075_v20 = vmul.f32 %v6026_v30, %v8732_v46  ;;  %v1328_v30 = vmul.f32 %v6215_v25, %v6278_v42 }
 0x1ff   :  { %v6344_v18 = vadd.f32 %v935_v62, %v869_v55  ;;  %v6348_v1 = vpop.permute.xlu0 %1303  ;;  %v602_v62 = vmul.f32 %v6157_v39, %v5854_v19  ;;  %v601_v50 = vmul.f32 %v6058_v36, %v8727_v2  ;;  %v8729_v39 = vld [vmem:[#allocation45_spill] sm:$0xff]  ;;  %v8736_v46 = vld [vmem:[#allocation63_spill] sm:$0xff] }
 0x200   :  { %v737_v43 = vadd.f32 %v726_v11, %v610_v9  ;;  %v454_v19 = vmul.f32 %v8729_v39, %v8728_v47 }
 0x201   :  { %v613_v11 = vadd.f32 %v602_v62, %v455_v40  ;;  %v1086_v62 = vadd.f32 %v1075_v20, %v6093_v13  ;;  %v1350_v13 = vld [vmem:[#allocation2 + $0x70] sm:$0xff]  ;;  %v877_v20 = vld [vmem:[#allocation2 + $0x98] sm:$0xff] }
 0x202   :  { %v6346_v16 = vpop.permute.xlu1 %1002  ;;  %v864_v15 = vadd.f32 %v853_v56, %v737_v43  ;;  %v8734_v43 = vld [vmem:[#allocation20_spill] sm:$0xff] }
 0x203   :  { %8718 = vst [vmem:[#allocation47_spill] sm:$0xff] %v6346_v16  ;;  %v6352_v12 = vpop.permute.xlu0 %1261  ;;  %v8733_v16 = vld [vmem:[#allocation39_spill] sm:$0xff]  ;;  %v728_v56 = vmul.f32 %v6067_v28, %v8734_v43  ;;  %v740_v47 = vadd.f32 %v729_v6, %v613_v11  ;;  %v1077_v28 = vmul.f32 %v6194_v23, %v8736_v46 }
 0x204   :  { %8720 = vst [vmem:[#allocation106_spill] sm:$0xff] %v6352_v12  ;;  %v941_v9 = vadd.f32 %v930_v48, %v864_v15  ;;  %v1076_v38 = vmul.f32 %v6049_v7, %v8733_v16  ;;  %v1202_v48 = vmul.f32 %v6117_v17, %v6239_v60  ;;  %v612_v15 = vadd.f32 %v601_v50, %v454_v19  ;;  %v8735_v7 = vld [vmem:[#allocation3_spill] sm:$0xff]  ;;  %v8737_v17 = vld [vmem:[#allocation65_spill] sm:$0xff]  ;;  %v8738_v60 = vld [vmem:[#allocation48_spill] sm:$0xff] }
 0x205   :  { %v856_v16 = vmul.f32 %v8735_v7, %v5848_v52  ;;  %v1203_v19 = vmul.f32 %v8738_v60, %v8737_v17  ;;  %v8740_v6 = vld [vmem:[#allocation31_spill] sm:$0xff]  ;;  %v878_v7 = vld [vmem:[#allocation2 + $0xb0] sm:$0xff] }
 0x206   :  { %v1087_v40 = vadd.f32 %v1076_v38, %v941_v9  ;;  %v739_v0 = vadd.f32 %v728_v56, %v612_v15  ;;  %v1213_v50 = vadd.f32 %v1202_v48, %v1086_v62  ;;  %v932_v38 = vmul.f32 %v8740_v6, %v877_v20  ;;  %v1351_v56 = vld [vmem:[#allocation2 + $0x88] sm:$0xff]  ;;  %v8745_v17 = vld [vmem:[#allocation86_spill] sm:$0xff]  ;;  %v8748_v20 = vld [vmem:[#allocation80_spill] sm:$0xff] }
 0x207   :  { %v6350_v24 = vpop.permute.xlu1 %1257  ;;  %v867_v25 = vadd.f32 %v856_v16, %v740_v47  ;;  %v8742_v15 = vld [vmem:[#allocation53_spill] sm:$0xff]  ;;  %v933_v53 = vmul.f32 %v8744_v4, %v878_v7  ;;  %v1079_v46 = vmul.f32 %v6266_v10, %v8745_v17  ;;  %v8746_v16 = vld [vmem:[#allocation79_spill] sm:$0xff] }
 0x208   :  { %8719 = vst [vmem:[#allocation57_spill] sm:$0xff] %v6350_v24  ;;  %v6362_v35 = vpop.permute.xlu0 %1376  ;;  %v866_v9 = vadd.f32 %v855_v8, %v739_v0  ;;  %v1339_v42 = vadd.f32 %v1328_v30, %v1213_v50  ;;  %v1214_v52 = vadd.f32 %v1203_v19, %v1087_v40  ;;  %v1088_v60 = vadd.f32 %v1077_v28, %v8742_v15  ;;  %v8743_v48 = vld [vmem:[#allocation77_spill] sm:$0xff]  ;;  %v8747_v47 = vld [vmem:[#allocation75_spill] sm:$0xff]  ;;  %v1352_v40 = vld [vmem:[#allocation2 + $0xa0] sm:$0xff] }
 0x209   :  { %8724 = vst [vmem:[#allocation29_spill] sm:$0xff] %v6362_v35  ;;  %v1204_v62 = vmul.f32 %v6213_v22, %v8743_v48  ;;  %v1405_v0 = vmul.f32 %v8746_v16, %v1350_v13  ;;  %v1078_v8 = vmul.f32 %v6268_v37, %v8747_v47  ;;  %v944_v50 = vadd.f32 %v933_v53, %v867_v25  ;;  %v8749_v7 = vld [vmem:[#allocation91_spill] sm:$0xff]  ;;  %v8750_v48 = vld [vmem:[#allocation89_spill] sm:$0xff]  ;;  %v8751_v16 = vld [vmem:[#allocation88_spill] sm:$0xff] }
 0x20a   :  { %v1340_v30 = vadd.f32 %v1329_v49, %v1214_v52  ;;  %v1330_v28 = vmul.f32 %v6270_v58, %v6286_v45  ;;  %v1080_v22 = vmul.f32 %v6342_v14, %v8748_v20  ;;  %v1406_v10 = vmul.f32 %v8750_v48, %v1351_v56  ;;  %v8752_v58 = vld [vmem:[#allocation92_spill] sm:$0xff]  ;;  %v8753_v56 = vld [vmem:[#allocation67_spill] sm:$0xff] }
 0x20b   :  { %v943_v17 = vadd.f32 %v932_v38, %v866_v9  ;;  %v6426_v13 = vadd.f32 %v1405_v0, %v1339_v42  ;;  %v1205_v52 = vmul.f32 %v6340_v31, %v8751_v16  ;;  %v1215_v37 = vadd.f32 %v1204_v62, %v1088_v60  ;;  %v8754_v31 = vld [vmem:[#allocation37_spill] sm:$0xff]  ;;  %v1353_v62 = vld [vmem:[#allocation2 + $0xb8] sm:$0xff] }
 0x20c   :  { %v6356_v59 = vpop.permute.xlu1 %1388  ;;  %v6371_v41 = vpop.permute.xlu0 %1056  ;;  %v1090_v49 = vadd.f32 %v1079_v46, %v944_v50  ;;  %v1407_v53 = vmul.f32 %v6362_v35, %v1352_v40  ;;  %v6431_v47 = vadd.f32 %v1406_v10, %v1340_v30  ;;  %v1331_v14 = vmul.f32 %v6348_v1, %v8752_v58  ;;  %v8755_v30 = vld [vmem:[#allocation52_spill] sm:$0xff]  ;;  %v8756_v40 = vld [vmem:[#allocation70_spill] sm:$0xff] }
 0x20d   :  { %8721 = vst [vmem:[#allocation107_spill] sm:$0xff] %v6356_v59  ;;  %v1089_v25 = vadd.f32 %v1078_v8, %v943_v17  ;;  %v1091_v9 = vadd.f32 %v1080_v22, %v6217_v27  ;;  %v605_v60 = vmul.f32 %v8754_v31, %v8753_v56  ;;  %v1455_v46 = vmul.f32 %v6426_v13, %v6426_v13  ;;  %v1354_v27 = vld [vmem:[#allocation2 + $0xd0] sm:$0xff]  ;;  %v8764_v56 = vld [vmem:[#allocation76_spill] sm:$0xff] }
 0x20e   :  { %v458_v50 = vmul.f32 %v8756_v40, %v8755_v30  ;;  %v1428_v10 = vsel %vm48_vm0, %v6426_v13, 0.0  ;;  %v393_v31 = vld [vmem:[#allocation2 + $0xf0] sm:$0xff]  ;;  %v8763_v40 = vld [vmem:[#allocation55_spill] sm:$0xff] }
 0x20f   :  { %v1216_v17 = vadd.f32 %v1205_v52, %v1089_v25  ;;  %v1467_v25 = vsel %vm48_vm0, %v1455_v46, 0.0 }
 0x210   :  { %v6364_v55 = vpop.permute.xlu1 %835  ;;  %v1306_v36 = vpop.permute.xlu0 %1305 }
 0x211   :  { %v1332_v1 = vmul.f32 %v1306_v36, %v6242_v29  ;;  %v1342_v22 = vadd.f32 %v1331_v14, %v1216_v17  ;;  %v1408_v36 = vmul.f32 %v6260_v26, %v1353_v62  ;;  %v1409_v14 = vmul.f32 %v6284_v44, %v1354_v27 }
 0x212   :  { %v1081_v27 = vmul.f32 %v6371_v41, %v6231_v33  ;;  %v733_v41 = vmul.f32 %v6334_v3, %v8764_v56 }
 0x213   :  { %v6468_v62 = vadd.f32 %v1408_v36, %v1342_v22  ;;  %v881_v36 = vld [vmem:[#allocation2 + $0xf8] sm:$0xff] }
 0x214   :  { %v1180_v51 = vpop.permute.xlu1 %1179  ;;  %v6407_v23 = vpop.permute.xlu0 %1396  ;;  %v936_v44 = vmul.f32 %v8763_v40, %v881_v36 }
 0x215   :  { %8741 = vst [vmem:[#allocation3_spill] sm:$0xff] %v6407_v23  ;;  %v1206_v15 = vmul.f32 %v1180_v51, %v8749_v7  ;;  %v1341_v7 = vadd.f32 %v1330_v28, %v1215_v37  ;;  %v1456_v28 = vmul.f32 %v6431_v47, %v6431_v47  ;;  %v616_v37 = vadd.f32 %v605_v60, %v458_v50 }
 0x216   :  { %v1429_v60 = vadd.f32 %v1428_v10, %v6256_v63  ;;  %v8761_v10 = vld [vmem:[#allocation81_spill] sm:$0xff] }
 0x217   :  { %v1217_v42 = vadd.f32 %v1206_v15, %v1090_v49  ;;  %v6441_v0 = vadd.f32 %v1407_v53, %v1341_v7  ;;  %v8758_v49 = vld [vmem:[#allocation83_spill] sm:$0xff]  ;;  %v1469_v17 = vsel %vm48_vm0, %v1456_v28, 0.0  ;;  %v459_v28 = vmul.f32 %v8761_v10, %v393_v31 }
 0x218   :  { %v6381_v5 = vpop.permute.xlu1 %1138  ;;  %v1308_v20 = vpop.permute.xlu0 %1307  ;;  %v732_v53 = vmul.f32 %v6262_v34, %v8758_v49  ;;  %v8759_v34 = vld [vmem:[#allocation69_spill] sm:$0xff] }
 0x219   :  { %8731 = vst [vmem:[#allocation40_spill] sm:$0xff] %v6381_v5  ;;  %v1343_v52 = vadd.f32 %v1332_v1, %v1217_v42  ;;  %v1333_v7 = vmul.f32 %v1308_v20, %v6328_v21  ;;  %v1457_v20 = vmul.f32 %v6441_v0, %v6441_v0  ;;  %v606_v46 = vmul.f32 %v6326_v32, %v8759_v34 }
 0x21a   :  { %v1432_v50 = vsel %vm48_vm0, %v6441_v0, 0.0  ;;  %v743_v34 = vadd.f32 %v732_v53, %v616_v37  ;;  %v1356_v53 = vld [vmem:[#allocation2 + $0x100] sm:$0xff] }
 0x21b   :  { %v6475_v49 = vadd.f32 %v1409_v14, %v1343_v52  ;;  %v1458_v52 = vmul.f32 %v6468_v62, %v6468_v62 }
 0x21d   :  { %v6404_v11 = vpop.permute.xlu1 %1392  ;;  %v1459_v37 = vmul.f32 %v6475_v49, %v6475_v49 }
 0x21e   :  { %8739 = vst [vmem:[#allocation36_spill] sm:$0xff] %v6404_v11 }
 0x221   :  { %v6418_v19 = vpop.permute.xlu1 %837 }
 0x225   :  { %v1182_v51 = vpop.permute.xlu1 %1181 }
 0x226   :  { %v1207_v38 = vmul.f32 %v1182_v51, %v6248_v61  ;;  %v1355_v51 = vld [vmem:[#allocation2 + $0xe8] sm:$0xff] }
 0x227   :  { %v1410_v30 = vmul.f32 %v6356_v59, %v1355_v51  ;;  %v1471_v51 = vsel %vm48_vm0, %v1457_v20, 0.0  ;;  %v8765_v20 = vld [vmem:[#allocation101_spill] sm:$0xff] }
 0x228   :  { %v1218_v8 = vadd.f32 %v1207_v38, %v1091_v9  ;;  %v6457_v9 = vpop.permute.xlu0 %1060  ;;  %v1430_v38 = vsel %vm48_vm0, %v6431_v47, 0.0 }
 0x229   :  { %v6448_v15 = vpop.permute.xlu1 %1265  ;;  %v1431_v22 = vadd.f32 %v1430_v38, %v1429_v60  ;;  %v1092_v38 = vadd.f32 %v1081_v27, %v6344_v18  ;;  %v1434_v60 = vsel %vm48_vm0, %v6468_v62, 0.0 }
 0x22a   :  { %8757 = vst [vmem:[#allocation48_spill] sm:$0xff] %v6448_v15  ;;  %v1344_v42 = vadd.f32 %v1333_v7, %v1218_v8  ;;  %v8760_v8 = vld [vmem:[#allocation97_spill] sm:$0xff]  ;;  %v8762_v7 = vld [vmem:[#allocation90_spill] sm:$0xff] }
 0x22b   :  { %v1468_v63 = vadd.f32 %v1467_v25, %v8760_v8  ;;  %v859_v32 = vmul.f32 %v6364_v55, %v8762_v7  ;;  %v1433_v14 = vadd.f32 %v1432_v50, %v1431_v22  ;;  %v617_v55 = vadd.f32 %v606_v46, %v459_v28  ;;  %v8766_v50 = vld [vmem:[#allocation49_spill] sm:$0xff] }
 0x22c   :  { %v6482_v59 = vadd.f32 %v1410_v30, %v1344_v42  ;;  %v1310_v31 = vpop.permute.xlu0 %1309  ;;  %v1473_v22 = vsel %vm48_vm0, %v1458_v52, 0.0 }
 0x22d   :  { %v1059_v1 = vpop.permute.xlu1 %1058  ;;  %v1470_v25 = vadd.f32 %v1469_v17, %v1468_v63  ;;  %v870_v3 = vadd.f32 %v859_v32, %v743_v34  ;;  %v1436_v17 = vsel %vm48_vm0, %v6475_v49, 0.0  ;;  %v860_v63 = vmul.f32 %v6418_v19, %v8766_v50  ;;  %v8768_v19 = vld [vmem:[#allocation99_spill] sm:$0xff] }
 0x22e   :  { %v1460_v18 = vmul.f32 %v6482_v59, %v6482_v59  ;;  %v1334_v46 = vmul.f32 %v1310_v31, %v6350_v24  ;;  %v744_v28 = vadd.f32 %v733_v41, %v617_v55  ;;  %v1435_v36 = vadd.f32 %v1434_v60, %v1433_v14  ;;  %v882_v55 = vld [vmem:[#allocation2 + $0x110] sm:$0xff] }
 0x22f   :  { %v1472_v30 = vadd.f32 %v1471_v51, %v1470_v25  ;;  %v1475_v32 = vsel %vm48_vm0, %v1459_v37, 0.0  ;;  %v1438_v51 = vsel %vm48_vm0, %v6482_v59, 0.0  ;;  %v1082_v25 = vmul.f32 %v1059_v1, %v8768_v19 }
 0x230   :  { %v1437_v10 = vadd.f32 %v1436_v17, %v1435_v36  ;;  %v871_v31 = vadd.f32 %v860_v63, %v744_v28  ;;  %v1477_v41 = vsel %vm48_vm0, %v1460_v18, 0.0  ;;  %v947_v52 = vadd.f32 %v936_v44, %v870_v3  ;;  %v1312_v37 = vpop.permute.xlu0 %1311  ;;  %v8770_v17 = vld [vmem:[#allocation98_spill] sm:$0xff]  ;;  %v1357_v18 = vld [vmem:[#allocation2 + $0x118] sm:$0xff] }
 0x231   :  { %v1184_v8 = vpop.permute.xlu1 %1183  ;;  %v1474_v56 = vadd.f32 %v1473_v22, %v1472_v30  ;;  %v1412_v22 = vmul.f32 %v6407_v23, %v1357_v18  ;;  %v8771_v36 = vld [vmem:[#allocation47_spill] sm:$0xff] }
 0x232   :  { %v1208_v42 = vmul.f32 %v1184_v8, %v8765_v20  ;;  %v1411_v8 = vmul.f32 %v6404_v11, %v1356_v53  ;;  %v1439_v53 = vadd.f32 %v1438_v51, %v1437_v10  ;;  %v1093_v24 = vadd.f32 %v1082_v25, %v947_v52 }
 0x234   :  { %v1219_v27 = vadd.f32 %v1208_v42, %v1092_v38  ;;  %v1476_v38 = vadd.f32 %v1475_v32, %v1474_v56  ;;  %v8769_v42 = vld [vmem:[#allocation32_spill] sm:$0xff]  ;;  %v1335_v56 = vmul.f32 %v1312_v37, %v6352_v12 }
 0x235   :  { %v6504_v34 = vpop.permute.xlu1 %1400  ;;  %v937_v60 = vmul.f32 %v8769_v42, %v882_v55 }
 0x236   :  { %8767 = vst [vmem:[#allocation53_spill] sm:$0xff] %v6504_v34  ;;  %v1345_v50 = vadd.f32 %v1334_v46, %v1219_v27  ;;  %v1478_v46 = vadd.f32 %v1477_v41, %v1476_v38  ;;  %v1358_v41 = vld [vmem:[#allocation2 + $0x130] sm:$0xff] }
 0x237   :  { %v948_v3 = vadd.f32 %v937_v60, %v871_v31  ;;  %v1413_v60 = vmul.f32 %v6504_v34, %v1358_v41 }
 0x238   :  { %v6511_v14 = vadd.f32 %v1411_v8, %v1345_v50  ;;  %v1083_v8 = vmul.f32 %v6457_v9, %v8771_v36 }
 0x239   :  { %v1186_v11 = vpop.permute.xlu1 %1185 }
 0x23a   :  { %v1440_v1 = vsel %vm48_vm0, %v6511_v14, 0.0  ;;  %v1461_v30 = vmul.f32 %v6511_v14, %v6511_v14  ;;  %v1209_v63 = vmul.f32 %v1186_v11, %v8770_v17  ;;  %v1094_v11 = vadd.f32 %v1083_v8, %v948_v3 }
 0x23b   :  { %v1441_v44 = vadd.f32 %v1440_v1, %v1439_v53 }
 0x23c   :  { %v1479_v10 = vsel %vm48_vm0, %v1461_v30, 0.0  ;;  %v1220_v50 = vadd.f32 %v1209_v63, %v1093_v24 }
 0x23d   :  { %v1480_v27 = vadd.f32 %v1479_v10, %v1478_v46  ;;  %v1188_v28 = vpop.permute.xlu1 %1187 }
 0x23e   :  { %v1346_v32 = vadd.f32 %v1335_v56, %v1220_v50  ;;  %v1210_v51 = vmul.f32 %v1188_v28, %v6381_v5 }
 0x240   :  { %v1423_v25 = vadd.f32 %v1412_v22, %v1346_v32  ;;  %v1221_v38 = vadd.f32 %v1210_v51, %v1094_v11 }
 0x241   :  { %v1314_v55 = vpop.permute.xlu1 %1313 }
 0x242   :  { %v1442_v31 = vsel %vm48_vm0, %v1423_v25, 0.0  ;;  %v1462_v52 = vmul.f32 %v1423_v25, %v1423_v25  ;;  %v1336_v24 = vmul.f32 %v1314_v55, %v6448_v15 }
 0x243   :  { %v1443_v53 = vadd.f32 %v1442_v31, %v1441_v44 }
 0x244   :  { %v1481_v37 = vsel %vm48_vm0, %v1462_v52, 0.0  ;;  %v1347_v1 = vadd.f32 %v1336_v24, %v1221_v38 }
 0x245   :  { %v1482_v9 = vadd.f32 %v1481_v37, %v1480_v27 }
 0x246   :  { %v1424_v30 = vadd.f32 %v1413_v60, %v1347_v1  ;;  %v1497_v60 = vlaneseq  ;;  %v53_v1 = vld [vmem:[%s8278_s4] sm:$0x3] }
 0x248   :  { %v1444_v63 = vsel %vm48_vm0, %v1424_v30, 0.0  ;;  %v1463_v18 = vmul.f32 %v1424_v30, %v1424_v30  ;;  %v1498_v37 = vshrl.u32 %v1497_v60, 7 }
 0x249   :  { %v1445_v46 = vadd.f32 %v1444_v63, %v1443_v53 }
 0x24a   :  { %v1483_v3 = vsel %vm48_vm0, %v1463_v18, 0.0 }
 0x24b   :  { %v1446_v56 = vrot.slane %v1445_v46, 4  ;;  %v1484_v10 = vadd.f32 %v1483_v3, %v1482_v9  ;;  %v6534_v9 = vsub.s32 0, %v1498_v37 }
 0x24d   :  { %v1447_v50 = vadd.f32 %v1446_v56, %v1445_v46  ;;  %v1485_v28 = vrot.slane %v1484_v10, 4  ;;  %8772 = vst [vmem:[#allocation37_spill] sm:$0xff] %v6534_v9  ;;  %v6537_v56 = vsub.s32 1, %v1498_v37 }
 0x24f   :  { %v1448_v22 = vrot.slane %v1447_v50, 2  ;;  %v1486_v8 = vadd.f32 %v1485_v28, %v1484_v10  ;;  %8773 = vst [vmem:[#allocation52_spill] sm:$0xff] %v6537_v56  ;;  %v8774_v28 = vld [vmem:[#allocation25_spill] sm:$0xff] }
 0x251   :  { %v1449_v44 = vadd.f32 %v1448_v22, %v1447_v50  ;;  %v1487_v32 = vrot.slane %v1486_v8, 2 }
 0x253   :  { %v1450_v51 = vrot.slane %v1449_v44, 1  ;;  %v1488_v11 = vadd.f32 %v1487_v32, %v1486_v8  ;;  %v8775_v8 = vld [vmem:[#allocation94_spill] sm:$0xff] }
 0x255   :  { %v1451_v41 = vadd.f32 %v1450_v51, %v1449_v44  ;;  %v1489_v55 = vrot.slane %v1488_v11, 1 }
 0x257   :  { %v1452_v27 = vmul.f32 0.011904762, %v1451_v41  ;;  %v1490_v31 = vadd.f32 %v1489_v55, %v1488_v11 }
 0x259   :  { %v1491_v52 = vmul.f32 0.011904762, %v1490_v31  ;;  %v1492_v38 = vmul.f32 %v1452_v27, %v1452_v27 }
 0x25b   :  { %v1493_v24 = vsub.f32 %v1491_v52, %v1492_v38 }
 0x25d   :  { %v1494_v53 = vadd.f32 1e-05, %v1493_v24 }
 0x25f   :  { %5080 = vrsqrt.f32 %v1494_v53 }
 0x269   :  { %v5081_v63 = vpop.eup %5080 }
 0x26a   :  { %v1496_v18 = vmul.f32 %v5081_v63, %v53_v1 }
 0x26c   :  { %v1500_v46 = vrot.slane %v1496_v18, %v6534_v9  ;;  %v1512_v3 = vmul.f32 %v1496_v18, %v1452_v27  ;;  %v8776_v18 = vld [vmem:[#allocation14_spill] sm:$0xff] }
 0x26e   :  { %v1511_v10 = vmul.f32 %v1500_v46, %v1424_v30  ;;  %v1514_v50 = vrot.slane %v1512_v3, 7  ;;  %v1501_v22 = vmul.f32 %v1500_v46, %v8774_v28  ;;  %v1502_v44 = vmul.f32 %v1500_v46, %v8775_v8  ;;  %v8781_v28 = vld [vmem:[#allocation17_spill] sm:$0xff]  ;;  %v8783_v8 = vld [vmem:[#allocation54_spill] sm:$0xff] }
 0x26f   :  { %v1509_v51 = vmul.f32 %v1500_v46, %v6511_v14  ;;  %v1510_v11 = vmul.f32 %v1500_v46, %v1423_v25  ;;  %v1503_v55 = vmul.f32 %v1500_v46, %v6426_v13  ;;  %v1504_v31 = vmul.f32 %v1500_v46, %v6431_v47  ;;  %v8778_v47 = vld [vmem:[#allocation27_spill] sm:$0xff] }
 0x270   :  { %v1516_v32 = vsub.f32 %v53_v1, %v1514_v50  ;;  %v1505_v27 = vmul.f32 %v1500_v46, %v6441_v0  ;;  %v1506_v52 = vmul.f32 %v1500_v46, %v6468_v62  ;;  %v1507_v30 = vmul.f32 %v1500_v46, %v6475_v49 }
 0x271   :  { %v1508_v38 = vmul.f32 %v1500_v46, %v6482_v59  ;;  %v8779_v46 = vld [vmem:[#allocation34_spill] sm:$0xff] }
 0x272   :  { %v1520_v41 = vrot.slane %v1516_v32, %v6537_v56 }
 0x274   :  { %v1521_v24 = vadd.f32 %v1520_v41, %v1501_v22  ;;  %v1522_v53 = vadd.f32 %v1520_v41, %v1502_v44  ;;  %v1523_v60 = vadd.f32 %v1520_v41, %v1503_v55  ;;  %v1524_v37 = vadd.f32 %v1520_v41, %v1504_v31 }
 0x275   :  { %v1525_v14 = vadd.f32 %v1520_v41, %v1505_v27  ;;  %v1526_v25 = vadd.f32 %v1520_v41, %v1506_v52  ;;  %v1527_v1 = vadd.f32 %v1520_v41, %v1507_v30  ;;  %v1528_v63 = vadd.f32 %v1520_v41, %v1508_v38  ;;  %v8789_v30 = vld [vmem:[#allocation51_spill] sm:$0xff] }
 0x276   :  { %v1532_v13 = vmul.f32 %v1521_v24, %v8776_v18  ;;  %v1533_v0 = vmul.f32 %v1522_v53, %v8778_v47  ;;  %v1529_v59 = vadd.f32 %v1520_v41, %v1509_v51  ;;  %v1530_v49 = vadd.f32 %v1520_v41, %v1510_v11  ;;  %v8785_v51 = vld [vmem:[#allocation35_spill] sm:$0xff]  ;;  %v8791_v53 = vld [vmem:[#allocation41_spill] sm:$0xff] }
 0x277   :  { %v1531_v62 = vadd.f32 %v1520_v41, %v1511_v10  ;;  %v1534_v22 = vmul.f32 %v1523_v60, %v8781_v28  ;;  %v1535_v44 = vmul.f32 %v1524_v37, %v8783_v8  ;;  %v1536_v11 = vmul.f32 %v1525_v14, %v8785_v51 }
 0x278   :  { %v6550_v3 = vmax.f32 %v1532_v13, 0.0  ;;  %v6560_v50 = vmax.f32 %v1533_v0, 0.0  ;;  %v1537_v55 = vmul.f32 %v1526_v25, %v8740_v6  ;;  %v1538_v27 = vmul.f32 %v1527_v1, %v8744_v4  ;;  %v2013_v13 = vld [vmem:[#allocation2] sm:$0xfc] }
 0x279   :  { %v6570_v10 = vmax.f32 %v1534_v22, 0.0  ;;  %v6580_v32 = vmax.f32 %v1535_v44, 0.0  ;;  %v6590_v41 = vmax.f32 %v1536_v11, 0.0  ;;  %v1539_v38 = vmul.f32 %v1528_v63, %v8789_v30  ;;  %v1921_v0 = vld [vmem:[#allocation2] sm:$0xfe] }
 0x27a   :  { %8777 = vst [vmem:[#allocation97_spill] sm:$0xff] %v6550_v3  ;;  %4506 = vmatmul.mubr.msk.f32.vlgmr.msra.gmra.mrb[18].mxu0 %vm48_vm0, %v6550_v3  ;;  %4716 = vmatmul.mubr.msk.f32.vlgmr.msra.gmra.mrb[26].mxu1 %vm48_vm0, %v6550_v3  ;;  %8780 = vst [vmem:[#allocation25_spill] sm:$0xff] %v6560_v50  ;;  %v6600_v31 = vmax.f32 %v1537_v55, 0.0  ;;  %v6610_v52 = vmax.f32 %v1538_v27, 0.0  ;;  %v1540_v60 = vmul.f32 %v1529_v59, %v8791_v53  ;;  %v2017_v59 = vrot.slane %v2013_v13, 2 }
 0x27b   :  { %1674 = vmatprep.mubr.f32.mxu0 %v8779_v46  ;;  %4718 = vmatprep.mubr.msk.f32.mxu1 %vm5105_vm1, %v8779_v46  ;;  %8782 = vst [vmem:[#allocation94_spill] sm:$0xff] %v6570_v10  ;;  %8784 = vst [vmem:[#allocation14_spill] sm:$0xff] %v6580_v32  ;;  %v6620_v24 = vmax.f32 %v1539_v38, 0.0  ;;  %v1541_v14 = vmul.f32 %v1530_v49, %v8763_v40  ;;  %v1542_v1 = vmul.f32 %v1531_v62, %v8769_v42  ;;  %v2095_v44 = vld [vmem:[#allocation2] sm:$0x80] }
 0x27c   :  { %8786 = vst [vmem:[#allocation27_spill] sm:$0xff] %v6590_v41  ;;  %8787 = vst [vmem:[#allocation34_spill] sm:$0xff] %v6600_v31  ;;  %v6630_v37 = vmax.f32 %v1540_v60, 0.0  ;;  %v1935_v49 = vrot.slane %v1921_v0, 1 }
 0x27d   :  { %8788 = vst [vmem:[#allocation108_spill] sm:$0xff] %v6610_v52  ;;  %8790 = vst [vmem:[#allocation109_spill] sm:$0xff] %v6620_v24  ;;  %v6640_v25 = vmax.f32 %v1541_v14, 0.0  ;;  %v6650_v63 = vmax.f32 %v1542_v1, 0.0  ;;  %v2099_v14 = vrot.slane %v2095_v44, 7 }
 0x27e   :  { %4507 = vmatmul.mubr.msk.f32.gmra.mrb[20].mxu0 %vm48_vm0, %v6560_v50  ;;  %4719 = vmatmul.mubr.msk.f32.gmra.mrb[28].mxu1 %vm48_vm0, %v6560_v50  ;;  %8792 = vst [vmem:[#allocation110_spill] sm:$0xff] %v6630_v37 }
 0x27f   :  { %1680 = vmatprep.mubr.f32.mxu0 %v8779_v46  ;;  %4721 = vmatprep.mubr.msk.f32.mxu1 %vm5105_vm1, %v8779_v46  ;;  %8793 = vst [vmem:[#allocation111_spill] sm:$0xff] %v6640_v25  ;;  %8794 = vst [vmem:[#allocation112_spill] sm:$0xff] %v6650_v63 }
 0x282   :  { %4508 = vmatmul.mubr.msk.f32.gmra.mrb[22].mxu0 %vm48_vm0, %v6570_v10  ;;  %4722 = vmatmul.mubr.msk.f32.gmra.mrb[30].mxu1 %vm48_vm0, %v6570_v10 }
 0x283   :  { %1686 = vmatprep.mubr.f32.mxu0 %v8779_v46  ;;  %4724 = vmatprep.mubr.msk.f32.mxu1 %vm5105_vm1, %v8779_v46 }
 0x286   :  { %4509 = vmatmul.mubr.msk.f32.gmra.mrb[24].mxu0 %vm48_vm0, %v6580_v32  ;;  %4725 = vmatmul.mubr.msk.f32.gmra.mrb[32].mxu1 %vm48_vm0, %v6580_v32 }
 0x287   :  { %1692 = vmatprep.mubr.f32.mxu0 %v8779_v46  ;;  %4727 = vmatprep.mubr.msk.f32.mxu1 %vm5105_vm1, %v8779_v46 }
 0x28a   :  { %4510 = vmatmul.mubr.msk.f32.gmra.mrb[26].mxu0 %vm48_vm0, %v6590_v41  ;;  %4728 = vmatmul.mubr.msk.f32.gmra.mrb[34].mxu1 %vm48_vm0, %v6590_v41 }
 0x28b   :  { %1698 = vmatprep.mubr.f32.mxu0 %v8779_v46  ;;  %4730 = vmatprep.mubr.msk.f32.mxu1 %vm5105_vm1, %v8779_v46 }
 0x28e   :  { %4511 = vmatmul.mubr.msk.f32.gmra.mrb[28].mxu0 %vm48_vm0, %v6600_v31  ;;  %4731 = vmatmul.mubr.msk.f32.gmra.mrb[36].mxu1 %vm48_vm0, %v6600_v31 }
 0x28f   :  { %1704 = vmatprep.mubr.f32.mxu0 %v8779_v46  ;;  %4733 = vmatprep.mubr.msk.f32.mxu1 %vm5105_vm1, %v8779_v46 }
 0x292   :  { %4512 = vmatmul.mubr.msk.f32.gmra.mrb[30].mxu0 %vm48_vm0, %v6610_v52  ;;  %4734 = vmatmul.mubr.msk.f32.gmra.mrb[38].mxu1 %vm48_vm0, %v6610_v52 }
 0x293   :  { %1710 = vmatprep.mubr.f32.mxu0 %v8779_v46  ;;  %4736 = vmatprep.mubr.msk.f32.mxu1 %vm5105_vm1, %v8779_v46 }
 0x296   :  { %4513 = vmatmul.mubr.msk.f32.gmra.mrb[32].mxu0 %vm48_vm0, %v6620_v24  ;;  %4737 = vmatmul.mubr.msk.f32.gmra.mrb[40].mxu1 %vm48_vm0, %v6620_v24 }
 0x297   :  { %1716 = vmatprep.mubr.f32.mxu0 %v8779_v46  ;;  %4739 = vmatprep.mubr.msk.f32.mxu1 %vm5105_vm1, %v8779_v46 }
 0x29a   :  { %4514 = vmatmul.mubr.msk.f32.gmra.mrb[34].mxu0 %vm48_vm0, %v6630_v37  ;;  %4740 = vmatmul.mubr.msk.f32.gmra.mrb[42].mxu1 %vm48_vm0, %v6630_v37 }
 0x29b   :  { %1722 = vmatprep.mubr.f32.mxu0 %v8779_v46  ;;  %4742 = vmatprep.mubr.msk.f32.mxu1 %vm5105_vm1, %v8779_v46 }
 0x29e   :  { %4515 = vmatmul.mubr.msk.f32.gmra.mrb[36].mxu0 %vm48_vm0, %v6640_v25  ;;  %4743 = vmatmul.mubr.msk.f32.gmra.mrb[44].mxu1 %vm48_vm0, %v6640_v25 }
 0x29f   :  { %1728 = vmatprep.mubr.f32.mxu0 %v8779_v46  ;;  %4745 = vmatprep.mubr.msk.f32.mxu1 %vm5105_vm1, %v8779_v46 }
 0x2a2   :  { %4516 = vmatmul.mubr.msk.f32.gmra.mrb[38].mxu0 %vm48_vm0, %v6650_v63  ;;  %4746 = vmatmul.mubr.msk.f32.gmra.mrb[46].mxu1 %vm48_vm0, %v6650_v63 }
 0x2a3   :  { %2738 = vmatprep.mubr.f32.mxu0 %v8779_v46  ;;  %4756 = vmatprep.mubr.msk.f32.mxu1 %vm5105_vm1, %v8779_v46 }
 0x34d   :  { %v6659_v62 = vpop.f32.mrb[18].mxu0  ;;  %v1801_v22 = vpop.f32.mrb[26].mxu1 }
 0x34e   :  { %v6661_v11 = vpop.f32.mrb[19].mxu0  ;;  %v4717_v55 = vpop.f32.mrb[27].mxu1  ;;  %v2018_v27 = vrot.slane %v6659_v62, 2  ;;  %v1936_v38 = vrot.slane %v6659_v62, 1  ;;  %v2100_v1 = vrot.slane %v6659_v62, 7 }
 0x34f   :  { %1856 = vst [vmem:[#allocation2 + $0x20] sm:$0xff] %v6661_v11 }
 0x350   :  { %v2019_v60 = vsel %vm666_vm3, %v2017_v59, %v2018_v27  ;;  %v1937_v46 = vsel %vm539_vm4, %v1935_v49, %v1936_v38  ;;  %v2101_v44 = vsel %vm793_vm2, %v2099_v14, %v2100_v1 }
 0x351   :  { %v6669_v13 = vpop.f32.mrb[20].mxu0  ;;  %v1806_v0 = vpop.f32.mrb[28].mxu1  ;;  %2040 = vrot.lane.b32.xlu1 %v2019_v60, %s5113_s17  ;;  %1958 = vrot.lane.b32.xlu0 %v1937_v46, %s5114_s18 }
 0x352   :  { %1860 = vst.msk [vmem:[#allocation2 + $0x40] sm:$0xff] %vm48_vm0, %v1806_v0  ;;  %v6674_v22 = vpop.f32.mrb[21].mxu0  ;;  %v4720_v55 = vpop.f32.mrb[29].mxu1  ;;  %v2020_v63 = vrot.slane %v6669_v13, 2  ;;  %v2102_v59 = vrot.slane %v6669_v13, 7  ;;  %v1938_v49 = vrot.slane %v6669_v13, 1 }
 0x353   :  { %v2389_v55 = vrot.slane %v6674_v22, 7  ;;  %v2225_v24 = vrot.slane %v6674_v22, 1 }
 0x354   :  { %v2021_v25 = vsel %vm666_vm3, %v2018_v27, %v2020_v63  ;;  %v2103_v37 = vsel %vm793_vm2, %v2100_v1, %v2102_v59  ;;  %v1939_v60 = vsel %vm539_vm4, %v1936_v38, %v1938_v49 }
 0x355   :  { %v6683_v46 = vpop.f32.mrb[22].mxu0  ;;  %v1811_v0 = vpop.f32.mrb[30].mxu1  ;;  %2122 = vrot.lane.b32.xlu1 %v2101_v44, %s5112_s16  ;;  %2042 = vrot.lane.b32.xlu0 %v2021_v25, %s5113_s17  ;;  %v2307_v25 = vrot.slane %v6674_v22, 6 }
 0x356   :  { %1863 = vst.msk [vmem:[#allocation2 + $0x58] sm:$0xff] %vm48_vm0, %v1811_v0  ;;  %v6690_v14 = vpop.f32.mrb[23].mxu0  ;;  %v4723_v27 = vpop.f32.mrb[31].mxu1  ;;  %v2384_v52 = vld [vmem:[#allocation2 + $0x20] sm:$0x80]  ;;  %v1940_v32 = vrot.slane %v6683_v46, 1 }
 0x357   :  { %v2210_v1 = vld [vmem:[#allocation2 + $0x20] sm:$0xfe]  ;;  %v2388_v31 = vrot.slane %v2384_v52, 7  ;;  %v2104_v44 = vrot.slane %v6683_v46, 7  ;;  %v2022_v10 = vrot.slane %v6683_v46, 2  ;;  %v2391_v50 = vrot.slane %v6690_v14, 7 }
 0x358   :  { %v2224_v38 = vrot.slane %v2210_v1, 1  ;;  %v2302_v41 = vld [vmem:[#allocation2 + $0x20] sm:$0xc0]  ;;  %v2227_v0 = vrot.slane %v6690_v14, 1  ;;  %v1941_v1 = vsel %vm539_vm4, %v1938_v49, %v1940_v32  ;;  %v2309_v9 = vrot.slane %v6690_v14, 6 }
 0x359   :  { %v1816_v3 = vpop.f32.mrb[32].mxu1  ;;  %v6698_v56 = vpop.f32.mrb[24].mxu0  ;;  %2124 = vrot.lane.b32.xlu0 %v2103_v37, %s5112_s16  ;;  %1960 = vrot.lane.b32.xlu1 %v1939_v60, %s5114_s18  ;;  %v2390_v52 = vsel %vm793_vm2, %v2388_v31, %v2389_v55  ;;  %v2306_v27 = vrot.slane %v2302_v41, 6  ;;  %v2105_v12 = vsel %vm793_vm2, %v2102_v59, %v2104_v44  ;;  %v2023_v37 = vsel %vm666_vm3, %v2020_v63, %v2022_v10 }
 0x35a   :  { %1866 = vst.msk [vmem:[#allocation2 + $0x70] sm:$0xff] %vm48_vm0, %v1816_v3  ;;  %v6706_v34 = vpop.f32.mrb[25].mxu0  ;;  %v4726_v15 = vpop.f32.mrb[33].mxu1  ;;  %v2226_v23 = vsel %vm539_vm4, %v2224_v38, %v2225_v24  ;;  %v6712_v60 = vsel %vm793_vm2, %v2389_v55, %v2391_v50  ;;  %v6715_v41 = vsel %vm539_vm4, %v2225_v24, %v2227_v0  ;;  %v6718_v31 = vsel %vm1143_vm5, %v2307_v25, %v2309_v9 }
 0x35b   :  { %v1942_v3 = vrot.slane %v6698_v56, 1  ;;  %v2024_v49 = vrot.slane %v6698_v56, 2  ;;  %v2311_v15 = vrot.slane %v6706_v34, 6  ;;  %v2106_v38 = vrot.slane %v6698_v56, 7 }
 0x35c   :  { %v2393_v59 = vrot.slane %v6706_v34, 7  ;;  %v2229_v63 = vrot.slane %v6706_v34, 1 }
 0x35d   :  { %v1821_v55 = vpop.f32.mrb[34].mxu1  ;;  %v6726_v5 = vpop.f32.mrb[26].mxu0  ;;  %2411 = vrot.lane.b32.xlu0 %v2390_v52, %s5112_s16  ;;  %2247 = vrot.lane.b32.xlu1 %v2226_v23, %s5114_s18  ;;  %v6731_v24 = vsel %vm539_vm4, %v1940_v32, %v1942_v3  ;;  %v6734_v36 = vsel %vm666_vm3, %v2022_v10, %v2024_v49  ;;  %v6740_v19 = vsel %vm1143_vm5, %v2309_v9, %v2311_v15 }
 0x35e   :  { %8795 = vst [vmem:[#allocation113_spill] sm:$0xff] %v6726_v5  ;;  %1869 = vst.msk [vmem:[#allocation2 + $0x88] sm:$0xff] %vm48_vm0, %v1821_v55  ;;  %v6737_v42 = vpop.f32.mrb[27].mxu0  ;;  %v4729_v17 = vpop.f32.mrb[35].mxu1  ;;  %v6743_v40 = vsel %vm793_vm2, %v2104_v44, %v2106_v38  ;;  %v6746_v52 = vsel %vm793_vm2, %v2391_v50, %v2393_v59  ;;  %v6749_v23 = vsel %vm539_vm4, %v2227_v0, %v2229_v63  ;;  %v1944_v10 = vrot.slane %v6726_v5, 1 }
 0x35f   :  { %8796 = vst [vmem:[#allocation114_spill] sm:$0xff] %v6737_v42  ;;  %v2026_v32 = vrot.slane %v6726_v5, 2  ;;  %v2231_v55 = vrot.slane %v6737_v42, 1  ;;  %v2108_v17 = vrot.slane %v6726_v5, 7  ;;  %v2308_v9 = vsel %vm1143_vm5, %v2306_v27, %v2307_v25 }
 0x360   :  { %v2313_v20 = vrot.slane %v6737_v42, 6  ;;  %v2395_v44 = vrot.slane %v6737_v42, 7  ;;  %v6763_v0 = vsel %vm539_vm4, %v1942_v3, %v1944_v10 }
 0x361   :  { %v1826_v7 = vpop.f32.mrb[36].mxu1  ;;  %v6758_v50 = vpop.f32.mrb[28].mxu0  ;;  %2329 = vrot.lane.b32.xlu1 %v2308_v9, %s5113_s17  ;;  %1962 = vrot.lane.b32.xlu0 %v1941_v1, %s5114_s18  ;;  %v6766_v33 = vsel %vm666_vm3, %v2024_v49, %v2026_v32  ;;  %v6769_v26 = vsel %vm539_vm4, %v2229_v63, %v2231_v55  ;;  %v6775_v21 = vsel %vm793_vm2, %v2106_v38, %v2108_v17 }
 0x362   :  { %8797 = vst [vmem:[#allocation115_spill] sm:$0xff] %v6758_v50  ;;  %1872 = vst.msk [vmem:[#allocation2 + $0xa0] sm:$0xff] %vm48_vm0, %v1826_v7  ;;  %v6772_v25 = vpop.f32.mrb[29].mxu0  ;;  %v4732_v27 = vpop.f32.mrb[37].mxu1  ;;  %v6778_v9 = vsel %vm1143_vm5, %v2311_v15, %v2313_v20  ;;  %v6781_v1 = vsel %vm793_vm2, %v2393_v59, %v2395_v44  ;;  %v1946_v3 = vrot.slane %v6758_v50, 1  ;;  %v2110_v49 = vrot.slane %v6758_v50, 7 }
 0x363   :  { %8798 = vst [vmem:[#allocation116_spill] sm:$0xff] %v6772_v25  ;;  %v2028_v63 = vrot.slane %v6758_v50, 2  ;;  %v2315_v7 = vrot.slane %v6772_v25, 6  ;;  %v2233_v29 = vrot.slane %v6772_v25, 1  ;;  %v2397_v38 = vrot.slane %v6772_v25, 7 }
 0x364   :  { %v6789_v27 = vsel %vm539_vm4, %v1944_v10, %v1946_v3  ;;  %v6797_v59 = vsel %vm793_vm2, %v2108_v17, %v2110_v49 }
 0x365   :  { %v1831_v15 = vpop.f32.mrb[38].mxu1  ;;  %v6792_v61 = vpop.f32.mrb[30].mxu0  ;;  %2126 = vrot.lane.b32.xlu1 %v2105_v12, %s5112_s16  ;;  %2044 = vrot.lane.b32.xlu0 %v2023_v37, %s5113_s17  ;;  %v6800_v35 = vsel %vm666_vm3, %v2026_v32, %v2028_v63  ;;  %v6803_v48 = vsel %vm1143_vm5, %v2313_v20, %v2315_v7  ;;  %v6809_v58 = vsel %vm539_vm4, %v2231_v55, %v2233_v29 }
 0x366   :  { %8799 = vst [vmem:[#allocation117_spill] sm:$0xff] %v6792_v61  ;;  %1875 = vst.msk [vmem:[#allocation2 + $0xb8] sm:$0xff] %vm48_vm0, %v1831_v15  ;;  %v6806_v10 = vpop.f32.mrb[31].mxu0  ;;  %v4735_v53 = vpop.f32.mrb[39].mxu1  ;;  %v6812_v12 = vsel %vm793_vm2, %v2395_v44, %v2397_v38  ;;  %v2030_v37 = vrot.slane %v6792_v61, 2  ;;  %v2112_v17 = vrot.slane %v6792_v61, 7 }
 0x367   :  { %8800 = vst [vmem:[#allocation118_spill] sm:$0xff] %v6806_v10  ;;  %v1948_v32 = vrot.slane %v6792_v61, 1  ;;  %v2317_v20 = vrot.slane %v6806_v10, 6  ;;  %v2235_v16 = vrot.slane %v6806_v10, 1  ;;  %v2399_v15 = vrot.slane %v6806_v10, 7 }
 0x368   :  { %v6821_v53 = vsel %vm666_vm3, %v2028_v63, %v2030_v37  ;;  %v6824_v55 = vsel %vm793_vm2, %v2110_v49, %v2112_v17 }
 0x369   :  { %v1836_v44 = vpop.f32.mrb[40].mxu1  ;;  %v6826_v45 = vpop.f32.mrb[32].mxu0  ;;  %2413 = vrot.lane.b32.xlu1 %v6712_v60, %s5112_s16  ;;  %2249 = vrot.lane.b32.xlu0 %v6715_v41, %s5114_s18  ;;  %v6833_v30 = vsel %vm539_vm4, %v1946_v3, %v1948_v32  ;;  %v6836_v61 = vsel %vm1143_vm5, %v2315_v7, %v2317_v20  ;;  %v6839_v63 = vsel %vm539_vm4, %v2233_v29, %v2235_v16 }
 0x36a   :  { %8801 = vst [vmem:[#allocation119_spill] sm:$0xff] %v6826_v45  ;;  %1878 = vst.msk [vmem:[#allocation2 + $0xd0] sm:$0xff] %vm48_vm0, %v1836_v44  ;;  %v6842_v49 = vpop.f32.mrb[33].mxu0  ;;  %v4738_v10 = vpop.f32.mrb[41].mxu1  ;;  %v6845_v4 = vsel %vm793_vm2, %v2397_v38, %v2399_v15  ;;  %v1950_v60 = vrot.slane %v6826_v45, 1  ;;  %v2114_v41 = vrot.slane %v6826_v45, 7 }
 0x36b   :  { %8802 = vst [vmem:[#allocation120_spill] sm:$0xff] %v6842_v49  ;;  %v2032_v3 = vrot.slane %v6826_v45, 2  ;;  %v2401_v7 = vrot.slane %v6842_v49, 7  ;;  %v2237_v50 = vrot.slane %v6842_v49, 1  ;;  %v2319_v29 = vrot.slane %v6842_v49, 6 }
 0x36c   :  { %v6854_v44 = vsel %vm539_vm4, %v1948_v32, %v1950_v60  ;;  %v6857_v10 = vsel %vm793_vm2, %v2112_v17, %v2114_v41 }
 0x36d   :  { %v6860_v38 = vsel %vm666_vm3, %v2030_v37, %v2032_v3  ;;  %v1841_v54 = vpop.f32.mrb[42].mxu1  ;;  %v6862_v25 = vpop.f32.mrb[34].mxu0  ;;  %2331 = vrot.lane.b32.xlu0 %v6718_v31, %s5113_s17  ;;  %1964 = vrot.lane.b32.xlu1 %v6731_v24, %s5114_s18  ;;  %v6869_v45 = vsel %vm793_vm2, %v2399_v15, %v2401_v7  ;;  %v6872_v32 = vsel %vm539_vm4, %v2235_v16, %v2237_v50 }
 0x36e   :  { %8803 = vst [vmem:[#allocation121_spill] sm:$0xff] %v6862_v25  ;;  %v6875_v17 = vsel %vm1143_vm5, %v2317_v20, %v2319_v29  ;;  %1881 = vst.msk [vmem:[#allocation2 + $0xe8] sm:$0xff] %vm48_vm0, %v1841_v54  ;;  %v6878_v37 = vpop.f32.mrb[35].mxu0  ;;  %v4741_v49 = vpop.f32.mrb[43].mxu1  ;;  %v1952_v6 = vrot.slane %v6862_v25, 1  ;;  %v2034_v31 = vrot.slane %v6862_v25, 2 }
 0x36f   :  { %8804 = vst [vmem:[#allocation122_spill] sm:$0xff] %v6878_v37  ;;  %v2116_v24 = vrot.slane %v6862_v25, 7  ;;  %v2321_v15 = vrot.slane %v6878_v37, 6  ;;  %v2239_v57 = vrot.slane %v6878_v37, 1  ;;  %v2403_v16 = vrot.slane %v6878_v37, 7 }
 0x370   :  { %v6887_v20 = vsel %vm539_vm4, %v1950_v60, %v1952_v6  ;;  %v6890_v54 = vsel %vm666_vm3, %v2032_v3, %v2034_v31 }
 0x371   :  { %v6893_v49 = vsel %vm793_vm2, %v2114_v41, %v2116_v24  ;;  %v1846_v43 = vpop.f32.mrb[44].mxu1  ;;  %v6895_v5 = vpop.f32.mrb[36].mxu0  ;;  %2046 = vrot.lane.b32.xlu0 %v6734_v36, %s5113_s17  ;;  %2333 = vrot.lane.b32.xlu1 %v6740_v19, %s5113_s17  ;;  %v2322_v25 = vsel %vm1143_vm5, %v2319_v29, %v2321_v15  ;;  %v2240_v60 = vsel %vm539_vm4, %v2237_v50, %v2239_v57 }
 0x372   :  { %v2404_v37 = vsel %vm793_vm2, %v2401_v7, %v2403_v16  ;;  %1884 = vst.msk [vmem:[#allocation2 + $0x100] sm:$0xff] %vm48_vm0, %v1846_v43  ;;  %v6905_v3 = vpop.f32.mrb[37].mxu0  ;;  %v4744_v41 = vpop.f32.mrb[45].mxu1  ;;  %v8496_v39 = vrot.slane %v6895_v5, 1  ;;  %v8497_v2 = vrot.slane %v6895_v5, 2  ;;  %v8498_v36 = vrot.slane %v6895_v5, 7 }
 0x373   :  { %8805 = vst [vmem:[#allocation123_spill] sm:$0xff] %v6905_v3  ;;  %v2241_v42 = vrot.slane %v6905_v3, 1  ;;  %v2323_v19 = vrot.slane %v6905_v3, 6  ;;  %v2405_v29 = vrot.slane %v6905_v3, 7 }
 0x374   :  { %v1955_v50 = vsel %vm539_vm4, %v1952_v6, %v8496_v39  ;;  %v2037_v43 = vsel %vm666_vm3, %v2034_v31, %v8497_v2  ;;  %v2119_v7 = vsel %vm793_vm2, %v2116_v24, %v8498_v36 }
 0x375   :  { %v1851_v41 = vpop.f32.mrb[46].mxu1  ;;  %v1730_v51 = vpop.f32.mrb[38].mxu0  ;;  %2128 = vrot.lane.b32.xlu0 %v6743_v40, %s5112_s16  ;;  %2415 = vrot.lane.b32.xlu1 %v6746_v52, %s5112_s16  ;;  %v2242_v3 = vsel %vm539_vm4, %v2239_v57, %v2241_v42  ;;  %v2324_v6 = vsel %vm1143_vm5, %v2321_v15, %v2323_v19  ;;  %v2406_v39 = vsel %vm793_vm2, %v2403_v16, %v2405_v29 }
 0x376   :  { %1887 = vst.msk [vmem:[#allocation2 + $0x118] sm:$0xff] %vm48_vm0, %v1851_v41  ;;  %1885 = vst [vmem:[#allocation2 + $0x108] sm:$0xff] %v1730_v51  ;;  %v6930_v31 = vpop.f32.mrb[39].mxu0  ;;  %v4747_v24 = vpop.f32.mrb[47].mxu1 }
 0x377   :  { %v2243_v2 = vrot.slane %v6930_v31, 1  ;;  %v2325_v36 = vrot.slane %v6930_v31, 6  ;;  %v2407_v40 = vrot.slane %v6930_v31, 7 }
 0x379   :  { %2251 = vrot.lane.b32.xlu0 %v6749_v23, %s5114_s18  ;;  %1966 = vrot.lane.b32.xlu1 %v6763_v0, %s5114_s18  ;;  %v2244_v57 = vsel %vm539_vm4, %v2241_v42, %v2243_v2  ;;  %v2326_v51 = vsel %vm1143_vm5, %v2323_v19, %v2325_v36  ;;  %v6948_v52 = vsel %vm793_vm2, %v2405_v29, %v2407_v40  ;;  %v8807_v42 = vrot.slane %v6895_v5, 1  ;;  %v2211_v0 = vld [vmem:[#allocation2 + $0x128] sm:$0x1] }
 0x37d   :  { %2048 = vrot.lane.b32.xlu1 %v6766_v33, %s5113_s17  ;;  %2253 = vrot.lane.b32.xlu0 %v6769_v26, %s5114_s18  ;;  %v2096_v33 = vld [vmem:[#allocation2 + $0x108] sm:$0x7f] }
 0x37e   :  { %v1922_v26 = vld [vmem:[#allocation2 + $0x108] sm:$0x1] }
 0x381   :  { %2130 = vrot.lane.b32.xlu1 %v6775_v21, %s5112_s16  ;;  %2335 = vrot.lane.b32.xlu0 %v6778_v9, %s5113_s17  ;;  %v8808_v9 = vld [vmem:[#allocation4_spill] sm:$0xff] }
 0x385   :  { %2417 = vrot.lane.b32.xlu1 %v6781_v1, %s5112_s16  ;;  %1968 = vrot.lane.b32.xlu0 %v6789_v27, %s5114_s18 }
 0x389   :  { %2132 = vrot.lane.b32.xlu1 %v6797_v59, %s5112_s16  ;;  %2050 = vrot.lane.b32.xlu0 %v6800_v35, %s5113_s17  ;;  %v1956_v35 = vrot.slane %v1922_v26, 1  ;;  %v7021_v59 = vld [vmem:[#allocation2] sm:$0xff] }
 0x38d   :  { %2337 = vrot.lane.b32.xlu0 %v6803_v48, %s5113_s17  ;;  %2255 = vrot.lane.b32.xlu1 %v6809_v58, %s5114_s18  ;;  %v2014_v48 = vld [vmem:[#allocation2 + $0x108] sm:$0x3] }
 0x38e   :  { %v2038_v23 = vrot.slane %v2014_v48, 2  ;;  %v2188_v48 = vmul.f32 %v6661_v11, %v8776_v18 }
 0x391   :  { %2419 = vrot.lane.b32.xlu1 %v6812_v12, %s5112_s16  ;;  %2052 = vrot.lane.b32.xlu0 %v6821_v53, %s5113_s17  ;;  %v8809_v12 = vld [vmem:[#allocation33_spill] sm:$0xff] }
 0x392   :  { %v1899_v53 = vmul.f32 %v7021_v59, %v8809_v12 }
 0x395   :  { %2134 = vrot.lane.b32.xlu0 %v6824_v55, %s5112_s16  ;;  %1970 = vrot.lane.b32.xlu1 %v6833_v30, %s5114_s18  ;;  %v1957_v30 = vsel %vm539_vm4, %v8807_v42, %v1956_v35  ;;  %v8810_v55 = vrot.slane %v6895_v5, 2  ;;  %v8818_v42 = vld [vmem:[#allocation6_spill] sm:$0xff] }
 0x399   :  { %2339 = vrot.lane.b32.xlu0 %v6836_v61, %s5113_s17  ;;  %2257 = vrot.lane.b32.xlu1 %v6839_v63, %s5114_s18  ;;  %v2120_v61 = vrot.slane %v2096_v33, 7  ;;  %v2039_v63 = vsel %vm666_vm3, %v8810_v55, %v2038_v23  ;;  %v8821_v55 = vld [vmem:[#allocation9_spill] sm:$0xff] }
 0x39d   :  { %2421 = vrot.lane.b32.xlu0 %v6845_v4, %s5112_s16  ;;  %1972 = vrot.lane.b32.xlu1 %v6854_v44, %s5114_s18  ;;  %v2245_v44 = vrot.slane %v2211_v0, 1  ;;  %v8819_v0 = vld [vmem:[#allocation23_spill] sm:$0xff] }
 0x39f   :  { %v2246_v19 = vsel %vm539_vm4, %v2243_v2, %v2245_v44 }
 0x3a1   :  { %2136 = vrot.lane.b32.xlu0 %v6857_v10, %s5112_s16  ;;  %2054 = vrot.lane.b32.xlu1 %v6860_v38, %s5113_s17  ;;  %v2385_v38 = vld [vmem:[#allocation2 + $0x128] sm:$0x7f] }
 0x3a5   :  { %2423 = vrot.lane.b32.xlu0 %v6869_v45, %s5112_s16  ;;  %2259 = vrot.lane.b32.xlu1 %v6872_v32, %s5114_s18  ;;  %v8806_v45 = vrot.slane %v6895_v5, 7 }
 0x3a7   :  { %v2121_v21 = vsel %vm793_vm2, %v8806_v45, %v2120_v61  ;;  %v2189_v45 = vmul.f32 %v6674_v22, %v8778_v47 }
 0x3a9   :  { %2341 = vrot.lane.b32.xlu1 %v6875_v17, %s5113_s17  ;;  %1974 = vrot.lane.b32.xlu0 %v6887_v20, %s5114_s18  ;;  %v2409_v20 = vrot.slane %v2385_v38, 7 }
 0x3ab   :  { %v2410_v2 = vsel %vm793_vm2, %v2407_v40, %v2409_v20 }
 0x3ad   :  { %2056 = vrot.lane.b32.xlu1 %v6890_v54, %s5113_s17  ;;  %2138 = vrot.lane.b32.xlu0 %v6893_v49, %s5112_s16  ;;  %v8812_v54 = vld [vmem:[#allocation71_spill] sm:$0xff] }
 0x3b1   :  { %2343 = vrot.lane.b32.xlu1 %v2322_v25, %s5113_s17  ;;  %2261 = vrot.lane.b32.xlu0 %v2240_v60, %s5114_s18  ;;  %v2303_v25 = vld [vmem:[#allocation2 + $0x128] sm:$0x3f] }
 0x3b2   :  { %v2327_v10 = vrot.slane %v2303_v25, 6  ;;  %v8813_v60 = vld [vmem:[#allocation5_spill] sm:$0xff]  ;;  %v8820_v25 = vld [vmem:[#allocation42_spill] sm:$0xff] }
 0x3b4   :  { %v2328_v29 = vsel %vm1143_vm5, %v2325_v36, %v2327_v10  ;;  %v8822_v10 = vld [vmem:[#allocation13_spill] sm:$0xff] }
 0x3b5   :  { %2425 = vrot.lane.b32.xlu1 %v2404_v37, %s5112_s16  ;;  %1976 = vrot.lane.b32.xlu0 %v1955_v50, %s5114_s18  ;;  %v8811_v37 = vld [vmem:[#allocation38_spill] sm:$0xff] }
 0x3b6   :  { %v1900_v15 = vmul.f32 %v6659_v62, %v8811_v37  ;;  %v8814_v62 = vld [vmem:[#allocation10_spill] sm:$0xff] }
 0x3b9   :  { %2058 = vrot.lane.b32.xlu1 %v2037_v43, %s5113_s17  ;;  %2263 = vrot.lane.b32.xlu0 %v2242_v3, %s5114_s18 }
 0x3bd   :  { %2140 = vrot.lane.b32.xlu1 %v2119_v7, %s5112_s16  ;;  %2345 = vrot.lane.b32.xlu0 %v2324_v6, %s5113_s17  ;;  %v8815_v7 = vld [vmem:[#allocation7_spill] sm:$0xff] }
 0x3c1   :  { %2427 = vrot.lane.b32.xlu0 %v2406_v39, %s5112_s16  ;;  %2142 = vrot.lane.b32.xlu1 %v2121_v21, %s5112_s16 }
 0x3c3   :  { %v2041_v4 = vpop.permute.xlu1 %2040  ;;  %v1959_v58 = vpop.permute.xlu0 %1958 }
 0x3c4   :  { %v1991_v1 = vmul.f32 %v1959_v58, %v8808_v9  ;;  %v2073_v49 = vmul.f32 %v2041_v4, %v8812_v54  ;;  %v8817_v4 = vld [vmem:[#allocation18_spill] sm:$0xff] }
 0x3c5   :  { %1978 = vrot.lane.b32.xlu0 %v1957_v30, %s5114_s18  ;;  %2265 = vrot.lane.b32.xlu1 %v2244_v57, %s5114_s18 }
 0x3c6   :  { %v2002_v32 = vadd.f32 %v1991_v1, %v1899_v53  ;;  %v1901_v1 = vmul.f32 %v6669_v13, %v8820_v25  ;;  %v8824_v13 = vld [vmem:[#allocation78_spill] sm:$0xff] }
 0x3c7   :  { %v2123_v27 = vpop.permute.xlu1 %2122  ;;  %v2043_v39 = vpop.permute.xlu0 %2042  ;;  %v8863_v25 = vld [vmem:[#allocation50_spill] sm:$0xff] }
 0x3c8   :  { %v2084_v50 = vadd.f32 %v2073_v49, %v2002_v32  ;;  %v2155_v43 = vmul.f32 %v2123_v27, %v8814_v62  ;;  %v2074_v41 = vmul.f32 %v2043_v39, %v8815_v7  ;;  %v2190_v49 = vmul.f32 %v6690_v14, %v8781_v28  ;;  %v8828_v14 = vld [vmem:[#allocation60_spill] sm:$0xff] }
 0x3c9   :  { %2060 = vrot.lane.b32.xlu0 %v2039_v63, %s5113_s17  ;;  %2347 = vrot.lane.b32.xlu1 %v2326_v51, %s5113_s17  ;;  %v8816_v51 = vld [vmem:[#allocation82_spill] sm:$0xff] }
 0x3ca   :  { %v2166_v36 = vadd.f32 %v2155_v43, %v2084_v50 }
 0x3cb   :  { %v2125_v17 = vpop.permute.xlu0 %2124  ;;  %v1961_v16 = vpop.permute.xlu1 %1960 }
 0x3cc   :  { %v1992_v3 = vmul.f32 %v1961_v16, %v8813_v60  ;;  %v2156_v33 = vmul.f32 %v2125_v17, %v8816_v51  ;;  %v2199_v23 = vadd.f32 %v2188_v48, %v2166_v36  ;;  %v2467_v36 = vld [vmem:[#allocation2 + $0x58] sm:$0xff] }
 0x3cd   :  { %2267 = vrot.lane.b32.xlu0 %v2246_v19, %s5114_s18  ;;  %2349 = vrot.lane.b32.xlu1 %v2328_v29, %s5113_s17 }
 0x3ce   :  { %v2003_v6 = vadd.f32 %v1992_v3, %v1900_v15  ;;  %v8823_v15 = vld [vmem:[#allocation43_spill] sm:$0xff]  ;;  %v2466_v3 = vld [vmem:[#allocation2 + $0x40] sm:$0xff] }
 0x3cf   :  { %v2412_v24 = vpop.permute.xlu0 %2411  ;;  %v2248_v57 = vpop.permute.xlu1 %2247 }
 0x3d0   :  { %v2085_v61 = vadd.f32 %v2074_v41, %v2003_v6  ;;  %v2280_v58 = vmul.f32 %v2248_v57, %v8817_v4  ;;  %v2444_v16 = vmul.f32 %v2412_v24, %v8823_v15  ;;  %v8825_v6 = vld [vmem:[#allocation66_spill] sm:$0xff] }
 0x3d1   :  { %2429 = vrot.lane.b32.xlu0 %v6948_v52, %s5112_s16  ;;  %2431 = vrot.lane.b32.xlu1 %v2410_v2, %s5112_s16  ;;  %v2477_v57 = vmul.f32 %v2466_v3, %v8825_v6  ;;  %v8827_v24 = vld [vmem:[#allocation46_spill] sm:$0xff] }
 0x3d2   :  { %v2167_v26 = vadd.f32 %v2156_v33, %v2085_v61  ;;  %v2291_v53 = vadd.f32 %v2280_v58, %v2199_v23  ;;  %v8826_v61 = vld [vmem:[#allocation44_spill] sm:$0xff] }
 0x3d3   :  { %v2330_v21 = vpop.permute.xlu1 %2329  ;;  %v1963_v35 = vpop.permute.xlu0 %1962 }
 0x3d4   :  { %v1993_v30 = vmul.f32 %v1963_v35, %v8818_v42  ;;  %v2200_v40 = vadd.f32 %v2189_v45, %v2167_v26  ;;  %v2362_v52 = vmul.f32 %v2330_v21, %v8819_v0  ;;  %v2469_v42 = vld [vmem:[#allocation2 + $0x88] sm:$0xff] }
 0x3d6   :  { %v2004_v22 = vadd.f32 %v1993_v30, %v1901_v1  ;;  %v2373_v44 = vadd.f32 %v2362_v52, %v2291_v53  ;;  %v8829_v30 = vld [vmem:[#allocation68_spill] sm:$0xff] }
 0x3d7   :  { %v2127_v27 = vpop.permute.xlu1 %2126  ;;  %v2045_v39 = vpop.permute.xlu0 %2044  ;;  %v2478_v23 = vmul.f32 %v2467_v36, %v8829_v30  ;;  %v8830_v1 = vld [vmem:[#allocation8_spill] sm:$0xff] }
 0x3d8   :  { %v2075_v63 = vmul.f32 %v2045_v39, %v8821_v55  ;;  %v2157_v11 = vmul.f32 %v2127_v27, %v8822_v10  ;;  %v2455_v29 = vadd.f32 %v2444_v16, %v2373_v44  ;;  %v1902_v27 = vmul.f32 %v6683_v46, %v8830_v1  ;;  %v8832_v16 = vld [vmem:[#allocation84_spill] sm:$0xff] }
 0x3d9   :  { %v8833_v36 = vld [vmem:[#allocation12_spill] sm:$0xff] }
 0x3da   :  { %v2086_v38 = vadd.f32 %v2075_v63, %v2004_v22  ;;  %v7070_v26 = vadd.f32 %v2477_v57, %v2455_v29 }
 0x3db   :  { %v2414_v32 = vpop.permute.xlu1 %2413  ;;  %v2250_v17 = vpop.permute.xlu0 %2249 }
 0x3dc   :  { %v2168_v20 = vadd.f32 %v2157_v11, %v2086_v38  ;;  %v2281_v19 = vmul.f32 %v2250_v17, %v8824_v13  ;;  %v2445_v45 = vmul.f32 %v2414_v32, %v8827_v24  ;;  %v2527_v53 = vmul.f32 %v7070_v26, %v7070_v26  ;;  %v8846_v24 = vld [vmem:[#allocation116_spill] sm:$0xff]  ;;  %v8854_v13 = vld [vmem:[#allocation26_spill] sm:$0xff] }
 0x3dd   :  { %v2499_v44 = vsel %vm48_vm0, %v7070_v26, 0.0 }
 0x3de   :  { %v7066_v50 = vadd.f32 %v2190_v49, %v2168_v20  ;;  %v2292_v33 = vadd.f32 %v2281_v19, %v2200_v40  ;;  %v8831_v40 = vld [vmem:[#allocation73_spill] sm:$0xff]  ;;  %v2538_v3 = vsel %vm48_vm0, %v2527_v53, 0.0 }
 0x3df   :  { %v2332_v43 = vpop.permute.xlu0 %2331  ;;  %v1965_v41 = vpop.permute.xlu1 %1964 }
 0x3e0   :  { %v2363_v2 = vmul.f32 %v2332_v43, %v8826_v61  ;;  %v1994_v35 = vmul.f32 %v1965_v41, %v8828_v14  ;;  %v2191_v43 = vmul.f32 %v6706_v34, %v8783_v8 }
 0x3e2   :  { %v2374_v21 = vadd.f32 %v2363_v2, %v2292_v33  ;;  %v2005_v63 = vadd.f32 %v1994_v35, %v1902_v27 }
 0x3e3   :  { %v2047_v48 = vpop.permute.xlu0 %2046  ;;  %v7074_v58 = vpop.permute.xlu1 %2333 }
 0x3e4   :  { %v2456_v52 = vadd.f32 %v2445_v45, %v2374_v21  ;;  %v2076_v39 = vmul.f32 %v2047_v48, %v8831_v40  ;;  %v8834_v48 = vld [vmem:[#allocation11_spill] sm:$0xff]  ;;  %v2364_v0 = vmul.f32 %v7074_v58, %v8863_v25  ;;  %v8869_v58 = vld [vmem:[#allocation56_spill] sm:$0xff]  ;;  %v8871_v25 = vld [vmem:[#allocation102_spill] sm:$0xff] }
 0x3e6   :  { %v7082_v22 = vadd.f32 %v2478_v23, %v2456_v52  ;;  %v2087_v17 = vadd.f32 %v2076_v39, %v2005_v63  ;;  %v1903_v23 = vmul.f32 %v6698_v56, %v8834_v48  ;;  %v8835_v52 = vld [vmem:[#allocation16_spill] sm:$0xff] }
 0x3e7   :  { %v2129_v11 = vpop.permute.xlu0 %2128  ;;  %v7086_v38 = vpop.permute.xlu1 %2415  ;;  %v4532_v56 = vld [vmem:[%s8276_s3 + $0xe0] sm:$0xff] }
 0x3e8   :  { %v2500_v32 = vsel %vm48_vm0, %v7082_v22, 0.0  ;;  %v2528_v46 = vmul.f32 %v7082_v22, %v7082_v22  ;;  %v2158_v20 = vmul.f32 %v2129_v11, %v8832_v16  ;;  %v8844_v16 = vld [vmem:[#allocation87_spill] sm:$0xff] }
 0x3e9   :  { %v7093_v49 = vadd.f32 %v2500_v32, %v2499_v44  ;;  %v8836_v44 = vld [vmem:[#allocation21_spill] sm:$0xff] }
 0x3ea   :  { %v2539_v19 = vsel %vm48_vm0, %v2528_v46, 0.0  ;;  %v2169_v29 = vadd.f32 %v2158_v20, %v2087_v17  ;;  %v8837_v46 = vld [vmem:[#allocation35_spill] sm:$0xff]  ;;  %v8838_v17 = vld [vmem:[#allocation114_spill] sm:$0xff] }
 0x3eb   :  { %v7099_v41 = vadd.f32 %v2539_v19, %v2538_v3  ;;  %v7101_v57 = vpop.permute.xlu0 %2251  ;;  %v1967_v33 = vpop.permute.xlu1 %1966  ;;  %v2192_v20 = vmul.f32 %v8838_v17, %v8837_v46  ;;  %v4529_v3 = vld [vmem:[%s8276_s3 + $0xc8] sm:$0xff]  ;;  %v4528_v19 = vld [vmem:[%s8276_s3 + $0xc0] sm:$0xff]  ;;  %v4534_v17 = vld [vmem:[%s8276_s3 + $0xf0] sm:$0xff] }
 0x3ec   :  { %v7103_v2 = vadd.f32 %v2191_v43, %v2169_v29  ;;  %v1995_v45 = vmul.f32 %v1967_v33, %v8833_v36  ;;  %v4908_v33 = vpack.c.bf16 %v4532_v56, %v4529_v3 }
 0x3ee   :  { %v2006_v39 = vadd.f32 %v1995_v45, %v1903_v23  ;;  %v4531_v45 = vld [vmem:[%s8276_s3 + $0xd8] sm:$0xff]  ;;  %v4533_v23 = vld [vmem:[%s8276_s3 + $0xe8] sm:$0xff]  ;;  %4909 = vmatprep.subr.bf16.mxu0 %v4908_v33 }
 0x3ef   :  { %v2049_v21 = vpop.permute.xlu1 %2048  ;;  %v7106_v35 = vpop.permute.xlu0 %2253  ;;  %v4910_v3 = vpack.c.bf16 %v4531_v45, %v4528_v19 }
 0x3f0   :  { %v2077_v27 = vmul.f32 %v2049_v21, %v8835_v52  ;;  %v4530_v21 = vld [vmem:[%s8276_s3 + $0xd0] sm:$0xff]  ;;  %v8841_v52 = vld [vmem:[#allocation113_spill] sm:$0xff] }
 0x3f1   :  { %v4917_v56 = vpack.c.bf16 %v4533_v23, %v4530_v21  ;;  %4911 = vmatpush1.bf16.msra.mxu0 %v4910_v3  ;;  %v8842_v23 = vld [vmem:[#allocation20_spill] sm:$0xff] }
 0x3f2   :  { %v2088_v63 = vadd.f32 %v2077_v27, %v2006_v39  ;;  %v8839_v27 = vld [vmem:[#allocation15_spill] sm:$0xff] }
 0x3f3   :  { %v2131_v53 = vpop.permute.xlu1 %2130  ;;  %v7111_v34 = vpop.permute.xlu0 %2335  ;;  %4918 = vmatpush3.bf16.msra.mxu1 %v4917_v56 }
 0x3f4   :  { %v2159_v11 = vmul.f32 %v2131_v53, %v8836_v44 }
 0x3f6   :  { %v2170_v32 = vadd.f32 %v2159_v11, %v2088_v63  ;;  %v4535_v63 = vld [vmem:[%s8276_s3 + $0xf8] sm:$0xff]  ;;  %v4538_v11 = vld [vmem:[%s8276_s3 + $0x110] sm:$0xff] }
 0x3f7   :  { %v7125_v29 = vpop.permute.xlu1 %2417  ;;  %v1969_v43 = vpop.permute.xlu0 %1968  ;;  %v4912_v44 = vpack.c.bf16 %v4538_v11, %v4535_v63  ;;  %v8843_v11 = vmov 0.0|0.0  }
 0x3f8   :  { %v1996_v39 = vmul.f32 %v1969_v43, %v8839_v27  ;;  %v7137_v53 = vadd.f32 %v2192_v20, %v2170_v32  ;;  %v4537_v32 = vld [vmem:[%s8276_s3 + $0x108] sm:$0xff]  ;;  %v4536_v20 = vld [vmem:[%s8276_s3 + $0x100] sm:$0xff]  ;;  %v4539_v43 = vld [vmem:[%s8276_s3 + $0x118] sm:$0xff]  ;;  %4919 = vmatprep.subr.bf16.mxu1 %v8843_v11 }
 0x3f9   :  { %v8840_v27 = vld [vmem:[#allocation45_spill] sm:$0xff]  ;;  %v4914_v19 = vpack.c.bf16 %v4537_v32, %v4534_v17  ;;  %v4920_v45 = vpack.c.bf16 %v4539_v43, %v4536_v20  ;;  %4913 = vmatprep.subr.bf16.mxu0 %v4912_v44  ;;  %v8847_v32 = vld [vmem:[#allocation19_spill] sm:$0xff]  ;;  %v8849_v43 = vld [vmem:[#allocation62_spill] sm:$0xff] }
 0x3fa   :  { %v1904_v48 = vmul.f32 %v8841_v52, %v8840_v27  ;;  %v8845_v27 = vld [vmem:[#allocation31_spill] sm:$0xff] }
 0x3fb   :  { %v2133_v36 = vpop.permute.xlu1 %2132  ;;  %v2051_v33 = vpop.permute.xlu0 %2050  ;;  %4915 = vmatpush1.bf16.msra.mxu0 %v4914_v19  ;;  %4921 = vmatpush3.bf16.msra.mxu1 %v4920_v45  ;;  %v2193_v3 = vmul.f32 %v8846_v24, %v8845_v27  ;;  %v8850_v19 = vld [vmem:[#allocation30_spill] sm:$0xff]  ;;  %v8851_v24 = vld [vmem:[#allocation61_spill] sm:$0xff] }
 0x3fc   :  { %v2007_v21 = vadd.f32 %v1996_v39, %v1904_v48  ;;  %v2078_v63 = vmul.f32 %v2051_v33, %v8842_v23  ;;  %v2160_v40 = vmul.f32 %v2133_v36, %v8844_v16  ;;  %4922 = vmatprep.subr.bf16.mxu0 %v8843_v11  ;;  %4928 = vmatprep.subr.bf16.mxu1 %v8843_v11  ;;  %v8848_v36 = vld [vmem:[#allocation115_spill] sm:$0xff]  ;;  %v8852_v11 = vld [vmem:[#allocation28_spill] sm:$0xff] }
 0x3fd   :  { %v1905_v20 = vmul.f32 %v8848_v36, %v8847_v32  ;;  %v8855_v36 = vld [vmem:[#allocation58_spill] sm:$0xff]  ;;  %v8856_v32 = vld [vmem:[#allocation117_spill] sm:$0xff] }
 0x3fe   :  { %v2089_v1 = vadd.f32 %v2078_v63, %v2007_v21 }
 0x3ff   :  { %v2338_v30 = vpop.permute.xlu0 %2337  ;;  %v2256_v14 = vpop.permute.xlu1 %2255 }
 0x400   :  { %v2171_v52 = vadd.f32 %v2160_v40, %v2089_v1 }
 0x402   :  { %v2204_v48 = vadd.f32 %v2193_v3, %v2171_v52  ;;  %v8853_v52 = vld [vmem:[#allocation118_spill] sm:$0xff] }
 0x403   :  { %v2420_v39 = vpop.permute.xlu1 %2419  ;;  %v2053_v44 = vpop.permute.xlu0 %2052  ;;  %v2194_v3 = vmul.f32 %v8853_v52, %v8852_v11 }
 0x404   :  { %v2079_v45 = vmul.f32 %v2053_v44, %v8850_v19 }
 0x407   :  { %v2135_v17 = vpop.permute.xlu0 %2134  ;;  %v1971_v56 = vpop.permute.xlu1 %1970 }
 0x408   :  { %v1997_v33 = vmul.f32 %v1971_v56, %v8849_v43  ;;  %v2161_v63 = vmul.f32 %v2135_v17, %v8851_v24  ;;  %v1906_v56 = vmul.f32 %v8856_v32, %v8855_v36  ;;  %v8858_v17 = vld [vmem:[#allocation59_spill] sm:$0xff] }
 0x409   :  { %v8862_v32 = vld [vmem:[#allocation63_spill] sm:$0xff] }
 0x40a   :  { %v2008_v1 = vadd.f32 %v1997_v33, %v1905_v20  ;;  %v8857_v20 = vld [vmem:[#allocation22_spill] sm:$0xff]  ;;  %v2284_v36 = vmul.f32 %v2256_v14, %v8862_v32  ;;  %v8868_v14 = vld [vmem:[#allocation100_spill] sm:$0xff] }
 0x40b   :  { %v2340_v40 = vpop.permute.xlu0 %2339  ;;  %v2258_v21 = vpop.permute.xlu1 %2257  ;;  %v2282_v33 = vmul.f32 %v7101_v57, %v8857_v20  ;;  %v2468_v32 = vld [vmem:[#allocation2 + $0x70] sm:$0xff] }
 0x40c   :  { %v2090_v16 = vadd.f32 %v2079_v45, %v2008_v1 }
 0x40d   :  { %v2293_v55 = vadd.f32 %v2282_v33, %v7066_v50  ;;  %v8867_v33 = vld [vmem:[#allocation65_spill] sm:$0xff] }
 0x40e   :  { %v2172_v23 = vadd.f32 %v2161_v63, %v2090_v16  ;;  %v8859_v16 = vld [vmem:[#allocation74_spill] sm:$0xff] }
 0x40f   :  { %v2422_v61 = vpop.permute.xlu0 %2421  ;;  %v1973_v6 = vpop.permute.xlu1 %1972 }
 0x410   :  { %v1998_v15 = vmul.f32 %v1973_v6, %v8854_v13  ;;  %v2205_v10 = vadd.f32 %v2194_v3, %v2172_v23  ;;  %v8860_v23 = vld [vmem:[#allocation51_spill] sm:$0xff]  ;;  %v8861_v3 = vld [vmem:[#allocation120_spill] sm:$0xff] }
 0x411   :  { %v2195_v13 = vmul.f32 %v8861_v3, %v8860_v23  ;;  %v2446_v3 = vmul.f32 %v7086_v38, %v8868_v14 }
 0x412   :  { %v2009_v19 = vadd.f32 %v1998_v15, %v1906_v56  ;;  %v8864_v15 = vld [vmem:[#allocation39_spill] sm:$0xff] }
 0x413   :  { %v2137_v43 = vpop.permute.xlu0 %2136  ;;  %v2055_v44 = vpop.permute.xlu1 %2054  ;;  %v2283_v56 = vmul.f32 %v7106_v35, %v8864_v15  ;;  %v8874_v15 = vld [vmem:[#allocation72_spill] sm:$0xff] }
 0x414   :  { %v2080_v45 = vmul.f32 %v2055_v44, %v8858_v17  ;;  %v2162_v1 = vmul.f32 %v2137_v43, %v8859_v16  ;;  %v8865_v44 = vld [vmem:[#allocation75_spill] sm:$0xff]  ;;  %v2375_v16 = vadd.f32 %v2364_v0, %v2293_v55  ;;  %v8866_v17 = vld [vmem:[#allocation64_spill] sm:$0xff] }
 0x415   :  { %v2285_v43 = vmul.f32 %v2258_v21, %v8865_v44  ;;  %v2294_v35 = vadd.f32 %v2283_v56, %v7103_v2  ;;  %v2447_v21 = vmul.f32 %v7125_v29, %v8871_v25  ;;  %v8872_v44 = vld [vmem:[#allocation77_spill] sm:$0xff]  ;;  %v8876_v2 = vld [vmem:[#allocation88_spill] sm:$0xff]  ;;  %v8877_v29 = vld [vmem:[#allocation91_spill] sm:$0xff] }
 0x416   :  { %v2091_v63 = vadd.f32 %v2080_v45, %v2009_v19  ;;  %v2366_v0 = vmul.f32 %v2338_v30, %v8872_v44  ;;  %v2367_v56 = vmul.f32 %v2340_v40, %v8876_v2  ;;  %v8879_v44 = vld [vmem:[#allocation79_spill] sm:$0xff] }
 0x417   :  { %v2424_v52 = vpop.permute.xlu0 %2423  ;;  %v2260_v24 = vpop.permute.xlu1 %2259  ;;  %v2296_v55 = vadd.f32 %v2285_v43, %v2204_v48  ;;  %v8878_v48 = vld [vmem:[#allocation85_spill] sm:$0xff]  ;;  %v2479_v4 = vmul.f32 %v2468_v32, %v8879_v44  ;;  %v2472_v44 = vld [vmem:[#allocation2 + $0xd0] sm:$0xff] }
 0x418   :  { %v2173_v6 = vadd.f32 %v2162_v1, %v2091_v63  ;;  %v2365_v1 = vmul.f32 %v7111_v34, %v8867_v33  ;;  %v2295_v63 = vadd.f32 %v2284_v36, %v7137_v53  ;;  %v2457_v34 = vadd.f32 %v2446_v3, %v2375_v16  ;;  %v8873_v33 = vld [vmem:[#allocation86_spill] sm:$0xff]  ;;  %v2470_v3 = vld [vmem:[#allocation2 + $0xa0] sm:$0xff]  ;;  %v8885_v32 = vld [vmem:[#allocation29_spill] sm:$0xff] }
 0x419   :  { %v2286_v53 = vmul.f32 %v2260_v24, %v8873_v33  ;;  %v2378_v24 = vadd.f32 %v2367_v56, %v2296_v55 }
 0x41a   :  { %v2206_v57 = vadd.f32 %v2195_v13, %v2173_v6  ;;  %v8870_v13 = vld [vmem:[#allocation119_spill] sm:$0xff]  ;;  %v2376_v14 = vadd.f32 %v2365_v1, %v2294_v35  ;;  %v2377_v20 = vadd.f32 %v2366_v0, %v2295_v63  ;;  %v8882_v0 = vld [vmem:[#allocation122_spill] sm:$0xff]  ;;  %v7211_v2 = vadd.f32 %v2479_v4, %v2457_v34  ;;  %v8887_v4 = vld [vmem:[#allocation93_spill] sm:$0xff] }
 0x41b   :  { %v2342_v19 = vpop.permute.xlu1 %2341  ;;  %v1975_v45 = vpop.permute.xlu0 %1974  ;;  %v1907_v6 = vmul.f32 %v8870_v13, %v8869_v58  ;;  %v8875_v13 = vld [vmem:[#allocation104_spill] sm:$0xff]  ;;  %v2297_v63 = vadd.f32 %v2286_v53, %v2205_v10  ;;  %v8886_v10 = vld [vmem:[#allocation95_spill] sm:$0xff]  ;;  %v2450_v34 = vmul.f32 %v2424_v52, %v8887_v4 }
 0x41c   :  { %v1999_v50 = vmul.f32 %v1975_v45, %v8866_v17  ;;  %v2448_v58 = vmul.f32 %v2420_v39, %v8875_v13  ;;  %v2368_v25 = vmul.f32 %v2342_v19, %v8877_v29  ;;  %v2458_v16 = vadd.f32 %v2447_v21, %v2376_v14  ;;  %v8881_v39 = vld [vmem:[#allocation41_spill] sm:$0xff]  ;;  %v2471_v21 = vld [vmem:[#allocation2 + $0xb8] sm:$0xff] }
 0x41d   :  { %v2196_v40 = vmul.f32 %v8882_v0, %v8881_v39  ;;  %v8883_v19 = vld [vmem:[#allocation89_spill] sm:$0xff]  ;;  %v2481_v14 = vmul.f32 %v2470_v3, %v8885_v32  ;;  %v8891_v52 = vld [vmem:[#allocation103_spill] sm:$0xff] }
 0x41e   :  { %v2010_v36 = vadd.f32 %v1999_v50, %v1907_v6  ;;  %v8880_v50 = vld [vmem:[#allocation92_spill] sm:$0xff]  ;;  %v2379_v55 = vadd.f32 %v2368_v25, %v2297_v63 }
 0x41f   :  { %v2057_v45 = vpop.permute.xlu1 %2056  ;;  %v2139_v17 = vpop.permute.xlu0 %2138  ;;  %v2449_v6 = vmul.f32 %v2422_v61, %v8880_v50  ;;  %v8889_v25 = vld [vmem:[#allocation96_spill] sm:$0xff] }
 0x420   :  { %v2081_v38 = vmul.f32 %v2057_v45, %v8874_v15  ;;  %v2163_v43 = vmul.f32 %v2139_v17, %v8878_v48  ;;  %v8884_v17 = vld [vmem:[#allocation80_spill] sm:$0xff]  ;;  %v2461_v63 = vadd.f32 %v2450_v34, %v2379_v55  ;;  %v8894_v55 = vld [vmem:[#allocation83_spill] sm:$0xff] }
 0x421   :  { %v2460_v50 = vadd.f32 %v2449_v6, %v2378_v24  ;;  %v2473_v24 = vld [vmem:[#allocation2 + $0xe8] sm:$0xff]  ;;  %v8890_v6 = vld [vmem:[#allocation67_spill] sm:$0xff] }
 0x422   :  { %v2092_v30 = vadd.f32 %v2081_v38, %v2010_v36  ;;  %v2480_v36 = vmul.f32 %v2469_v42, %v8883_v19  ;;  %v2459_v38 = vadd.f32 %v2448_v58, %v2377_v20  ;;  %v8888_v42 = vld [vmem:[#allocation105_spill] sm:$0xff]  ;;  %v2529_v58 = vmul.f32 %v7211_v2, %v7211_v2 }
 0x423   :  { %v2344_v45 = vpop.permute.xlu1 %2343  ;;  %v2262_v1 = vpop.permute.xlu0 %2261 }
 0x424   :  { %v2174_v35 = vadd.f32 %v2163_v43, %v2092_v30  ;;  %v2287_v48 = vmul.f32 %v2262_v1, %v8884_v17  ;;  %v7216_v61 = vadd.f32 %v2480_v36, %v2458_v16  ;;  %v2369_v53 = vmul.f32 %v2344_v45, %v8886_v10 }
 0x425   :  { %v7223_v3 = vadd.f32 %v2481_v14, %v2459_v38  ;;  %v2482_v1 = vmul.f32 %v2471_v21, %v8889_v25  ;;  %v2502_v38 = vsel %vm48_vm0, %v7211_v2, 0.0  ;;  %v8893_v21 = vld [vmem:[#allocation121_spill] sm:$0xff]  ;;  %v8896_v25 = vld [vmem:[#allocation24_spill] sm:$0xff] }
 0x426   :  { %v2207_v56 = vadd.f32 %v2196_v40, %v2174_v35  ;;  %v2298_v30 = vadd.f32 %v2287_v48, %v2206_v57  ;;  %v2530_v57 = vmul.f32 %v7216_v61, %v7216_v61  ;;  %v2483_v35 = vmul.f32 %v2472_v44, %v8891_v52 }
 0x427   :  { %v2426_v43 = vpop.permute.xlu1 %2425  ;;  %v1977_v0 = vpop.permute.xlu0 %1976  ;;  %v7229_v48 = vadd.f32 %v2482_v1, %v2460_v50  ;;  %v2531_v34 = vmul.f32 %v7223_v3, %v7223_v3  ;;  %v8895_v50 = vld [vmem:[#allocation107_spill] sm:$0xff]  ;;  %v2504_v44 = vsel %vm48_vm0, %v7216_v61, 0.0 }
 0x428   :  { %v2451_v20 = vmul.f32 %v2426_v43, %v8888_v42  ;;  %v2380_v16 = vadd.f32 %v2369_v53, %v2298_v30  ;;  %v2000_v45 = vmul.f32 %v1977_v0, %v8890_v6  ;;  %v8892_v43 = vld [vmem:[#allocation70_spill] sm:$0xff]  ;;  %v2541_v0 = vsel %vm48_vm0, %v2529_v58, 0.0 }
 0x429   :  { %v1908_v53 = vmul.f32 %v8893_v21, %v8892_v43  ;;  %v2484_v1 = vmul.f32 %v2473_v24, %v8895_v50  ;;  %v7243_v52 = vadd.f32 %v2483_v35, %v2461_v63  ;;  %v2543_v21 = vsel %vm48_vm0, %v2530_v57, 0.0  ;;  %v8897_v63 = vld [vmem:[#allocation90_spill] sm:$0xff] }
 0x42a   :  { %v2462_v14 = vadd.f32 %v2451_v20, %v2380_v16  ;;  %v2503_v16 = vadd.f32 %v2502_v38, %v7093_v49  ;;  %v2506_v58 = vsel %vm48_vm0, %v7223_v3, 0.0  ;;  %v2545_v57 = vsel %vm48_vm0, %v2531_v34, 0.0  ;;  %v8899_v38 = vld [vmem:[#allocation55_spill] sm:$0xff] }
 0x42b   :  { %v2059_v40 = vpop.permute.xlu1 %2058  ;;  %v2264_v36 = vpop.permute.xlu0 %2263  ;;  %v2011_v6 = vadd.f32 %v2000_v45, %v1908_v53  ;;  %v8898_v45 = vld [vmem:[#allocation101_spill] sm:$0xff]  ;;  %v2508_v4 = vsel %vm48_vm0, %v7229_v48, 0.0 }
 0x42c   :  { %v2082_v30 = vmul.f32 %v2059_v40, %v8894_v55  ;;  %v2288_v20 = vmul.f32 %v2264_v36, %v8896_v25  ;;  %v2532_v40 = vmul.f32 %v7229_v48, %v7229_v48  ;;  %v7252_v50 = vadd.f32 %v2484_v1, %v2462_v14  ;;  %v8900_v25 = vld [vmem:[#allocation123_spill] sm:$0xff] }
 0x42d   :  { %v2542_v36 = vadd.f32 %v2541_v0, %v7099_v41  ;;  %v2505_v49 = vadd.f32 %v2504_v44, %v2503_v16  ;;  %v2197_v42 = vmul.f32 %v8900_v25, %v8899_v38  ;;  %v2533_v14 = vmul.f32 %v7243_v52, %v7243_v52  ;;  %v2474_v0 = vld [vmem:[#allocation2 + $0x100] sm:$0xff] }
 0x42e   :  { %v2093_v43 = vadd.f32 %v2082_v30, %v2011_v6  ;;  %v2299_v1 = vadd.f32 %v2288_v20, %v2207_v56  ;;  %v2510_v41 = vsel %vm48_vm0, %v7243_v52, 0.0  ;;  %v2534_v25 = vmul.f32 %v7252_v50, %v7252_v50 }
 0x42f   :  { %v2141_v55 = vpop.permute.xlu1 %2140  ;;  %v2346_v24 = vpop.permute.xlu0 %2345  ;;  %v2544_v30 = vadd.f32 %v2543_v21, %v2542_v36  ;;  %v2512_v20 = vsel %vm48_vm0, %v7252_v50, 0.0  ;;  %v8902_v21 = vld [vmem:[#allocation36_spill] sm:$0xff] }
 0x430   :  { %v2164_v35 = vmul.f32 %v2141_v55, %v8897_v63  ;;  %v2370_v53 = vmul.f32 %v2346_v24, %v8898_v45  ;;  %v2507_v55 = vadd.f32 %v2506_v58, %v2505_v49  ;;  %v2547_v24 = vsel %vm48_vm0, %v2532_v40, 0.0  ;;  %v8901_v45 = vld [vmem:[#allocation57_spill] sm:$0xff] }
 0x431   :  { %v2546_v32 = vadd.f32 %v2545_v57, %v2544_v30  ;;  %v2485_v58 = vmul.f32 %v2474_v0, %v8902_v21  ;;  %v2551_v19 = vsel %vm48_vm0, %v2534_v25, 0.0  ;;  %v8904_v30 = vld [vmem:[#allocation81_spill] sm:$0xff]  ;;  %v8905_v25 = vld [vmem:[#allocation76_spill] sm:$0xff]  ;;  %v8908_v21 = vld [vmem:[#allocation98_spill] sm:$0xff] }
 0x432   :  { %v2175_v6 = vadd.f32 %v2164_v35, %v2093_v43  ;;  %v2381_v16 = vadd.f32 %v2370_v53, %v2299_v1  ;;  %v2509_v56 = vadd.f32 %v2508_v4, %v2507_v55  ;;  %v2549_v43 = vsel %vm48_vm0, %v2533_v14, 0.0  ;;  %v8903_v1 = vld [vmem:[#allocation69_spill] sm:$0xff] }
 0x433   :  { %v2428_v34 = vpop.permute.xlu0 %2427  ;;  %v2143_v44 = vpop.permute.xlu1 %2142  ;;  %v2548_v35 = vadd.f32 %v2547_v24, %v2546_v32  ;;  %v1909_v32 = vmul.f32 %v6895_v5, %v8904_v30 }
 0x434   :  { %v2452_v63 = vmul.f32 %v2428_v34, %v8901_v45  ;;  %v2208_v10 = vadd.f32 %v2197_v42, %v2175_v6  ;;  %v2511_v36 = vadd.f32 %v2510_v41, %v2509_v56 }
 0x435   :  { %v2550_v57 = vadd.f32 %v2549_v43, %v2548_v35  ;;  %v8906_v43 = vld [vmem:[#allocation49_spill] sm:$0xff] }
 0x436   :  { %v2463_v40 = vadd.f32 %v2452_v63, %v2381_v16  ;;  %v2513_v4 = vadd.f32 %v2512_v20, %v2511_v36  ;;  %v2165_v20 = vmul.f32 %v2143_v44, %v8906_v43  ;;  %v8911_v43 = vld [vmem:[#allocation40_spill] sm:$0xff] }
 0x437   :  { %v1979_v49 = vpop.permute.xlu0 %1978  ;;  %v2266_v17 = vpop.permute.xlu1 %2265  ;;  %v2552_v63 = vadd.f32 %v2551_v19, %v2550_v57  ;;  %v8909_v19 = vld [vmem:[#allocation32_spill] sm:$0xff] }
 0x438   :  { %v7275_v53 = vadd.f32 %v2485_v58, %v2463_v40  ;;  %v2001_v42 = vmul.f32 %v1979_v49, %v8903_v1  ;;  %v8907_v58 = vld [vmem:[#allocation99_spill] sm:$0xff]  ;;  %v2198_v57 = vmul.f32 %v6930_v31, %v8909_v19  ;;  %v5097_v31 = vld [vmem:[#allocation2 + $0x130] sm:$0xff] }
 0x439   :  { %v2289_v40 = vmul.f32 %v2266_v17, %v8907_v58 }
 0x43a   :  { %v2514_v14 = vsel %vm48_vm0, %v7275_v53, 0.0  ;;  %v2535_v6 = vmul.f32 %v7275_v53, %v7275_v53  ;;  %v2012_v34 = vadd.f32 %v2001_v42, %v1909_v32  ;;  %v2475_v32 = vld [vmem:[#allocation2 + $0x118] sm:$0xff] }
 0x43b   :  { %v2515_v55 = vadd.f32 %v2514_v14, %v2513_v4  ;;  %v2061_v24 = vpop.permute.xlu0 %2060  ;;  %v2348_v41 = vpop.permute.xlu1 %2347  ;;  %v2300_v4 = vadd.f32 %v2289_v40, %v2208_v10  ;;  %v8915_v10 = vld [vmem:[#allocation53_spill] sm:$0xff] }
 0x43c   :  { %v2553_v0 = vsel %vm48_vm0, %v2535_v6, 0.0  ;;  %v2083_v16 = vmul.f32 %v2061_v24, %v8905_v25  ;;  %v2371_v5 = vmul.f32 %v2348_v41, %v8908_v21  ;;  %v8910_v6 = vld [vmem:[#allocation47_spill] sm:$0xff]  ;;  %v8914_v21 = vld [vmem:[#allocation48_spill] sm:$0xff] }
 0x43d   :  { %v2554_v56 = vadd.f32 %v2553_v0, %v2552_v63 }
 0x43e   :  { %v2094_v35 = vadd.f32 %v2083_v16, %v2012_v34  ;;  %v2382_v0 = vadd.f32 %v2371_v5, %v2300_v4  ;;  %v8912_v34 = vld [vmem:[#allocation106_spill] sm:$0xff] }
 0x43f   :  { %v2268_v36 = vpop.permute.xlu0 %2267  ;;  %v2350_v49 = vpop.permute.xlu1 %2349 }
 0x440   :  { %v2176_v1 = vadd.f32 %v2165_v20, %v2094_v35  ;;  %v2290_v42 = vmul.f32 %v2268_v36, %v8910_v6  ;;  %v2372_v17 = vmul.f32 %v2350_v49, %v8911_v43  ;;  %v8913_v20 = vld [vmem:[#allocation3_spill] sm:$0xff] }
 0x441   :  { %v2486_v35 = vmul.f32 %v2475_v32, %v8913_v20 }
 0x442   :  { %v2209_v14 = vadd.f32 %v2198_v57, %v2176_v1  ;;  %v7297_v1 = vmul.f32 %v5097_v31, %v8915_v10 }
 0x443   :  { %v2430_v24 = vpop.permute.xlu0 %2429  ;;  %v2432_v63 = vpop.permute.xlu1 %2431 }
 0x444   :  { %v2301_v44 = vadd.f32 %v2290_v42, %v2209_v14  ;;  %v2453_v16 = vmul.f32 %v2430_v24, %v8912_v34  ;;  %v2454_v25 = vmul.f32 %v2432_v63, %v8914_v21  ;;  %8916 = vst [vmem:[#allocation4_spill] sm:$0xff] %v7297_v1 }
 0x446   :  { %v2383_v58 = vadd.f32 %v2372_v17, %v2301_v44  ;;  %v2464_v41 = vadd.f32 %v2453_v16, %v2382_v0 }
 0x448   :  { %v2497_v40 = vadd.f32 %v2486_v35, %v2464_v41  ;;  %v2465_v36 = vadd.f32 %v2454_v25, %v2383_v58 }
 0x44a   :  { %v2516_v57 = vsel %vm48_vm0, %v2497_v40, 0.0  ;;  %v2536_v5 = vmul.f32 %v2497_v40, %v2497_v40  ;;  %v2498_v4 = vadd.f32 %v7297_v1, %v2465_v36 }
 0x44b   :  { %v2517_v49 = vadd.f32 %v2516_v57, %v2515_v55 }
 0x44c   :  { %v2555_v14 = vsel %vm48_vm0, %v2536_v5, 0.0  ;;  %v2518_v42 = vsel %vm48_vm0, %v2498_v4, 0.0  ;;  %v2537_v32 = vmul.f32 %v2498_v4, %v2498_v4 }
 0x44d   :  { %v2556_v24 = vadd.f32 %v2555_v14, %v2554_v56  ;;  %v2519_v0 = vadd.f32 %v2518_v42, %v2517_v49  ;;  %v4492_v14 = vld [vmem:[%s8278_s4 + $0x2] sm:$0x3] }
 0x44e   :  { %v2557_v63 = vsel %vm48_vm0, %v2537_v32, 0.0 }
 0x44f   :  { %v2520_v44 = vrot.slane %v2519_v0, 4  ;;  %v2558_v17 = vadd.f32 %v2557_v63, %v2556_v24  ;;  %v8917_v24 = vld [vmem:[#allocation37_spill] sm:$0xff] }
 0x451   :  { %v2521_v16 = vadd.f32 %v2520_v44, %v2519_v0  ;;  %v2559_v35 = vrot.slane %v2558_v17, 4 }
 0x453   :  { %v2522_v25 = vrot.slane %v2521_v16, 2  ;;  %v2560_v58 = vadd.f32 %v2559_v35, %v2558_v17 }
 0x455   :  { %v2523_v41 = vadd.f32 %v2522_v25, %v2521_v16  ;;  %v2561_v31 = vrot.slane %v2560_v58, 2  ;;  %v8918_v25 = vld [vmem:[#allocation52_spill] sm:$0xff] }
 0x457   :  { %v2524_v10 = vrot.slane %v2523_v41, 1  ;;  %v2562_v36 = vadd.f32 %v2561_v31, %v2560_v58 }
 0x459   :  { %v2525_v55 = vadd.f32 %v2524_v10, %v2523_v41  ;;  %v2563_v57 = vrot.slane %v2562_v36, 1 }
 0x45b   :  { %v2526_v5 = vmul.f32 0.011904762, %v2525_v55  ;;  %v2564_v1 = vadd.f32 %v2563_v57, %v2562_v36 }
 0x45d   :  { %v2565_v21 = vmul.f32 0.011904762, %v2564_v1  ;;  %v2566_v20 = vmul.f32 %v2526_v5, %v2526_v5 }
 0x45f   :  { %v2567_v56 = vsub.f32 %v2565_v21, %v2566_v20 }
 0x461   :  { %v2568_v49 = vadd.f32 1e-05, %v2567_v56 }
 0x463   :  { %5082 = vrsqrt.f32 %v2568_v49 }
 0x46d   :  { %v5083_v42 = vpop.eup %5082 }
 0x46e   :  { %v2570_v32 = vmul.f32 %v5083_v42, %v4492_v14 }
 0x470   :  { %v2574_v0 = vrot.slane %v2570_v32, %v8917_v24  ;;  %v2586_v63 = vmul.f32 %v2570_v32, %v2526_v5 }
 0x472   :  { %v2585_v44 = vmul.f32 %v2574_v0, %v2498_v4  ;;  %v2588_v17 = vrot.slane %v2586_v63, 7  ;;  %v2575_v16 = vmul.f32 %v2574_v0, %v7070_v26  ;;  %v2576_v35 = vmul.f32 %v2574_v0, %v7082_v22 }
 0x473   :  { %v2583_v21 = vmul.f32 %v2574_v0, %v7275_v53  ;;  %v2584_v20 = vmul.f32 %v2574_v0, %v2497_v40  ;;  %v2577_v41 = vmul.f32 %v2574_v0, %v7211_v2  ;;  %v2578_v31 = vmul.f32 %v2574_v0, %v7216_v61 }
 0x474   :  { %v2590_v1 = vsub.f32 %v4492_v14, %v2588_v17  ;;  %v2579_v10 = vmul.f32 %v2574_v0, %v7223_v3  ;;  %v2580_v36 = vmul.f32 %v2574_v0, %v7229_v48  ;;  %v2581_v4 = vmul.f32 %v2574_v0, %v7243_v52 }
 0x475   :  { %v2582_v26 = vmul.f32 %v2574_v0, %v7252_v50 }
 0x476   :  { %v2594_v58 = vrot.slane %v2590_v1, %v8918_v25 }
 0x478   :  { %v2595_v55 = vadd.f32 %v2594_v58, %v2575_v16  ;;  %v2596_v22 = vadd.f32 %v2594_v58, %v2576_v35  ;;  %v2597_v57 = vadd.f32 %v2594_v58, %v2577_v41  ;;  %v2598_v5 = vadd.f32 %v2594_v58, %v2578_v31 }
 0x479   :  { %v2599_v53 = vadd.f32 %v2594_v58, %v2579_v10  ;;  %v2600_v40 = vadd.f32 %v2594_v58, %v2580_v36  ;;  %v2601_v56 = vadd.f32 %v2594_v58, %v2581_v4  ;;  %v2602_v49 = vadd.f32 %v2594_v58, %v2582_v26 }
 0x47a   :  { %v2606_v2 = vmul.f32 %v2595_v55, %v8776_v18  ;;  %v2607_v61 = vmul.f32 %v2596_v22, %v8778_v47  ;;  %v2603_v3 = vadd.f32 %v2594_v58, %v2583_v21  ;;  %v2604_v48 = vadd.f32 %v2594_v58, %v2584_v20  ;;  %v3083_v55 = vld [vmem:[#allocation2] sm:$0xfc] }
 0x47b   :  { %v2605_v52 = vadd.f32 %v2594_v58, %v2585_v44  ;;  %v2608_v42 = vmul.f32 %v2597_v57, %v8781_v28  ;;  %v2609_v0 = vmul.f32 %v2598_v5, %v8783_v8  ;;  %v2610_v44 = vmul.f32 %v2599_v53, %v8837_v46  ;;  %v2991_v22 = vld [vmem:[#allocation2] sm:$0xfe] }
 0x47c   :  { %v2617_v14 = vmax.f32 %v2606_v2, 0.0  ;;  %v2618_v50 = vmax.f32 %v2607_v61, 0.0  ;;  %v2611_v16 = vmul.f32 %v2600_v40, %v8845_v27  ;;  %v2612_v1 = vmul.f32 %v2601_v56, %v8852_v11  ;;  %v3165_v56 = vld [vmem:[#allocation2] sm:$0x80] }
 0x47d   :  { %v2619_v32 = vmax.f32 %v2608_v42, 0.0  ;;  %v2620_v63 = vmax.f32 %v2609_v0, 0.0  ;;  %v2621_v17 = vmax.f32 %v2610_v44, 0.0  ;;  %v2613_v20 = vmul.f32 %v2602_v49, %v8860_v23 }
 0x47e   :  { %4540 = vmatmul.mubr.msk.f32.vlgmr.msra.gmra.mrb[40].mxu0 %vm48_vm0, %v2617_v14  ;;  %4757 = vmatmul.mubr.msk.f32.vlgmr.msra.gmra.mrb[48].mxu1 %vm48_vm0, %v2617_v14  ;;  %v2622_v35 = vmax.f32 %v2611_v16, 0.0  ;;  %v2623_v21 = vmax.f32 %v2612_v1, 0.0  ;;  %v2614_v41 = vmul.f32 %v2603_v3, %v8881_v39  ;;  %v2615_v10 = vmul.f32 %v2604_v48, %v8899_v38 }
 0x47f   :  { %2744 = vmatprep.mubr.f32.mxu0 %v7021_v59  ;;  %4759 = vmatprep.mubr.msk.f32.mxu1 %vm5105_vm1, %v7021_v59  ;;  %v2624_v58 = vmax.f32 %v2613_v20, 0.0  ;;  %v2616_v4 = vmul.f32 %v2605_v52, %v8909_v19  ;;  %v3087_v57 = vrot.slane %v3083_v55, 2  ;;  %v3005_v5 = vrot.slane %v2991_v22, 1 }
 0x480   :  { %v2625_v31 = vmax.f32 %v2614_v41, 0.0  ;;  %v2626_v36 = vmax.f32 %v2615_v10, 0.0  ;;  %v3169_v48 = vrot.slane %v3165_v56, 7 }
 0x481   :  { %v2627_v26 = vmax.f32 %v2616_v4, 0.0 }
 0x482   :  { %4541 = vmatmul.mubr.msk.f32.gmra.mrb[42].mxu0 %vm48_vm0, %v2618_v50  ;;  %4760 = vmatmul.mubr.msk.f32.gmra.mrb[50].mxu1 %vm48_vm0, %v2618_v50 }
 0x483   :  { %2750 = vmatprep.mubr.f32.mxu0 %v7021_v59  ;;  %4762 = vmatprep.mubr.msk.f32.mxu1 %vm5105_vm1, %v7021_v59 }
 0x486   :  { %4542 = vmatmul.mubr.msk.f32.gmra.mrb[44].mxu0 %vm48_vm0, %v2619_v32  ;;  %4763 = vmatmul.mubr.msk.f32.gmra.mrb[52].mxu1 %vm48_vm0, %v2619_v32 }
 0x487   :  { %2756 = vmatprep.mubr.f32.mxu0 %v7021_v59  ;;  %4765 = vmatprep.mubr.msk.f32.mxu1 %vm5105_vm1, %v7021_v59 }
 0x48a   :  { %4543 = vmatmul.mubr.msk.f32.gmra.mrb[46].mxu0 %vm48_vm0, %v2620_v63  ;;  %4766 = vmatmul.mubr.msk.f32.gmra.mrb[54].mxu1 %vm48_vm0, %v2620_v63 }
 0x48b   :  { %2762 = vmatprep.mubr.f32.mxu0 %v7021_v59  ;;  %4768 = vmatprep.mubr.msk.f32.mxu1 %vm5105_vm1, %v7021_v59 }
 0x48e   :  { %4544 = vmatmul.mubr.msk.f32.gmra.mrb[48].mxu0 %vm48_vm0, %v2621_v17  ;;  %4769 = vmatmul.mubr.msk.f32.gmra.mrb[56].mxu1 %vm48_vm0, %v2621_v17 }
 0x48f   :  { %2768 = vmatprep.mubr.f32.mxu0 %v7021_v59  ;;  %4771 = vmatprep.mubr.msk.f32.mxu1 %vm5105_vm1, %v7021_v59 }
 0x492   :  { %4545 = vmatmul.mubr.msk.f32.gmra.mrb[50].mxu0 %vm48_vm0, %v2622_v35  ;;  %4772 = vmatmul.mubr.msk.f32.gmra.mrb[58].mxu1 %vm48_vm0, %v2622_v35 }
 0x493   :  { %2774 = vmatprep.mubr.f32.mxu0 %v7021_v59  ;;  %4774 = vmatprep.mubr.msk.f32.mxu1 %vm5105_vm1, %v7021_v59 }
 0x496   :  { %4546 = vmatmul.mubr.msk.f32.gmra.mrb[52].mxu0 %vm48_vm0, %v2623_v21  ;;  %4775 = vmatmul.mubr.msk.f32.gmra.mrb[60].mxu1 %vm48_vm0, %v2623_v21 }
 0x497   :  { %2780 = vmatprep.mubr.f32.mxu0 %v7021_v59  ;;  %4777 = vmatprep.mubr.msk.f32.mxu1 %vm5105_vm1, %v7021_v59 }
 0x49a   :  { %4547 = vmatmul.mubr.msk.f32.gmra.mrb[54].mxu0 %vm48_vm0, %v2624_v58  ;;  %4778 = vmatmul.mubr.msk.f32.gmra.mrb[62].mxu1 %vm48_vm0, %v2624_v58 }
 0x49b   :  { %2786 = vmatprep.mubr.f32.mxu0 %v7021_v59  ;;  %4780 = vmatprep.mubr.msk.f32.mxu1 %vm5105_vm1, %v7021_v59 }
 0x49e   :  { %4548 = vmatmul.mubr.msk.f32.gmra.mrb[56].mxu0 %vm48_vm0, %v2625_v31  ;;  %4781 = vmatmul.mubr.msk.f32.gmra.mrb[64].mxu1 %vm48_vm0, %v2625_v31 }
 0x49f   :  { %2792 = vmatprep.mubr.f32.mxu0 %v7021_v59  ;;  %4783 = vmatprep.mubr.msk.f32.mxu1 %vm5105_vm1, %v7021_v59 }
 0x4a2   :  { %4549 = vmatmul.mubr.msk.f32.gmra.mrb[58].mxu0 %vm48_vm0, %v2626_v36  ;;  %4784 = vmatmul.mubr.msk.f32.gmra.mrb[66].mxu1 %vm48_vm0, %v2626_v36 }
 0x4a3   :  { %2798 = vmatprep.mubr.f32.mxu0 %v7021_v59  ;;  %4786 = vmatprep.mubr.msk.f32.mxu1 %vm5105_vm1, %v7021_v59 }
 0x4a6   :  { %4550 = vmatmul.mubr.msk.f32.gmra.mrb[60].mxu0 %vm48_vm0, %v2627_v26  ;;  %4787 = vmatmul.mubr.msk.f32.gmra.mrb[68].mxu1 %vm48_vm0, %v2627_v26 }
 0x4a7   :  { %4797 = vmatprep.mubr.msk.f32.mxu0 %vm5105_vm1, %v7021_v59  ;;  %4852 = vmatprep.mubr.msk.f32.mxu1 %vm5105_vm1, %v7021_v59 }
 0x551   :  { %v7385_v53 = vpop.f32.mrb[40].mxu0  ;;  %v2871_v40 = vpop.f32.mrb[48].mxu1 }
 0x552   :  { %v7387_v49 = vpop.f32.mrb[41].mxu0  ;;  %v4758_v2 = vpop.f32.mrb[49].mxu1  ;;  %v3088_v14 = vrot.slane %v7385_v53, 2  ;;  %v3006_v61 = vrot.slane %v7385_v53, 1  ;;  %v3170_v52 = vrot.slane %v7385_v53, 7 }
 0x553   :  { %8919 = vst [vmem:[#allocation33_spill] sm:$0xff] %v7387_v49  ;;  %2926 = vst [vmem:[#allocation2 + $0x20] sm:$0xff] %v7387_v49 }
 0x554   :  { %v3089_v3 = vsel %vm666_vm3, %v3087_v57, %v3088_v14  ;;  %v3007_v59 = vsel %vm539_vm4, %v3005_v5, %v3006_v61  ;;  %v3171_v16 = vsel %vm793_vm2, %v3169_v48, %v3170_v52 }
 0x555   :  { %v7395_v50 = vpop.f32.mrb[42].mxu0  ;;  %v2876_v42 = vpop.f32.mrb[50].mxu1  ;;  %3110 = vrot.lane.b32.xlu1 %v3089_v3, %s5113_s17  ;;  %3028 = vrot.lane.b32.xlu0 %v3007_v59, %s5114_s18 }
 0x556   :  { %8920 = vst [vmem:[#allocation38_spill] sm:$0xff] %v7395_v50  ;;  %2930 = vst.msk [vmem:[#allocation2 + $0x40] sm:$0xff] %vm48_vm0, %v2876_v42  ;;  %v7400_v32 = vpop.f32.mrb[43].mxu0  ;;  %v4761_v0 = vpop.f32.mrb[51].mxu1  ;;  %v3090_v63 = vrot.slane %v7395_v50, 2  ;;  %v3172_v44 = vrot.slane %v7395_v50, 7 }
 0x557   :  { %v3008_v17 = vrot.slane %v7395_v50, 1  ;;  %2929 = vst [vmem:[#allocation2 + $0x38] sm:$0xff] %v7400_v32  ;;  %v3459_v41 = vrot.slane %v7400_v32, 7  ;;  %v3295_v31 = vrot.slane %v7400_v32, 1  ;;  %v3377_v56 = vrot.slane %v7400_v32, 6 }
 0x558   :  { %v3091_v35 = vsel %vm666_vm3, %v3088_v14, %v3090_v63  ;;  %v3173_v1 = vsel %vm793_vm2, %v3170_v52, %v3172_v44 }
 0x559   :  { %v3009_v21 = vsel %vm539_vm4, %v3006_v61, %v3008_v17  ;;  %v7410_v20 = vpop.f32.mrb[44].mxu0  ;;  %v2881_v58 = vpop.f32.mrb[52].mxu1  ;;  %3192 = vrot.lane.b32.xlu1 %v3171_v16, %s5112_s16  ;;  %3112 = vrot.lane.b32.xlu0 %v3091_v35, %s5113_s17 }
 0x55a   :  { %8921 = vst [vmem:[#allocation71_spill] sm:$0xff] %v7410_v20  ;;  %2933 = vst.msk [vmem:[#allocation2 + $0x58] sm:$0xff] %vm48_vm0, %v2881_v58  ;;  %v7417_v10 = vpop.f32.mrb[45].mxu0  ;;  %v4764_v36 = vpop.f32.mrb[53].mxu1  ;;  %v3454_v4 = vld [vmem:[#allocation2 + $0x20] sm:$0x80] }
 0x55b   :  { %8922 = vst [vmem:[#allocation5_spill] sm:$0xff] %v7417_v10  ;;  %v3280_v26 = vld [vmem:[#allocation2 + $0x20] sm:$0xfe]  ;;  %v3458_v55 = vrot.slane %v3454_v4, 7  ;;  %v3010_v5 = vrot.slane %v7410_v20, 1  ;;  %v3174_v40 = vrot.slane %v7410_v20, 7 }
 0x55c   :  { %v3294_v22 = vrot.slane %v3280_v26, 1  ;;  %v3372_v57 = vld [vmem:[#allocation2 + $0x20] sm:$0xc0]  ;;  %v3092_v2 = vrot.slane %v7410_v20, 2  ;;  %v3461_v14 = vrot.slane %v7417_v10, 7  ;;  %v3297_v61 = vrot.slane %v7417_v10, 1 }
 0x55d   :  { %v2886_v3 = vpop.f32.mrb[54].mxu1  ;;  %v7425_v59 = vpop.f32.mrb[46].mxu0  ;;  %3194 = vrot.lane.b32.xlu0 %v3173_v1, %s5112_s16  ;;  %3030 = vrot.lane.b32.xlu1 %v3009_v21, %s5114_s18  ;;  %v3460_v48 = vsel %vm793_vm2, %v3458_v55, %v3459_v41  ;;  %v3376_v52 = vrot.slane %v3372_v57, 6  ;;  %v3011_v42 = vsel %vm539_vm4, %v3008_v17, %v3010_v5  ;;  %v3379_v0 = vrot.slane %v7417_v10, 6 }
 0x55e   :  { %8923 = vst [vmem:[#allocation10_spill] sm:$0xff] %v7425_v59  ;;  %2936 = vst.msk [vmem:[#allocation2 + $0x70] sm:$0xff] %vm48_vm0, %v2886_v3  ;;  %v7433_v16 = vpop.f32.mrb[47].mxu0  ;;  %v4767_v35 = vpop.f32.mrb[55].mxu1  ;;  %v3296_v58 = vsel %vm539_vm4, %v3294_v22, %v3295_v31  ;;  %v3175_v36 = vsel %vm793_vm2, %v3172_v44, %v3174_v40  ;;  %v3093_v1 = vsel %vm666_vm3, %v3090_v63, %v3092_v2  ;;  %v3012_v26 = vrot.slane %v7425_v59, 1 }
 0x55f   :  { %8924 = vst [vmem:[#allocation7_spill] sm:$0xff] %v7433_v16  ;;  %v7439_v21 = vsel %vm793_vm2, %v3459_v41, %v3461_v14  ;;  %2935 = vst [vmem:[#allocation2 + $0x68] sm:$0xff] %v7433_v16  ;;  %v7443_v17 = vsel %vm539_vm4, %v3295_v31, %v3297_v61  ;;  %v7446_v4 = vsel %vm1143_vm5, %v3377_v56, %v3379_v0  ;;  %v3094_v55 = vrot.slane %v7425_v59, 2 }
 0x560   :  { %v3381_v22 = vrot.slane %v7433_v16, 6  ;;  %v3176_v44 = vrot.slane %v7425_v59, 7  ;;  %v3463_v63 = vrot.slane %v7433_v16, 7  ;;  %v3299_v41 = vrot.slane %v7433_v16, 1 }
 0x561   :  { %v2891_v57 = vpop.f32.mrb[56].mxu1  ;;  %v7454_v3 = vpop.f32.mrb[48].mxu0  ;;  %3481 = vrot.lane.b32.xlu0 %v3460_v48, %s5112_s16  ;;  %3317 = vrot.lane.b32.xlu1 %v3296_v58, %s5114_s18  ;;  %v7459_v31 = vsel %vm539_vm4, %v3010_v5, %v3012_v26  ;;  %v7462_v35 = vsel %vm666_vm3, %v3092_v2, %v3094_v55 }
 0x562   :  { %8925 = vst [vmem:[#allocation82_spill] sm:$0xff] %v7454_v3  ;;  %2939 = vst.msk [vmem:[#allocation2 + $0x88] sm:$0xff] %vm48_vm0, %v2891_v57  ;;  %v7465_v25 = vpop.f32.mrb[49].mxu0  ;;  %v4770_v24 = vpop.f32.mrb[57].mxu1  ;;  %v7468_v34 = vsel %vm1143_vm5, %v3379_v0, %v3381_v22  ;;  %v7471_v43 = vsel %vm793_vm2, %v3174_v40, %v3176_v44  ;;  %v7474_v48 = vsel %vm793_vm2, %v3461_v14, %v3463_v63  ;;  %v3014_v2 = vrot.slane %v7454_v3, 1 }
 0x563   :  { %8926 = vst [vmem:[#allocation114_spill] sm:$0xff] %v7465_v25  ;;  %v7477_v5 = vsel %vm539_vm4, %v3297_v61, %v3299_v41  ;;  %v3096_v58 = vrot.slane %v7454_v3, 2  ;;  %v3301_v57 = vrot.slane %v7465_v25, 1  ;;  %v3178_v24 = vrot.slane %v7454_v3, 7 }
 0x564   :  { %v3378_v0 = vsel %vm1143_vm5, %v3376_v52, %v3377_v56  ;;  %v3383_v6 = vrot.slane %v7465_v25, 6  ;;  %v3465_v40 = vrot.slane %v7465_v25, 7  ;;  %v7491_v61 = vsel %vm539_vm4, %v3012_v26, %v3014_v2 }
 0x565   :  { %v2896_v19 = vpop.f32.mrb[58].mxu1  ;;  %v7486_v14 = vpop.f32.mrb[50].mxu0  ;;  %3399 = vrot.lane.b32.xlu1 %v3378_v0, %s5113_s17  ;;  %3032 = vrot.lane.b32.xlu0 %v3011_v42, %s5114_s18  ;;  %v7494_v30 = vsel %vm666_vm3, %v3094_v55, %v3096_v58  ;;  %v7497_v45 = vsel %vm539_vm4, %v3299_v41, %v3301_v57  ;;  %v7503_v38 = vsel %vm793_vm2, %v3176_v44, %v3178_v24 }
 0x566   :  { %8927 = vst [vmem:[#allocation113_spill] sm:$0xff] %v7486_v14  ;;  %2942 = vst.msk [vmem:[#allocation2 + $0xa0] sm:$0xff] %vm48_vm0, %v2896_v19  ;;  %v7500_v56 = vpop.f32.mrb[51].mxu0  ;;  %v4773_v52 = vpop.f32.mrb[59].mxu1  ;;  %v7506_v0 = vsel %vm1143_vm5, %v3381_v22, %v3383_v6  ;;  %v7509_v42 = vsel %vm793_vm2, %v3463_v63, %v3465_v40  ;;  %v3016_v26 = vrot.slane %v7486_v14, 1  ;;  %v3180_v55 = vrot.slane %v7486_v14, 7 }
 0x567   :  { %8928 = vst [vmem:[#allocation116_spill] sm:$0xff] %v7500_v56  ;;  %2941 = vst [vmem:[#allocation2 + $0x98] sm:$0xff] %v7500_v56  ;;  %v3098_v19 = vrot.slane %v7486_v14, 2  ;;  %v3385_v41 = vrot.slane %v7500_v56, 6  ;;  %v3303_v52 = vrot.slane %v7500_v56, 1  ;;  %v3467_v22 = vrot.slane %v7500_v56, 7 }
 0x568   :  { %v7518_v44 = vsel %vm539_vm4, %v3014_v2, %v3016_v26  ;;  %v7526_v29 = vsel %vm793_vm2, %v3178_v24, %v3180_v55 }
 0x569   :  { %v2901_v39 = vpop.f32.mrb[60].mxu1  ;;  %v7521_v63 = vpop.f32.mrb[52].mxu0  ;;  %3196 = vrot.lane.b32.xlu1 %v3175_v36, %s5112_s16  ;;  %3114 = vrot.lane.b32.xlu0 %v3093_v1, %s5113_s17  ;;  %v7529_v13 = vsel %vm666_vm3, %v3096_v58, %v3098_v19  ;;  %v7532_v15 = vsel %vm1143_vm5, %v3383_v6, %v3385_v41  ;;  %v7538_v23 = vsel %vm539_vm4, %v3301_v57, %v3303_v52 }
 0x56a   :  { %8929 = vst [vmem:[#allocation115_spill] sm:$0xff] %v7521_v63  ;;  %2945 = vst.msk [vmem:[#allocation2 + $0xb8] sm:$0xff] %vm48_vm0, %v2901_v39  ;;  %v7535_v2 = vpop.f32.mrb[53].mxu0  ;;  %v4776_v33 = vpop.f32.mrb[61].mxu1  ;;  %v7541_v36 = vsel %vm793_vm2, %v3465_v40, %v3467_v22  ;;  %v3100_v1 = vrot.slane %v7521_v63, 2  ;;  %v3182_v24 = vrot.slane %v7521_v63, 7 }
 0x56b   :  { %8930 = vst [vmem:[#allocation118_spill] sm:$0xff] %v7535_v2  ;;  %2944 = vst [vmem:[#allocation2 + $0xb0] sm:$0xff] %v7535_v2  ;;  %v3018_v6 = vrot.slane %v7521_v63, 1  ;;  %v3387_v58 = vrot.slane %v7535_v2, 6  ;;  %v3305_v39 = vrot.slane %v7535_v2, 1  ;;  %v3469_v33 = vrot.slane %v7535_v2, 7 }
 0x56c   :  { %v7551_v57 = vsel %vm666_vm3, %v3098_v19, %v3100_v1  ;;  %v7554_v40 = vsel %vm793_vm2, %v3180_v55, %v3182_v24 }
 0x56d   :  { %v2906_v11 = vpop.f32.mrb[62].mxu1  ;;  %v7556_v14 = vpop.f32.mrb[54].mxu0  ;;  %3483 = vrot.lane.b32.xlu1 %v7439_v21, %s5112_s16  ;;  %3319 = vrot.lane.b32.xlu0 %v7443_v17, %s5114_s18  ;;  %v7563_v63 = vsel %vm539_vm4, %v3016_v26, %v3018_v6  ;;  %v7566_v2 = vsel %vm1143_vm5, %v3385_v41, %v3387_v58  ;;  %v7569_v19 = vsel %vm539_vm4, %v3303_v52, %v3305_v39 }
 0x56e   :  { %8931 = vst [vmem:[#allocation117_spill] sm:$0xff] %v7556_v14  ;;  %2948 = vst.msk [vmem:[#allocation2 + $0xd0] sm:$0xff] %vm48_vm0, %v2906_v11  ;;  %v7572_v55 = vpop.f32.mrb[55].mxu0  ;;  %v4779_v56 = vpop.f32.mrb[63].mxu1  ;;  %v7575_v27 = vsel %vm793_vm2, %v3467_v22, %v3469_v33  ;;  %v3020_v21 = vrot.slane %v7556_v14, 1  ;;  %v3184_v17 = vrot.slane %v7556_v14, 7 }
 0x56f   :  { %8932 = vst [vmem:[#allocation120_spill] sm:$0xff] %v7572_v55  ;;  %v3102_v26 = vrot.slane %v7556_v14, 2  ;;  %v3471_v41 = vrot.slane %v7572_v55, 7  ;;  %v3307_v3 = vrot.slane %v7572_v55, 1  ;;  %v3389_v52 = vrot.slane %v7572_v55, 6 }
 0x570   :  { %v7584_v11 = vsel %vm539_vm4, %v3018_v6, %v3020_v21  ;;  %v7587_v56 = vsel %vm793_vm2, %v3182_v24, %v3184_v17 }
 0x571   :  { %v7590_v22 = vsel %vm666_vm3, %v3100_v1, %v3102_v26  ;;  %v2911_v25 = vpop.f32.mrb[64].mxu1  ;;  %v7592_v46 = vpop.f32.mrb[56].mxu0  ;;  %3401 = vrot.lane.b32.xlu0 %v7446_v4, %s5113_s17  ;;  %3034 = vrot.lane.b32.xlu1 %v7459_v31, %s5114_s18  ;;  %v7599_v14 = vsel %vm793_vm2, %v3469_v33, %v3471_v41  ;;  %v7602_v6 = vsel %vm539_vm4, %v3305_v39, %v3307_v3 }
 0x572   :  { %8933 = vst [vmem:[#allocation119_spill] sm:$0xff] %v7592_v46  ;;  %v7605_v24 = vsel %vm1143_vm5, %v3387_v58, %v3389_v52  ;;  %2951 = vst.msk [vmem:[#allocation2 + $0xe8] sm:$0xff] %vm48_vm0, %v2911_v25  ;;  %v7608_v1 = vpop.f32.mrb[57].mxu0  ;;  %v4782_v55 = vpop.f32.mrb[65].mxu1  ;;  %v3022_v59 = vrot.slane %v7592_v46, 1  ;;  %v3104_v4 = vrot.slane %v7592_v46, 2 }
 0x573   :  { %8934 = vst [vmem:[#allocation122_spill] sm:$0xff] %v7608_v1  ;;  %v3186_v31 = vrot.slane %v7592_v46, 7  ;;  %v3391_v33 = vrot.slane %v7608_v1, 6  ;;  %v3309_v16 = vrot.slane %v7608_v1, 1  ;;  %v3473_v39 = vrot.slane %v7608_v1, 7 }
 0x574   :  { %v7617_v58 = vsel %vm539_vm4, %v3020_v21, %v3022_v59  ;;  %v7620_v25 = vsel %vm666_vm3, %v3102_v26, %v3104_v4 }
 0x575   :  { %v7623_v55 = vsel %vm793_vm2, %v3184_v17, %v3186_v31  ;;  %v2916_v8 = vpop.f32.mrb[66].mxu1  ;;  %v7625_v20 = vpop.f32.mrb[58].mxu0  ;;  %3116 = vrot.lane.b32.xlu0 %v7462_v35, %s5113_s17  ;;  %3403 = vrot.lane.b32.xlu1 %v7468_v34, %s5113_s17  ;;  %v3392_v46 = vsel %vm1143_vm5, %v3389_v52, %v3391_v33  ;;  %v3310_v21 = vsel %vm539_vm4, %v3307_v3, %v3309_v16 }
 0x576   :  { %v3474_v1 = vsel %vm793_vm2, %v3471_v41, %v3473_v39  ;;  %2954 = vst.msk [vmem:[#allocation2 + $0x100] sm:$0xff] %vm48_vm0, %v2916_v8  ;;  %2952 = vst [vmem:[#allocation2 + $0xf0] sm:$0xff] %v7625_v20  ;;  %v7636_v17 = vpop.f32.mrb[59].mxu0  ;;  %v4785_v26 = vpop.f32.mrb[67].mxu1  ;;  %v8527_v10 = vrot.slane %v7625_v20, 1  ;;  %v8528_v35 = vrot.slane %v7625_v20, 2 }
 0x577   :  { %8935 = vst [vmem:[#allocation121_spill] sm:$0xff] %v7636_v17  ;;  %v3188_v28 = vrot.slane %v7625_v20, 7  ;;  %2953 = vst [vmem:[#allocation2 + $0xf8] sm:$0xff] %v7636_v17  ;;  %v3311_v34 = vrot.slane %v7636_v17, 1  ;;  %v3393_v3 = vrot.slane %v7636_v17, 6  ;;  %v3475_v41 = vrot.slane %v7636_v17, 7 }
 0x578   :  { %v3025_v8 = vsel %vm539_vm4, %v3022_v59, %v8527_v10  ;;  %v3107_v52 = vsel %vm666_vm3, %v3104_v4, %v8528_v35 }
 0x579   :  { %v3189_v26 = vsel %vm793_vm2, %v3186_v31, %v3188_v28  ;;  %v2921_v50 = vpop.f32.mrb[68].mxu1  ;;  %v2800_v49 = vpop.f32.mrb[60].mxu0  ;;  %3198 = vrot.lane.b32.xlu0 %v7471_v43, %s5112_s16  ;;  %3485 = vrot.lane.b32.xlu1 %v7474_v48, %s5112_s16  ;;  %v3312_v17 = vsel %vm539_vm4, %v3309_v16, %v3311_v34  ;;  %v3394_v59 = vsel %vm1143_vm5, %v3391_v33, %v3393_v3 }
 0x57a   :  { %v3476_v10 = vsel %vm793_vm2, %v3473_v39, %v3475_v41  ;;  %2957 = vst.msk [vmem:[#allocation2 + $0x118] sm:$0xff] %vm48_vm0, %v2921_v50  ;;  %2955 = vst [vmem:[#allocation2 + $0x108] sm:$0xff] %v2800_v49  ;;  %v7662_v4 = vpop.f32.mrb[61].mxu0  ;;  %v4788_v31 = vpop.f32.mrb[69].mxu1 }
 0x57b   :  { %2956 = vst [vmem:[#allocation2 + $0x110] sm:$0xff] %v7662_v4  ;;  %v3313_v35 = vrot.slane %v7662_v4, 1  ;;  %v3395_v43 = vrot.slane %v7662_v4, 6  ;;  %v3477_v48 = vrot.slane %v7662_v4, 7 }
 0x57d   :  { %3321 = vrot.lane.b32.xlu0 %v7477_v5, %s5114_s18  ;;  %3036 = vrot.lane.b32.xlu1 %v7491_v61, %s5114_s18  ;;  %v3314_v49 = vsel %vm539_vm4, %v3311_v34, %v3313_v35  ;;  %v3396_v50 = vsel %vm1143_vm5, %v3393_v3, %v3395_v43  ;;  %v7681_v16 = vsel %vm793_vm2, %v3475_v41, %v3477_v48  ;;  %v3281_v61 = vld [vmem:[#allocation2 + $0x128] sm:$0x1]  ;;  %v8939_v41 = vld [vmem:[#allocation18_spill] sm:$0xff] }
 0x57e   :  { %v8938_v3 = vld [vmem:[#allocation33_spill] sm:$0xff] }
 0x581   :  { %3118 = vrot.lane.b32.xlu1 %v7494_v30, %s5113_s17  ;;  %3323 = vrot.lane.b32.xlu0 %v7497_v45, %s5114_s18  ;;  %v8936_v30 = vrot.slane %v7625_v20, 1 }
 0x585   :  { %3200 = vrot.lane.b32.xlu1 %v7503_v38, %s5112_s16  ;;  %3405 = vrot.lane.b32.xlu0 %v7506_v0, %s5113_s17  ;;  %v3373_v0 = vld [vmem:[#allocation2 + $0x128] sm:$0x3f] }
 0x589   :  { %3487 = vrot.lane.b32.xlu1 %v7509_v42, %s5112_s16  ;;  %3038 = vrot.lane.b32.xlu0 %v7518_v44, %s5114_s18  ;;  %v7754_v44 = vld [vmem:[#allocation2] sm:$0xff] }
 0x58d   :  { %3202 = vrot.lane.b32.xlu1 %v7526_v29, %s5112_s16  ;;  %3120 = vrot.lane.b32.xlu0 %v7529_v13, %s5113_s17  ;;  %v3084_v29 = vld [vmem:[#allocation2 + $0x108] sm:$0x3] }
 0x591   :  { %3407 = vrot.lane.b32.xlu0 %v7532_v15, %s5113_s17  ;;  %3325 = vrot.lane.b32.xlu1 %v7538_v23, %s5114_s18  ;;  %v2992_v15 = vld [vmem:[#allocation2 + $0x108] sm:$0x1] }
 0x592   :  { %v3026_v13 = vrot.slane %v2992_v15, 1 }
 0x594   :  { %v3027_v5 = vsel %vm539_vm4, %v8936_v30, %v3026_v13 }
 0x595   :  { %3489 = vrot.lane.b32.xlu1 %v7541_v36, %s5112_s16  ;;  %3122 = vrot.lane.b32.xlu0 %v7551_v57, %s5113_s17  ;;  %v3315_v57 = vrot.slane %v3281_v61, 1  ;;  %v8946_v61 = vld [vmem:[#allocation43_spill] sm:$0xff] }
 0x599   :  { %3204 = vrot.lane.b32.xlu0 %v7554_v40, %s5112_s16  ;;  %3040 = vrot.lane.b32.xlu1 %v7563_v63, %s5114_s18  ;;  %v2969_v63 = vmul.f32 %v7754_v44, %v8809_v12  ;;  %v3397_v40 = vrot.slane %v3373_v0, 6 }
 0x59b   :  { %v3398_v33 = vsel %vm1143_vm5, %v3395_v43, %v3397_v40  ;;  %v8941_v43 = vld [vmem:[#allocation23_spill] sm:$0xff] }
 0x59d   :  { %3409 = vrot.lane.b32.xlu0 %v7566_v2, %s5113_s17  ;;  %3327 = vrot.lane.b32.xlu1 %v7569_v19, %s5114_s18  ;;  %v8937_v2 = vrot.slane %v7625_v20, 2  ;;  %v3455_v19 = vld [vmem:[#allocation2 + $0x128] sm:$0x7f] }
 0x5a1   :  { %3491 = vrot.lane.b32.xlu0 %v7575_v27, %s5112_s16  ;;  %3042 = vrot.lane.b32.xlu1 %v7584_v11, %s5114_s18  ;;  %v3166_v27 = vld [vmem:[#allocation2 + $0x108] sm:$0x7f] }
 0x5a2   :  { %v3190_v23 = vrot.slane %v3166_v27, 7 }
 0x5a5   :  { %3206 = vrot.lane.b32.xlu0 %v7587_v56, %s5112_s16  ;;  %3124 = vrot.lane.b32.xlu1 %v7590_v22, %s5113_s17  ;;  %v2970_v56 = vmul.f32 %v7385_v53, %v8811_v37 }
 0x5a9   :  { %3493 = vrot.lane.b32.xlu0 %v7599_v14, %s5112_s16  ;;  %3329 = vrot.lane.b32.xlu1 %v7602_v6, %s5114_s18  ;;  %v3108_v14 = vrot.slane %v3084_v29, 2  ;;  %v3479_v6 = vrot.slane %v3455_v19, 7 }
 0x5ab   :  { %v3109_v36 = vsel %vm666_vm3, %v8937_v2, %v3108_v14  ;;  %v3536_v2 = vld [vmem:[#allocation2 + $0x40] sm:$0xff] }
 0x5ad   :  { %3411 = vrot.lane.b32.xlu1 %v7605_v24, %s5113_s17  ;;  %3044 = vrot.lane.b32.xlu0 %v7617_v58, %s5114_s18 }
 0x5b1   :  { %3126 = vrot.lane.b32.xlu1 %v7620_v25, %s5113_s17  ;;  %3208 = vrot.lane.b32.xlu0 %v7623_v55, %s5112_s16 }
 0x5b5   :  { %3413 = vrot.lane.b32.xlu1 %v3392_v46, %s5113_s17  ;;  %3331 = vrot.lane.b32.xlu0 %v3310_v21, %s5114_s18  ;;  %v3191_v46 = vsel %vm793_vm2, %v3188_v28, %v3190_v23  ;;  %v3480_v21 = vsel %vm793_vm2, %v3477_v48, %v3479_v6 }
 0x5b9   :  { %3495 = vrot.lane.b32.xlu1 %v3474_v1, %s5112_s16  ;;  %3046 = vrot.lane.b32.xlu0 %v3025_v8, %s5114_s18  ;;  %v3316_v1 = vsel %vm539_vm4, %v3313_v35, %v3315_v57 }
 0x5bd   :  { %3128 = vrot.lane.b32.xlu1 %v3107_v52, %s5113_s17  ;;  %3333 = vrot.lane.b32.xlu0 %v3312_v17, %s5114_s18  ;;  %v8940_v52 = vld [vmem:[#allocation6_spill] sm:$0xff] }
 0x5c1   :  { %3210 = vrot.lane.b32.xlu1 %v3189_v26, %s5112_s16  ;;  %3415 = vrot.lane.b32.xlu0 %v3394_v59, %s5113_s17 }
 0x5c5   :  { %3497 = vrot.lane.b32.xlu0 %v3476_v10, %s5112_s16  ;;  %3212 = vrot.lane.b32.xlu1 %v3191_v46, %s5112_s16  ;;  %v8944_v46 = vld [vmem:[#allocation9_spill] sm:$0xff] }
 0x5c7   :  { %v3111_v45 = vpop.permute.xlu1 %3110  ;;  %v3029_v38 = vpop.permute.xlu0 %3028 }
 0x5c8   :  { %v3061_v28 = vmul.f32 %v3029_v38, %v8808_v9  ;;  %v3143_v12 = vmul.f32 %v3111_v45, %v8812_v54  ;;  %v8945_v45 = vld [vmem:[#allocation13_spill] sm:$0xff] }
 0x5c9   :  { %3048 = vrot.lane.b32.xlu0 %v3027_v5, %s5114_s18  ;;  %3335 = vrot.lane.b32.xlu1 %v3314_v49, %s5114_s18  ;;  %v8942_v49 = vld [vmem:[#allocation42_spill] sm:$0xff] }
 0x5ca   :  { %v3072_v11 = vadd.f32 %v3061_v28, %v2969_v63 }
 0x5cb   :  { %v3193_v42 = vpop.permute.xlu1 %3192  ;;  %v3113_v10 = vpop.permute.xlu0 %3112 }
 0x5cc   :  { %v3154_v39 = vadd.f32 %v3143_v12, %v3072_v11  ;;  %v3225_v37 = vmul.f32 %v3193_v42, %v8814_v62  ;;  %v3144_v53 = vmul.f32 %v3113_v10, %v8815_v7  ;;  %v3259_v62 = vmul.f32 %v7400_v32, %v8778_v47  ;;  %v8947_v42 = vld [vmem:[#allocation17_spill] sm:$0xff]  ;;  %v8951_v12 = vld [vmem:[#allocation44_spill] sm:$0xff] }
 0x5cd   :  { %3130 = vrot.lane.b32.xlu0 %v3109_v36, %s5113_s17  ;;  %3417 = vrot.lane.b32.xlu1 %v3396_v50, %s5113_s17  ;;  %v8943_v50 = vld [vmem:[#allocation38_spill] sm:$0xff]  ;;  %v8948_v10 = vld [vmem:[#allocation5_spill] sm:$0xff] }
 0x5ce   :  { %v3236_v17 = vadd.f32 %v3225_v37, %v3154_v39  ;;  %v3260_v63 = vmul.f32 %v8948_v10, %v8947_v42  ;;  %v8949_v36 = vld [vmem:[#allocation78_spill] sm:$0xff] }
 0x5cf   :  { %v3195_v9 = vpop.permute.xlu0 %3194  ;;  %v3031_v22 = vpop.permute.xlu1 %3030  ;;  %v8952_v39 = vld [vmem:[#allocation46_spill] sm:$0xff] }
 0x5d0   :  { %v3062_v24 = vmul.f32 %v3031_v22, %v8813_v60  ;;  %v3226_v25 = vmul.f32 %v3195_v9, %v8816_v51  ;;  %v3258_v51 = vmul.f32 %v8938_v3, %v8776_v18 }
 0x5d1   :  { %3337 = vrot.lane.b32.xlu0 %v3316_v1, %s5114_s18  ;;  %3419 = vrot.lane.b32.xlu1 %v3398_v33, %s5113_s17  ;;  %v3537_v1 = vld [vmem:[#allocation2 + $0x58] sm:$0xff] }
 0x5d2   :  { %v3073_v54 = vadd.f32 %v3062_v24, %v2970_v56  ;;  %v3269_v31 = vadd.f32 %v3258_v51, %v3236_v17  ;;  %v8950_v56 = vld [vmem:[#allocation66_spill] sm:$0xff] }
 0x5d3   :  { %v3482_v58 = vpop.permute.xlu0 %3481  ;;  %v3318_v60 = vpop.permute.xlu1 %3317  ;;  %v3547_v22 = vmul.f32 %v3536_v2, %v8950_v56  ;;  %v8963_v2 = vld [vmem:[#allocation11_spill] sm:$0xff] }
 0x5d4   :  { %v3155_v55 = vadd.f32 %v3144_v53, %v3073_v54  ;;  %v3350_v8 = vmul.f32 %v3318_v60, %v8939_v41  ;;  %v3514_v0 = vmul.f32 %v3482_v58, %v8946_v61  ;;  %v8953_v54 = vld [vmem:[#allocation60_spill] sm:$0xff] }
 0x5d5   :  { %3499 = vrot.lane.b32.xlu0 %v7681_v16, %s5112_s16  ;;  %3501 = vrot.lane.b32.xlu1 %v3480_v21, %s5112_s16  ;;  %v2971_v16 = vmul.f32 %v8943_v50, %v8942_v49  ;;  %v8958_v49 = vld [vmem:[#allocation84_spill] sm:$0xff] }
 0x5d6   :  { %v3237_v35 = vadd.f32 %v3226_v25, %v3155_v55  ;;  %v3361_v15 = vadd.f32 %v3350_v8, %v3269_v31  ;;  %v8954_v55 = vld [vmem:[#allocation68_spill] sm:$0xff] }
 0x5d7   :  { %v3400_v7 = vpop.permute.xlu1 %3399  ;;  %v3033_v34 = vpop.permute.xlu0 %3032  ;;  %v3548_v21 = vmul.f32 %v3537_v1, %v8954_v55  ;;  %v8970_v55 = vld [vmem:[#allocation114_spill] sm:$0xff] }
 0x5d8   :  { %v3063_v26 = vmul.f32 %v3033_v34, %v8940_v52  ;;  %v3270_v59 = vadd.f32 %v3259_v62, %v3237_v35  ;;  %v3432_v48 = vmul.f32 %v3400_v7, %v8941_v43  ;;  %v8955_v35 = vld [vmem:[#allocation8_spill] sm:$0xff]  ;;  %v8956_v62 = vld [vmem:[#allocation71_spill] sm:$0xff]  ;;  %v8957_v34 = vld [vmem:[#allocation73_spill] sm:$0xff] }
 0x5d9   :  { %v2972_v7 = vmul.f32 %v8956_v62, %v8955_v35  ;;  %v8971_v62 = vld [vmem:[#allocation15_spill] sm:$0xff] }
 0x5da   :  { %v3074_v32 = vadd.f32 %v3063_v26, %v2971_v16  ;;  %v3443_v29 = vadd.f32 %v3432_v48, %v3361_v15 }
 0x5db   :  { %v3197_v27 = vpop.permute.xlu1 %3196  ;;  %v3115_v23 = vpop.permute.xlu0 %3114 }
 0x5dc   :  { %v3145_v13 = vmul.f32 %v3115_v23, %v8944_v46  ;;  %v3227_v38 = vmul.f32 %v3197_v27, %v8945_v45  ;;  %v3525_v40 = vadd.f32 %v3514_v0, %v3443_v29  ;;  %v8960_v46 = vld [vmem:[#allocation7_spill] sm:$0xff]  ;;  %v8962_v0 = vld [vmem:[#allocation12_spill] sm:$0xff] }
 0x5de   :  { %v3156_v30 = vadd.f32 %v3145_v13, %v3074_v32  ;;  %v7801_v33 = vadd.f32 %v3547_v22, %v3525_v40  ;;  %v8959_v32 = vld [vmem:[#allocation54_spill] sm:$0xff]  ;;  %v8965_v40 = vld [vmem:[#allocation16_spill] sm:$0xff] }
 0x5df   :  { %v3484_v5 = vpop.permute.xlu1 %3483  ;;  %v3320_v14 = vpop.permute.xlu0 %3319  ;;  %v3261_v13 = vmul.f32 %v8960_v46, %v8959_v32 }
 0x5e0   :  { %v3238_v28 = vadd.f32 %v3227_v38, %v3156_v30  ;;  %v3351_v57 = vmul.f32 %v3320_v14, %v8949_v36  ;;  %v3515_v37 = vmul.f32 %v3484_v5, %v8952_v39  ;;  %v3597_v51 = vmul.f32 %v7801_v33, %v7801_v33  ;;  %v8961_v30 = vld [vmem:[#allocation22_spill] sm:$0xff]  ;;  %v8967_v39 = vld [vmem:[#allocation21_spill] sm:$0xff] }
 0x5e1   :  { %v3569_v52 = vsel %vm48_vm0, %v7801_v33, 0.0  ;;  %v8964_v36 = vld [vmem:[#allocation10_spill] sm:$0xff] }
 0x5e2   :  { %v3271_v19 = vadd.f32 %v3260_v63, %v3238_v28  ;;  %v3362_v6 = vadd.f32 %v3351_v57, %v3270_v59  ;;  %v3608_v27 = vsel %vm48_vm0, %v3597_v51, 0.0  ;;  %v2973_v57 = vmul.f32 %v8964_v36, %v8963_v2  ;;  %v4563_v51 = vld [vmem:[%s8276_s3 + $0x138] sm:$0xff] }
 0x5e3   :  { %v3402_v11 = vpop.permute.xlu0 %3401  ;;  %v3035_v9 = vpop.permute.xlu1 %3034 }
 0x5e4   :  { %v3433_v24 = vmul.f32 %v3402_v11, %v8951_v12  ;;  %v3064_v58 = vmul.f32 %v3035_v9, %v8953_v54  ;;  %v8966_v9 = vld [vmem:[#allocation39_spill] sm:$0xff] }
 0x5e6   :  { %v3444_v53 = vadd.f32 %v3433_v24, %v3362_v6  ;;  %v3075_v8 = vadd.f32 %v3064_v58, %v2972_v7 }
 0x5e7   :  { %v3117_v60 = vpop.permute.xlu0 %3116  ;;  %v7805_v25 = vpop.permute.xlu1 %3403 }
 0x5e8   :  { %v3526_v17 = vadd.f32 %v3515_v37, %v3444_v53  ;;  %v3146_v3 = vmul.f32 %v3117_v60, %v8957_v34  ;;  %v8969_v60 = vld [vmem:[#allocation35_spill] sm:$0xff] }
 0x5ea   :  { %v7813_v41 = vadd.f32 %v3548_v21, %v3526_v17  ;;  %v3157_v48 = vadd.f32 %v3146_v3, %v3075_v8  ;;  %v3262_v21 = vmul.f32 %v8970_v55, %v8969_v60  ;;  %v4562_v3 = vld [vmem:[%s8276_s3 + $0x120] sm:$0xff]  ;;  %v4564_v8 = vld [vmem:[%s8276_s3 + $0x150] sm:$0xff] }
 0x5eb   :  { %v3199_v26 = vpop.permute.xlu0 %3198  ;;  %v7817_v59 = vpop.permute.xlu1 %3485 }
 0x5ec   :  { %v3570_v31 = vsel %vm48_vm0, %v7813_v41, 0.0  ;;  %v3598_v43 = vmul.f32 %v7813_v41, %v7813_v41  ;;  %v3228_v50 = vmul.f32 %v3199_v26, %v8958_v49  ;;  %v4565_v26 = vld [vmem:[%s8276_s3 + $0x168] sm:$0xff] }
 0x5ed   :  { %v7824_v16 = vadd.f32 %v3570_v31, %v3569_v52  ;;  %v4923_v52 = vpack.c.bf16 %v4563_v51, %v4562_v3  ;;  %v8972_v31 = vld [vmem:[#allocation45_spill] sm:$0xff] }
 0x5ee   :  { %v3609_v23 = vsel %vm48_vm0, %v3598_v43, 0.0  ;;  %v3239_v15 = vadd.f32 %v3228_v50, %v3157_v48  ;;  %v8973_v43 = vld [vmem:[#allocation82_spill] sm:$0xff] }
 0x5ef   :  { %v7830_v29 = vadd.f32 %v3609_v23, %v3608_v27  ;;  %v3322_v45 = vpop.permute.xlu0 %3321  ;;  %v3037_v38 = vpop.permute.xlu1 %3036  ;;  %v2974_v48 = vmul.f32 %v8973_v43, %v8972_v31  ;;  %4924 = vmatpush3.bf16.msra.mxu0 %v4923_v52  ;;  %v4926_v27 = vpack.c.bf16 %v4565_v26, %v4564_v8  ;;  %v8986_v8 = vld [vmem:[#allocation26_spill] sm:$0xff]  ;;  %v8988_v43 = vld [vmem:[#allocation115_spill] sm:$0xff] }
 0x5f0   :  { %v3352_v5 = vmul.f32 %v3322_v45, %v8961_v30  ;;  %v3272_v14 = vadd.f32 %v3261_v13, %v3239_v15  ;;  %v3065_v28 = vmul.f32 %v3037_v38, %v8962_v0  ;;  %v8974_v15 = vld [vmem:[#allocation20_spill] sm:$0xff]  ;;  %v8975_v13 = vmov 0.0|0.0   ;;  %v8976_v45 = vld [vmem:[#allocation87_spill] sm:$0xff]  ;;  %v8987_v31 = vld [vmem:[#allocation58_spill] sm:$0xff] }
 0x5f1   :  { %4925 = vmatprep.subr.bf16.mxu0 %v8975_v13 }
 0x5f2   :  { %v7833_v61 = vadd.f32 %v3352_v5, %v3271_v19  ;;  %v3076_v22 = vadd.f32 %v3065_v28, %v2973_v57  ;;  %v8968_v19 = vld [vmem:[#allocation65_spill] sm:$0xff]  ;;  %v8977_v28 = vld [vmem:[#allocation31_spill] sm:$0xff] }
 0x5f3   :  { %v3119_v10 = vpop.permute.xlu1 %3118  ;;  %v3324_v63 = vpop.permute.xlu0 %3323  ;;  %4927 = vmatpush3.bf16.msra.mxu0 %v4926_v27 }
 0x5f4   :  { %v3147_v11 = vmul.f32 %v3119_v10, %v8965_v40  ;;  %v3353_v56 = vmul.f32 %v3324_v63, %v8966_v9  ;;  %v8978_v10 = vld [vmem:[#allocation116_spill] sm:$0xff]  ;;  %v8979_v9 = vld [vmem:[#allocation19_spill] sm:$0xff] }
 0x5f5   :  { %v3263_v63 = vmul.f32 %v8978_v10, %v8977_v28 }
 0x5f6   :  { %v3364_v6 = vadd.f32 %v3353_v56, %v3272_v14  ;;  %v3158_v1 = vadd.f32 %v3147_v11, %v3076_v22  ;;  %v8980_v56 = vld [vmem:[#allocation113_spill] sm:$0xff] }
 0x5f7   :  { %v3201_v12 = vpop.permute.xlu1 %3200  ;;  %v3406_v24 = vpop.permute.xlu0 %3405  ;;  %v2975_v22 = vmul.f32 %v8980_v56, %v8979_v9 }
 0x5f8   :  { %v3229_v37 = vmul.f32 %v3201_v12, %v8967_v39  ;;  %v3435_v53 = vmul.f32 %v3406_v24, %v8968_v19  ;;  %v8982_v24 = vld [vmem:[#allocation30_spill] sm:$0xff] }
 0x5fa   :  { %v3240_v54 = vadd.f32 %v3229_v37, %v3158_v1  ;;  %v7842_v58 = vadd.f32 %v3435_v53, %v3364_v6  ;;  %v8981_v6 = vld [vmem:[#allocation62_spill] sm:$0xff]  ;;  %v8983_v53 = vld [vmem:[#allocation61_spill] sm:$0xff] }
 0x5fb   :  { %v7846_v17 = vpop.permute.xlu1 %3487  ;;  %v3039_v35 = vpop.permute.xlu0 %3038 }
 0x5fc   :  { %v3066_v7 = vmul.f32 %v3039_v35, %v8971_v62  ;;  %v3273_v34 = vadd.f32 %v3262_v21, %v3240_v54  ;;  %v8984_v35 = vld [vmem:[#allocation28_spill] sm:$0xff]  ;;  %v8985_v62 = vld [vmem:[#allocation118_spill] sm:$0xff] }
 0x5fe   :  { %v3077_v23 = vadd.f32 %v3066_v7, %v2974_v48  ;;  %v3264_v7 = vmul.f32 %v8985_v62, %v8984_v35  ;;  %v2976_v48 = vmul.f32 %v8988_v43, %v8987_v31  ;;  %v8997_v62 = vld [vmem:[#allocation56_spill] sm:$0xff]  ;;  %v9001_v43 = vld [vmem:[#allocation77_spill] sm:$0xff] }
 0x5ff   :  { %v3203_v49 = vpop.permute.xlu1 %3202  ;;  %v3121_v50 = vpop.permute.xlu0 %3120 }
 0x600   :  { %v3148_v46 = vmul.f32 %v3121_v50, %v8974_v15  ;;  %v3230_v38 = vmul.f32 %v3203_v49, %v8976_v45 }
 0x602   :  { %v3159_v30 = vadd.f32 %v3148_v46, %v3077_v23  ;;  %v8989_v23 = vld [vmem:[#allocation59_spill] sm:$0xff]  ;;  %v8990_v46 = vld [vmem:[#allocation74_spill] sm:$0xff] }
 0x603   :  { %v3408_v5 = vpop.permute.xlu0 %3407  ;;  %v3326_v14 = vpop.permute.xlu1 %3325 }
 0x604   :  { %v3241_v0 = vadd.f32 %v3230_v38, %v3159_v30 }
 0x606   :  { %v3274_v2 = vadd.f32 %v3263_v63, %v3241_v0  ;;  %v8991_v63 = vld [vmem:[#allocation51_spill] sm:$0xff] }
 0x607   :  { %v3490_v36 = vpop.permute.xlu1 %3489  ;;  %v3123_v57 = vpop.permute.xlu0 %3122 }
 0x608   :  { %v3149_v1 = vmul.f32 %v3123_v57, %v8982_v24  ;;  %v8992_v57 = vld [vmem:[#allocation120_spill] sm:$0xff] }
 0x60b   :  { %v3205_v40 = vpop.permute.xlu0 %3204  ;;  %v3041_v11 = vpop.permute.xlu1 %3040 }
 0x60c   :  { %v3067_v12 = vmul.f32 %v3041_v11, %v8981_v6  ;;  %v3231_v54 = vmul.f32 %v3205_v40, %v8983_v53  ;;  %v3265_v40 = vmul.f32 %v8992_v57, %v8991_v63  ;;  %v8993_v11 = vld [vmem:[#allocation63_spill] sm:$0xff]  ;;  %v8996_v53 = vld [vmem:[#allocation64_spill] sm:$0xff] }
 0x60d   :  { %v3354_v9 = vmul.f32 %v3326_v14, %v8993_v11  ;;  %v9000_v14 = vld [vmem:[#allocation102_spill] sm:$0xff]  ;;  %v9005_v57 = vld [vmem:[#allocation88_spill] sm:$0xff]  ;;  %v9006_v11 = vld [vmem:[#allocation91_spill] sm:$0xff] }
 0x60e   :  { %v3078_v39 = vadd.f32 %v3067_v12, %v2975_v22  ;;  %v8994_v22 = vld [vmem:[#allocation50_spill] sm:$0xff]  ;;  %v8995_v12 = vld [vmem:[#allocation75_spill] sm:$0xff]  ;;  %v3517_v31 = vmul.f32 %v7846_v17, %v9000_v14  ;;  %v9013_v14 = vld [vmem:[#allocation80_spill] sm:$0xff] }
 0x60f   :  { %v3410_v37 = vpop.permute.xlu0 %3409  ;;  %v3328_v19 = vpop.permute.xlu1 %3327  ;;  %v3434_v6 = vmul.f32 %v7805_v25, %v8994_v22  ;;  %v3436_v25 = vmul.f32 %v3408_v5, %v9001_v43  ;;  %v9007_v5 = vld [vmem:[#allocation85_spill] sm:$0xff]  ;;  %v9008_v22 = vld [vmem:[#allocation79_spill] sm:$0xff] }
 0x610   :  { %v3160_v55 = vadd.f32 %v3149_v1, %v3078_v39  ;;  %v3355_v24 = vmul.f32 %v3328_v19, %v8995_v12  ;;  %v3528_v12 = vadd.f32 %v3517_v31, %v7842_v58  ;;  %v3541_v31 = vld [vmem:[#allocation2 + $0xb8] sm:$0xff] }
 0x612   :  { %v3242_v21 = vadd.f32 %v3231_v54, %v3160_v55  ;;  %v3445_v55 = vadd.f32 %v3434_v6, %v7833_v61  ;;  %v9003_v61 = vld [vmem:[#allocation72_spill] sm:$0xff] }
 0x613   :  { %v3492_v3 = vpop.permute.xlu0 %3491  ;;  %v3043_v51 = vpop.permute.xlu1 %3042 }
 0x614   :  { %v3068_v52 = vmul.f32 %v3043_v51, %v8986_v8  ;;  %v3275_v26 = vadd.f32 %v3264_v7, %v3242_v21  ;;  %v3365_v21 = vadd.f32 %v3354_v9, %v3273_v34  ;;  %v8998_v7 = vld [vmem:[#allocation117_spill] sm:$0xff]  ;;  %v8999_v8 = vld [vmem:[#allocation100_spill] sm:$0xff] }
 0x615   :  { %v2977_v51 = vmul.f32 %v8998_v7, %v8997_v62  ;;  %v9010_v62 = vld [vmem:[#allocation41_spill] sm:$0xff] }
 0x616   :  { %v3079_v27 = vadd.f32 %v3068_v52, %v2976_v48  ;;  %v3516_v52 = vmul.f32 %v7817_v59, %v8999_v8  ;;  %v3366_v48 = vadd.f32 %v3355_v24, %v3274_v2  ;;  %v3437_v59 = vmul.f32 %v3410_v37, %v9005_v57  ;;  %v9011_v37 = vld [vmem:[#allocation122_spill] sm:$0xff] }
 0x617   :  { %v3207_v49 = vpop.permute.xlu0 %3206  ;;  %v3125_v50 = vpop.permute.xlu1 %3124  ;;  %v3266_v7 = vmul.f32 %v9011_v37, %v9010_v62 }
 0x618   :  { %v3150_v15 = vmul.f32 %v3125_v50, %v8989_v23  ;;  %v3232_v45 = vmul.f32 %v3207_v49, %v8990_v46  ;;  %v3538_v50 = vld [vmem:[#allocation2 + $0x70] sm:$0xff]  ;;  %v3527_v46 = vadd.f32 %v3516_v52, %v3445_v55  ;;  %v3448_v24 = vadd.f32 %v3437_v59, %v3366_v48  ;;  %v9018_v59 = vld [vmem:[#allocation96_spill] sm:$0xff] }
 0x619   :  { %v3549_v6 = vmul.f32 %v3538_v50, %v9008_v22 }
 0x61a   :  { %v3161_v38 = vadd.f32 %v3150_v15, %v3079_v27  ;;  %v9002_v27 = vld [vmem:[#allocation86_spill] sm:$0xff] }
 0x61b   :  { %v3494_v30 = vpop.permute.xlu0 %3493  ;;  %v3330_v0 = vpop.permute.xlu1 %3329 }
 0x61c   :  { %v3243_v10 = vadd.f32 %v3232_v45, %v3161_v38  ;;  %v3356_v23 = vmul.f32 %v3330_v0, %v9002_v27  ;;  %v3447_v45 = vadd.f32 %v3436_v25, %v3365_v21  ;;  %v9004_v38 = vld [vmem:[#allocation104_spill] sm:$0xff]  ;;  %v9014_v25 = vld [vmem:[#allocation29_spill] sm:$0xff] }
 0x61d   :  { %v3540_v0 = vld [vmem:[#allocation2 + $0xa0] sm:$0xff] }
 0x61e   :  { %v3276_v56 = vadd.f32 %v3265_v40, %v3243_v10  ;;  %v3518_v10 = vmul.f32 %v3490_v36, %v9004_v38  ;;  %v3539_v40 = vld [vmem:[#allocation2 + $0x88] sm:$0xff]  ;;  %v3367_v21 = vadd.f32 %v3356_v23, %v3275_v26  ;;  %v3551_v58 = vmul.f32 %v3540_v0, %v9014_v25  ;;  %v9015_v26 = vld [vmem:[#allocation95_spill] sm:$0xff]  ;;  %v9025_v25 = vld [vmem:[#allocation24_spill] sm:$0xff] }
 0x61f   :  { %v3412_v1 = vpop.permute.xlu1 %3411  ;;  %v3045_v39 = vpop.permute.xlu0 %3044  ;;  %v9017_v38 = vld [vmem:[#allocation105_spill] sm:$0xff] }
 0x620   :  { %v3069_v54 = vmul.f32 %v3045_v39, %v8996_v53  ;;  %v3438_v17 = vmul.f32 %v3412_v1, %v9006_v11  ;;  %v9009_v39 = vld [vmem:[#allocation92_spill] sm:$0xff]  ;;  %v9012_v1 = vld [vmem:[#allocation89_spill] sm:$0xff]  ;;  %v3529_v52 = vadd.f32 %v3518_v10, %v3447_v45 }
 0x621   :  { %v3519_v53 = vmul.f32 %v3492_v3, %v9009_v39  ;;  %v3550_v8 = vmul.f32 %v3539_v40, %v9012_v1  ;;  %v3552_v40 = vmul.f32 %v3541_v31, %v9018_v59  ;;  %v9024_v1 = vld [vmem:[#allocation107_spill] sm:$0xff] }
 0x622   :  { %v3080_v15 = vadd.f32 %v3069_v54, %v2977_v51  ;;  %v7906_v51 = vadd.f32 %v3549_v6, %v3527_v46  ;;  %v3449_v48 = vadd.f32 %v3438_v17, %v3367_v21  ;;  %v3542_v46 = vld [vmem:[#allocation2 + $0xd0] sm:$0xff]  ;;  %v7918_v57 = vadd.f32 %v3551_v58, %v3529_v52  ;;  %v9023_v21 = vld [vmem:[#allocation83_spill] sm:$0xff] }
 0x623   :  { %v3127_v19 = vpop.permute.xlu1 %3126  ;;  %v3209_v49 = vpop.permute.xlu0 %3208  ;;  %v7911_v3 = vadd.f32 %v3550_v8, %v3528_v12  ;;  %v9028_v59 = vld [vmem:[#allocation55_spill] sm:$0xff] }
 0x624   :  { %v3151_v34 = vmul.f32 %v3127_v19, %v9003_v61  ;;  %v3233_v2 = vmul.f32 %v3209_v49, %v9007_v5  ;;  %v3530_v49 = vadd.f32 %v3519_v53, %v3448_v24  ;;  %v9016_v61 = vld [vmem:[#allocation93_spill] sm:$0xff]  ;;  %v3599_v10 = vmul.f32 %v7906_v51, %v7906_v51  ;;  %v9019_v5 = vld [vmem:[#allocation67_spill] sm:$0xff]  ;;  %v9021_v53 = vld [vmem:[#allocation70_spill] sm:$0xff] }
 0x625   :  { %v3572_v24 = vsel %vm48_vm0, %v7906_v51, 0.0  ;;  %v3574_v52 = vsel %vm48_vm0, %v7911_v3, 0.0 }
 0x626   :  { %v3162_v9 = vadd.f32 %v3151_v34, %v3080_v15  ;;  %v3520_v34 = vmul.f32 %v3494_v30, %v9016_v61  ;;  %v7924_v22 = vadd.f32 %v3552_v40, %v3530_v49  ;;  %v9020_v30 = vld [vmem:[#allocation103_spill] sm:$0xff]  ;;  %v3611_v37 = vsel %vm48_vm0, %v3599_v10, 0.0  ;;  %v9026_v61 = vld [vmem:[#allocation90_spill] sm:$0xff]  ;;  %v9029_v40 = vld [vmem:[#allocation121_spill] sm:$0xff] }
 0x627   :  { %v3414_v54 = vpop.permute.xlu1 %3413  ;;  %v3332_v55 = vpop.permute.xlu0 %3331  ;;  %v3553_v6 = vmul.f32 %v3542_v46, %v9020_v30  ;;  %v3573_v31 = vadd.f32 %v3572_v24, %v7824_v16  ;;  %v3576_v49 = vsel %vm48_vm0, %v7918_v57, 0.0  ;;  %v9027_v46 = vld [vmem:[#allocation101_spill] sm:$0xff] }
 0x628   :  { %v3244_v36 = vadd.f32 %v3233_v2, %v3162_v9  ;;  %v3357_v43 = vmul.f32 %v3332_v55, %v9013_v14  ;;  %v3439_v50 = vmul.f32 %v3414_v54, %v9015_v26  ;;  %v3531_v17 = vadd.f32 %v3520_v34, %v3449_v48  ;;  %v3543_v9 = vld [vmem:[#allocation2 + $0xe8] sm:$0xff]  ;;  %v9022_v54 = vld [vmem:[#allocation119_spill] sm:$0xff] }
 0x629   :  { %v2978_v55 = vmul.f32 %v9022_v54, %v9021_v53  ;;  %v3554_v8 = vmul.f32 %v3543_v9, %v9024_v1  ;;  %v3602_v26 = vmul.f32 %v7924_v22, %v7924_v22  ;;  %v3575_v16 = vadd.f32 %v3574_v52, %v3573_v31  ;;  %v9030_v54 = vld [vmem:[#allocation57_spill] sm:$0xff]  ;;  %v9031_v1 = vld [vmem:[#allocation36_spill] sm:$0xff] }
 0x62a   :  { %v3277_v19 = vadd.f32 %v3266_v7, %v3244_v36  ;;  %v3368_v27 = vadd.f32 %v3357_v43, %v3276_v56  ;;  %v3600_v56 = vmul.f32 %v7911_v3, %v7911_v3  ;;  %v3601_v7 = vmul.f32 %v7918_v57, %v7918_v57 }
 0x62b   :  { %v3496_v23 = vpop.permute.xlu1 %3495  ;;  %v3047_v15 = vpop.permute.xlu0 %3046  ;;  %v7938_v14 = vadd.f32 %v3553_v6, %v3531_v17  ;;  %v3578_v17 = vsel %vm48_vm0, %v7924_v22, 0.0  ;;  %v3577_v30 = vadd.f32 %v3576_v49, %v3575_v16  ;;  %v3617_v6 = vsel %vm48_vm0, %v3602_v26, 0.0  ;;  %v9032_v26 = vld [vmem:[#allocation69_spill] sm:$0xff] }
 0x62c   :  { %v3521_v45 = vmul.f32 %v3496_v23, %v9017_v38  ;;  %v3450_v11 = vadd.f32 %v3439_v50, %v3368_v27  ;;  %v3070_v2 = vmul.f32 %v3047_v15, %v9019_v5  ;;  %v3613_v48 = vsel %vm48_vm0, %v3600_v56, 0.0 }
 0x62d   :  { %v3615_v10 = vsel %vm48_vm0, %v3601_v7, 0.0  ;;  %v3603_v9 = vmul.f32 %v7938_v14, %v7938_v14 }
 0x62e   :  { %v3532_v39 = vadd.f32 %v3521_v45, %v3450_v11  ;;  %v3081_v43 = vadd.f32 %v3070_v2, %v2978_v55  ;;  %v3612_v45 = vadd.f32 %v3611_v37, %v7830_v29  ;;  %v3267_v11 = vmul.f32 %v9029_v40, %v9028_v59 }
 0x62f   :  { %v3129_v12 = vpop.permute.xlu1 %3128  ;;  %v3334_v0 = vpop.permute.xlu0 %3333  ;;  %v3580_v29 = vsel %vm48_vm0, %v7938_v14, 0.0  ;;  %v3619_v37 = vsel %vm48_vm0, %v3603_v9, 0.0  ;;  %v9034_v9 = vld [vmem:[#allocation76_spill] sm:$0xff] }
 0x630   :  { %v3152_v36 = vmul.f32 %v3129_v12, %v9023_v21  ;;  %v3358_v58 = vmul.f32 %v3334_v0, %v9025_v25  ;;  %v7947_v23 = vadd.f32 %v3554_v8, %v3532_v39  ;;  %v3614_v56 = vadd.f32 %v3613_v48, %v3612_v45  ;;  %v3544_v12 = vld [vmem:[#allocation2 + $0x100] sm:$0xff] }
 0x631   :  { %v3555_v8 = vmul.f32 %v3544_v12, %v9031_v1 }
 0x632   :  { %v3163_v15 = vadd.f32 %v3152_v36, %v3081_v43  ;;  %v3369_v5 = vadd.f32 %v3358_v58, %v3277_v19  ;;  %v3604_v39 = vmul.f32 %v7947_v23, %v7947_v23  ;;  %v3616_v36 = vadd.f32 %v3615_v10, %v3614_v56  ;;  %v9035_v56 = vld [vmem:[#allocation49_spill] sm:$0xff] }
 0x633   :  { %v3211_v50 = vpop.permute.xlu1 %3210  ;;  %v3416_v27 = vpop.permute.xlu0 %3415  ;;  %v3579_v19 = vadd.f32 %v3578_v17, %v3577_v30  ;;  %v3582_v7 = vsel %vm48_vm0, %v7947_v23, 0.0 }
 0x634   :  { %v3234_v34 = vmul.f32 %v3211_v50, %v9026_v61  ;;  %v3440_v38 = vmul.f32 %v3416_v27, %v9027_v46  ;;  %v3618_v43 = vadd.f32 %v3617_v6, %v3616_v36  ;;  %v3621_v48 = vsel %vm48_vm0, %v3604_v39, 0.0  ;;  %v9033_v46 = vld [vmem:[#allocation81_spill] sm:$0xff]  ;;  %v9036_v6 = vld [vmem:[#allocation99_spill] sm:$0xff] }
 0x635   :  { %v3581_v25 = vadd.f32 %v3580_v29, %v3579_v19 }
 0x636   :  { %v3245_v2 = vadd.f32 %v3234_v34, %v3163_v15  ;;  %v3451_v53 = vadd.f32 %v3440_v38, %v3369_v5  ;;  %v3620_v27 = vadd.f32 %v3619_v37, %v3618_v43  ;;  %v2979_v38 = vmul.f32 %v7625_v20, %v9033_v46 }
 0x637   :  { %v3498_v0 = vpop.permute.xlu0 %3497  ;;  %v3213_v24 = vpop.permute.xlu1 %3212  ;;  %v3583_v15 = vadd.f32 %v3582_v7, %v3581_v25  ;;  %v9039_v7 = vld [vmem:[#allocation47_spill] sm:$0xff] }
 0x638   :  { %v3522_v55 = vmul.f32 %v3498_v0, %v9030_v54  ;;  %v3278_v21 = vadd.f32 %v3267_v11, %v3245_v2  ;;  %v3622_v45 = vadd.f32 %v3621_v48, %v3620_v27  ;;  %v3235_v30 = vmul.f32 %v3213_v24, %v9035_v56  ;;  %v9037_v54 = vld [vmem:[#allocation98_spill] sm:$0xff]  ;;  %v9042_v27 = vld [vmem:[#allocation3_spill] sm:$0xff] }
 0x639   :  { %v9041_v48 = vld [vmem:[#allocation106_spill] sm:$0xff] }
 0x63a   :  { %v3533_v52 = vadd.f32 %v3522_v55, %v3451_v53  ;;  %v9038_v55 = vld [vmem:[#allocation32_spill] sm:$0xff] }
 0x63b   :  { %v3049_v58 = vpop.permute.xlu0 %3048  ;;  %v3336_v31 = vpop.permute.xlu1 %3335  ;;  %v3268_v36 = vmul.f32 %v7662_v4, %v9038_v55 }
 0x63c   :  { %v7970_v49 = vadd.f32 %v3555_v8, %v3533_v52  ;;  %v3071_v50 = vmul.f32 %v3049_v58, %v9032_v26  ;;  %v3359_v29 = vmul.f32 %v3336_v31, %v9036_v6  ;;  %v3545_v8 = vld [vmem:[#allocation2 + $0x118] sm:$0xff]  ;;  %v9040_v58 = vld [vmem:[#allocation40_spill] sm:$0xff] }
 0x63e   :  { %v3584_v61 = vsel %vm48_vm0, %v7970_v49, 0.0  ;;  %v3605_v34 = vmul.f32 %v7970_v49, %v7970_v49  ;;  %v3082_v17 = vadd.f32 %v3071_v50, %v2979_v38  ;;  %v3370_v19 = vadd.f32 %v3359_v29, %v3278_v21 }
 0x63f   :  { %v3585_v16 = vadd.f32 %v3584_v61, %v3583_v15  ;;  %v3131_v10 = vpop.permute.xlu0 %3130  ;;  %v3418_v40 = vpop.permute.xlu1 %3417  ;;  %v3556_v15 = vmul.f32 %v3545_v8, %v9042_v27 }
 0x640   :  { %v3623_v11 = vsel %vm48_vm0, %v3605_v34, 0.0  ;;  %v3153_v5 = vmul.f32 %v3131_v10, %v9034_v9  ;;  %v3441_v20 = vmul.f32 %v3418_v40, %v9037_v54  ;;  %v9043_v34 = vld [vmem:[#allocation48_spill] sm:$0xff] }
 0x641   :  { %v3624_v2 = vadd.f32 %v3623_v11, %v3622_v45  ;;  %v9044_v10 = vld [vmem:[#allocation4_spill] sm:$0xff] }
 0x642   :  { %v3164_v12 = vadd.f32 %v3153_v5, %v3082_v17  ;;  %v3452_v25 = vadd.f32 %v3441_v20, %v3370_v19 }
 0x643   :  { %v3338_v0 = vpop.permute.xlu0 %3337  ;;  %v3420_v39 = vpop.permute.xlu1 %3419 }
 0x644   :  { %v3246_v53 = vadd.f32 %v3235_v30, %v3164_v12  ;;  %v3360_v1 = vmul.f32 %v3338_v0, %v9039_v7  ;;  %v3442_v31 = vmul.f32 %v3420_v39, %v9040_v58 }
 0x646   :  { %v3279_v37 = vadd.f32 %v3268_v36, %v3246_v53 }
 0x647   :  { %v3500_v52 = vpop.permute.xlu0 %3499  ;;  %v3502_v43 = vpop.permute.xlu1 %3501 }
 0x648   :  { %v3371_v24 = vadd.f32 %v3360_v1, %v3279_v37  ;;  %v3523_v26 = vmul.f32 %v3500_v52, %v9041_v48  ;;  %v3524_v46 = vmul.f32 %v3502_v43, %v9043_v34  ;;  %v9045_v48 = vld [vmem:[#allocation37_spill] sm:$0xff] }
 0x64a   :  { %v3453_v50 = vadd.f32 %v3442_v31, %v3371_v24  ;;  %v3534_v61 = vadd.f32 %v3523_v26, %v3452_v25  ;;  %v4493_v24 = vld [vmem:[%s8278_s4 + $0x4] sm:$0x3] }
 0x64c   :  { %v3567_v4 = vadd.f32 %v3556_v15, %v3534_v61  ;;  %v3535_v21 = vadd.f32 %v3524_v46, %v3453_v50 }
 0x64e   :  { %v3586_v38 = vsel %vm48_vm0, %v3567_v4, 0.0  ;;  %v3606_v45 = vmul.f32 %v3567_v4, %v3567_v4  ;;  %v3568_v40 = vadd.f32 %v3535_v21, %v9044_v10 }
 0x64f   :  { %v3587_v11 = vadd.f32 %v3586_v38, %v3585_v16 }
 0x650   :  { %v3625_v17 = vsel %vm48_vm0, %v3606_v45, 0.0  ;;  %v3588_v9 = vsel %vm48_vm0, %v3568_v40, 0.0  ;;  %v3607_v5 = vmul.f32 %v3568_v40, %v3568_v40  ;;  %v9046_v45 = vld [vmem:[#allocation52_spill] sm:$0xff] }
 0x651   :  { %v3626_v56 = vadd.f32 %v3625_v17, %v3624_v2  ;;  %v3589_v30 = vadd.f32 %v3588_v9, %v3587_v11 }
 0x652   :  { %v3627_v6 = vsel %vm48_vm0, %v3607_v5, 0.0 }
 0x653   :  { %v3590_v29 = vrot.slane %v3589_v30, 4  ;;  %v3628_v12 = vadd.f32 %v3627_v6, %v3626_v56 }
 0x655   :  { %v3591_v0 = vadd.f32 %v3590_v29, %v3589_v30  ;;  %v3629_v39 = vrot.slane %v3628_v12, 4 }
 0x657   :  { %v3592_v53 = vrot.slane %v3591_v0, 2  ;;  %v3630_v54 = vadd.f32 %v3629_v39, %v3628_v12 }
 0x659   :  { %v3593_v20 = vadd.f32 %v3592_v53, %v3591_v0  ;;  %v3631_v36 = vrot.slane %v3630_v54, 2  ;;  %v9048_v53 = vld [vmem:[#allocation25_spill] sm:$0xff] }
 0x65b   :  { %v3594_v19 = vrot.slane %v3593_v20, 1  ;;  %v3632_v37 = vadd.f32 %v3631_v36, %v3630_v54 }
 0x65d   :  { %v3595_v16 = vadd.f32 %v3594_v19, %v3593_v20  ;;  %v3633_v7 = vrot.slane %v3632_v37, 1  ;;  %v9049_v19 = vld [vmem:[#allocation94_spill] sm:$0xff] }
 0x65f   :  { %v3596_v1 = vmul.f32 0.011904762, %v3595_v16  ;;  %v3634_v8 = vadd.f32 %v3633_v7, %v3632_v37 }
 0x661   :  { %v3635_v52 = vmul.f32 0.011904762, %v3634_v8  ;;  %v3636_v43 = vmul.f32 %v3596_v1, %v3596_v1 }
 0x663   :  { %v3637_v2 = vsub.f32 %v3635_v52, %v3636_v43 }
 0x665   :  { %v3638_v25 = vadd.f32 1e-05, %v3637_v2  ;;  %v9051_v2 = vld [vmem:[#allocation27_spill] sm:$0xff] }
 0x667   :  { %5084 = vrsqrt.f32 %v3638_v25 }
 0x671   :  { %v5085_v58 = vpop.eup %5084 }
 0x672   :  { %v3640_v31 = vmul.f32 %v5085_v58, %v4493_v24 }
 0x674   :  { %v3644_v26 = vrot.slane %v3640_v31, %v9045_v48  ;;  %v3656_v50 = vmul.f32 %v3640_v31, %v3596_v1  ;;  %v9050_v1 = vld [vmem:[#allocation14_spill] sm:$0xff] }
 0x675   :  { %v9052_v31 = vld [vmem:[#allocation34_spill] sm:$0xff] }
 0x676   :  { %v3655_v27 = vmul.f32 %v3644_v26, %v3568_v40  ;;  %v3658_v15 = vrot.slane %v3656_v50, 7  ;;  %v3645_v61 = vmul.f32 %v3644_v26, %v7801_v33  ;;  %v3646_v34 = vmul.f32 %v3644_v26, %v7813_v41 }
 0x677   :  { %v3653_v21 = vmul.f32 %v3644_v26, %v7970_v49  ;;  %v3654_v38 = vmul.f32 %v3644_v26, %v3567_v4  ;;  %v3647_v11 = vmul.f32 %v3644_v26, %v7906_v51  ;;  %v3648_v17 = vmul.f32 %v3644_v26, %v7911_v3 }
 0x678   :  { %v3660_v46 = vsub.f32 %v4493_v24, %v3658_v15  ;;  %v3649_v9 = vmul.f32 %v3644_v26, %v7918_v57  ;;  %v3650_v5 = vmul.f32 %v3644_v26, %v7924_v22  ;;  %v3651_v40 = vmul.f32 %v3644_v26, %v7938_v14  ;;  %v9047_v57 = vld [vmem:[#allocation97_spill] sm:$0xff]  ;;  %v9053_v15 = vld [vmem:[#allocation108_spill] sm:$0xff] }
 0x679   :  { %v3652_v33 = vmul.f32 %v3644_v26, %v7947_v23 }
 0x67a   :  { %v3664_v10 = vrot.slane %v3660_v46, %v9046_v45 }
 0x67c   :  { %v3675_v56 = vadd.f32 %v3664_v10, %v3655_v27  ;;  %v3665_v41 = vadd.f32 %v3664_v10, %v3645_v61  ;;  %v3666_v30 = vadd.f32 %v3664_v10, %v3646_v34  ;;  %v3667_v6 = vadd.f32 %v3664_v10, %v3647_v11 }
 0x67d   :  { %v3668_v49 = vadd.f32 %v3664_v10, %v3648_v17  ;;  %v3669_v4 = vadd.f32 %v3664_v10, %v3649_v9  ;;  %v3670_v29 = vadd.f32 %v3664_v10, %v3650_v5  ;;  %v3671_v12 = vadd.f32 %v3664_v10, %v3651_v40  ;;  %v9055_v17 = vld [vmem:[#allocation110_spill] sm:$0xff] }
 0x67e   :  { %v3676_v51 = vmul.f32 %v3665_v41, %v8776_v18  ;;  %v3677_v3 = vmul.f32 %v3666_v30, %v8778_v47  ;;  %v3672_v0 = vadd.f32 %v3664_v10, %v3652_v33  ;;  %v3678_v23 = vmul.f32 %v3667_v6, %v8947_v42  ;;  %v9056_v33 = vld [vmem:[#allocation111_spill] sm:$0xff] }
 0x67f   :  { %v3673_v54 = vadd.f32 %v3664_v10, %v3653_v21  ;;  %v3674_v20 = vadd.f32 %v3664_v10, %v3654_v38  ;;  %v3679_v16 = vmul.f32 %v3668_v49, %v8959_v32  ;;  %v3680_v52 = vmul.f32 %v3669_v4, %v8969_v60  ;;  %v9054_v21 = vld [vmem:[#allocation109_spill] sm:$0xff]  ;;  %v9057_v49 = vld [vmem:[#allocation112_spill] sm:$0xff] }
 0x680   :  { %v3687_v39 = vadd.f32 %v3676_v51, %v9047_v57  ;;  %v3688_v14 = vadd.f32 %v3677_v3, %v9048_v53  ;;  %v3689_v37 = vadd.f32 %v3678_v23, %v9049_v19  ;;  %v3681_v24 = vmul.f32 %v3670_v29, %v8977_v28 }
 0x681   :  { %v3690_v8 = vadd.f32 %v3679_v16, %v9050_v1  ;;  %v3691_v25 = vadd.f32 %v3680_v52, %v9051_v2  ;;  %v3682_v50 = vmul.f32 %v3671_v12, %v8984_v35  ;;  %v3683_v34 = vmul.f32 %v3672_v0, %v8991_v63 }
 0x682   :  { %v3698_v22 = vmax.f32 %v3687_v39, 0.0  ;;  %v3699_v36 = vmax.f32 %v3688_v14, 0.0  ;;  %v3700_v7 = vmax.f32 %v3689_v37, 0.0  ;;  %v3692_v26 = vadd.f32 %v3681_v24, %v9052_v31 }
 0x683   :  { %v3701_v43 = vmax.f32 %v3690_v8, 0.0  ;;  %v3702_v58 = vmax.f32 %v3691_v25, 0.0  ;;  %v3693_v61 = vadd.f32 %v3682_v50, %v9053_v15  ;;  %v3694_v38 = vadd.f32 %v3683_v34, %v9054_v21 }
 0x684   :  { %4798 = vmatmul.mubr.msk.f32.vlgmr.msra.gmra.mrb[62].mxu0 %vm48_vm0, %v3698_v22  ;;  %v3703_v27 = vmax.f32 %v3692_v26, 0.0  ;;  %v3684_v10 = vmul.f32 %v3673_v54, %v9010_v62  ;;  %v3685_v5 = vmul.f32 %v3674_v20, %v9028_v59  ;;  %v3686_v30 = vmul.f32 %v3675_v56, %v9038_v55 }
 0x685   :  { %4800 = vmatprep.mubr.msk.f32.mxu0 %vm5105_vm1, %v7754_v44  ;;  %v3704_v46 = vmax.f32 %v3693_v61, 0.0  ;;  %v3705_v11 = vmax.f32 %v3694_v38, 0.0 }
 0x686   :  { %v3695_v9 = vadd.f32 %v3684_v10, %v9055_v17  ;;  %v3696_v41 = vadd.f32 %v3685_v5, %v9056_v33  ;;  %v3697_v4 = vadd.f32 %v3686_v30, %v9057_v49 }
 0x688   :  { %4801 = vmatmul.mubr.msk.f32.gmra.mrb[64].mxu0 %vm48_vm0, %v3699_v36  ;;  %v3706_v40 = vmax.f32 %v3695_v9, 0.0  ;;  %v3707_v6 = vmax.f32 %v3696_v41, 0.0  ;;  %v3708_v29 = vmax.f32 %v3697_v4, 0.0 }
 0x689   :  { %4803 = vmatprep.mubr.msk.f32.mxu0 %vm5105_vm1, %v7754_v44 }
 0x68c   :  { %4804 = vmatmul.mubr.msk.f32.gmra.mrb[66].mxu0 %vm48_vm0, %v3700_v7 }
 0x68d   :  { %4806 = vmatprep.mubr.msk.f32.mxu0 %vm5105_vm1, %v7754_v44 }
 0x690   :  { %4807 = vmatmul.mubr.msk.f32.gmra.mrb[68].mxu0 %vm48_vm0, %v3701_v43 }
 0x691   :  { %4809 = vmatprep.mubr.msk.f32.mxu0 %vm5105_vm1, %v7754_v44 }
 0x694   :  { %4810 = vmatmul.mubr.msk.f32.gmra.mrb[70].mxu0 %vm48_vm0, %v3702_v58 }
 0x695   :  { %4812 = vmatprep.mubr.msk.f32.mxu0 %vm5105_vm1, %v7754_v44 }
 0x698   :  { %4813 = vmatmul.mubr.msk.f32.gmra.mrb[72].mxu0 %vm48_vm0, %v3703_v27 }
 0x699   :  { %4815 = vmatprep.mubr.msk.f32.mxu0 %vm5105_vm1, %v7754_v44 }
 0x69c   :  { %4816 = vmatmul.mubr.msk.f32.gmra.mrb[74].mxu0 %vm48_vm0, %v3704_v46 }
 0x69d   :  { %4818 = vmatprep.mubr.msk.f32.mxu0 %vm5105_vm1, %v7754_v44 }
 0x6a0   :  { %4819 = vmatmul.mubr.msk.f32.gmra.mrb[76].mxu0 %vm48_vm0, %v3705_v11 }
 0x6a1   :  { %4821 = vmatprep.mubr.msk.f32.mxu0 %vm5105_vm1, %v7754_v44 }
 0x6a4   :  { %4822 = vmatmul.mubr.msk.f32.gmra.mrb[78].mxu0 %vm48_vm0, %v3706_v40 }
 0x6a5   :  { %4824 = vmatprep.mubr.msk.f32.mxu0 %vm5105_vm1, %v7754_v44 }
 0x6a8   :  { %4825 = vmatmul.mubr.msk.f32.gmra.mrb[80].mxu0 %vm48_vm0, %v3707_v6 }
 0x6a9   :  { %4827 = vmatprep.mubr.msk.f32.mxu0 %vm5105_vm1, %v7754_v44 }
 0x6ac   :  { %4828 = vmatmul.mubr.msk.f32.gmra.mrb[82].mxu0 %vm48_vm0, %v3708_v29 }
 0x757   :  { %v8063_v12 = vpop.f32.mrb[62].mxu0 }
 0x758   :  { %v4799_v51 = vpop.f32.mrb[63].mxu0  ;;  %v3898_v56 = vmul.f32 %v8063_v12, %v8063_v12  ;;  %v3870_v0 = vsel %vm3869_vm6, %v8063_v12, 0.0 }
 0x75a   :  { %v3909_v53 = vsel %vm3869_vm6, %v3898_v56, 0.0 }
 0x75b   :  { %v8067_v3 = vpop.f32.mrb[64].mxu0 }
 0x75c   :  { %v3871_v57 = vsel %vm3869_vm6, %v8067_v3, 0.0  ;;  %v3899_v44 = vmul.f32 %v8067_v3, %v8067_v3  ;;  %v4802_v39 = vpop.f32.mrb[65].mxu0 }
 0x75d   :  { %v3872_v22 = vadd.f32 %v3871_v57, %v3870_v0 }
 0x75e   :  { %v3910_v14 = vsel %vm3869_vm6, %v3899_v44, 0.0 }
 0x75f   :  { %v3911_v23 = vadd.f32 %v3910_v14, %v3909_v53  ;;  %v8077_v54 = vpop.f32.mrb[66].mxu0 }
 0x760   :  { %v3873_v20 = vsel %vm3869_vm6, %v8077_v54, 0.0  ;;  %v3900_v36 = vmul.f32 %v8077_v54, %v8077_v54  ;;  %v4805_v19 = vpop.f32.mrb[67].mxu0 }
 0x761   :  { %v3874_v37 = vadd.f32 %v3873_v20, %v3872_v22 }
 0x762   :  { %v3912_v16 = vsel %vm3869_vm6, %v3900_v36, 0.0 }
 0x763   :  { %v3913_v7 = vadd.f32 %v3912_v16, %v3911_v23  ;;  %v8084_v1 = vpop.f32.mrb[68].mxu0 }
 0x764   :  { %v3875_v8 = vsel %vm3869_vm6, %v8084_v1, 0.0  ;;  %v3901_v52 = vmul.f32 %v8084_v1, %v8084_v1  ;;  %v4808_v43 = vpop.f32.mrb[69].mxu0 }
 0x765   :  { %v3876_v2 = vadd.f32 %v3875_v8, %v3874_v37 }
 0x766   :  { %v3914_v25 = vsel %vm3869_vm6, %v3901_v52, 0.0 }
 0x767   :  { %v3915_v24 = vadd.f32 %v3914_v25, %v3913_v7  ;;  %v8091_v58 = vpop.f32.mrb[70].mxu0 }
 0x768   :  { %v3877_v31 = vsel %vm3869_vm6, %v8091_v58, 0.0  ;;  %v3902_v26 = vmul.f32 %v8091_v58, %v8091_v58  ;;  %v4811_v50 = vpop.f32.mrb[71].mxu0 }
 0x769   :  { %v3878_v27 = vadd.f32 %v3877_v31, %v3876_v2 }
 0x76a   :  { %v3916_v15 = vsel %vm3869_vm6, %v3902_v26, 0.0 }
 0x76b   :  { %v3917_v61 = vadd.f32 %v3916_v15, %v3915_v24  ;;  %v8098_v34 = vpop.f32.mrb[72].mxu0 }
 0x76c   :  { %v3879_v46 = vsel %vm3869_vm6, %v8098_v34, 0.0  ;;  %v3903_v21 = vmul.f32 %v8098_v34, %v8098_v34  ;;  %v4814_v38 = vpop.f32.mrb[73].mxu0 }
 0x76d   :  { %v3880_v10 = vadd.f32 %v3879_v46, %v3878_v27 }
 0x76e   :  { %v3918_v11 = vsel %vm3869_vm6, %v3903_v21, 0.0 }
 0x76f   :  { %v3919_v17 = vadd.f32 %v3918_v11, %v3917_v61  ;;  %v8105_v9 = vpop.f32.mrb[74].mxu0 }
 0x770   :  { %v3881_v5 = vsel %vm3869_vm6, %v8105_v9, 0.0  ;;  %v3904_v40 = vmul.f32 %v8105_v9, %v8105_v9  ;;  %v4817_v33 = vpop.f32.mrb[75].mxu0 }
 0x771   :  { %v3882_v41 = vadd.f32 %v3881_v5, %v3880_v10 }
 0x772   :  { %v3920_v30 = vsel %vm3869_vm6, %v3904_v40, 0.0 }
 0x773   :  { %v3921_v6 = vadd.f32 %v3920_v30, %v3919_v17  ;;  %v3848_v49 = vpop.f32.mrb[76].mxu0 }
 0x774   :  { %v3883_v4 = vsel %vm3869_vm6, %v3848_v49, 0.0  ;;  %v3905_v29 = vmul.f32 %v3848_v49, %v3848_v49  ;;  %v4820_v51 = vpop.f32.mrb[77].mxu0 }
 0x775   :  { %v3884_v56 = vadd.f32 %v3883_v4, %v3882_v41  ;;  %v4577_v51 = vld [vmem:[%s8278_s4 + $0x6] sm:$0x3] }
 0x776   :  { %v3922_v0 = vsel %vm3869_vm6, %v3905_v29, 0.0 }
 0x777   :  { %v3923_v57 = vadd.f32 %v3922_v0, %v3921_v6  ;;  %v3853_v44 = vpop.f32.mrb[78].mxu0 }
 0x778   :  { %v3885_v39 = vsel %vm3869_vm6, %v3853_v44, 0.0  ;;  %v3906_v22 = vmul.f32 %v3853_v44, %v3853_v44  ;;  %v4823_v53 = vpop.f32.mrb[79].mxu0 }
 0x779   :  { %v3886_v14 = vadd.f32 %v3885_v39, %v3884_v56 }
 0x77a   :  { %v3924_v23 = vsel %vm3869_vm6, %v3906_v22, 0.0 }
 0x77b   :  { %v3925_v20 = vadd.f32 %v3924_v23, %v3923_v57  ;;  %v3858_v36 = vpop.f32.mrb[80].mxu0 }
 0x77c   :  { %v3887_v19 = vsel %vm3869_vm6, %v3858_v36, 0.0  ;;  %v3907_v37 = vmul.f32 %v3858_v36, %v3858_v36  ;;  %v4826_v16 = vpop.f32.mrb[81].mxu0 }
 0x77d   :  { %v3888_v7 = vadd.f32 %v3887_v19, %v3886_v14 }
 0x77e   :  { %v3926_v8 = vsel %vm3869_vm6, %v3907_v37, 0.0 }
 0x77f   :  { %v3927_v52 = vadd.f32 %v3926_v8, %v3925_v20  ;;  %v3863_v43 = vpop.f32.mrb[82].mxu0 }
 0x780   :  { %v3889_v2 = vsel %vm3869_vm6, %v3863_v43, 0.0  ;;  %v3908_v25 = vmul.f32 %v3863_v43, %v3863_v43  ;;  %v4829_v24 = vpop.f32.mrb[83].mxu0 }
 0x781   :  { %v3890_v31 = vadd.f32 %v3889_v2, %v3888_v7 }
 0x782   :  { %v3928_v26 = vsel %vm3869_vm6, %v3908_v25, 0.0 }
 0x783   :  { %v3891_v50 = vrot.slane %v3890_v31, 4  ;;  %v3929_v27 = vadd.f32 %v3928_v26, %v3927_v52 }
 0x785   :  { %v3892_v15 = vadd.f32 %v3891_v50, %v3890_v31  ;;  %v3930_v61 = vrot.slane %v3929_v27, 4 }
 0x787   :  { %v3893_v46 = vrot.slane %v3892_v15, 2  ;;  %v3931_v21 = vadd.f32 %v3930_v61, %v3929_v27 }
 0x789   :  { %v3894_v38 = vadd.f32 %v3893_v46, %v3892_v15  ;;  %v3932_v10 = vrot.slane %v3931_v21, 2 }
 0x78b   :  { %v3895_v11 = vrot.slane %v3894_v38, 1  ;;  %v3933_v17 = vadd.f32 %v3932_v10, %v3931_v21 }
 0x78d   :  { %v3896_v5 = vadd.f32 %v3895_v11, %v3894_v38  ;;  %v3934_v40 = vrot.slane %v3933_v17, 1 }
 0x78f   :  { %v3897_v33 = vmul.f32 0.011904762, %v3896_v5  ;;  %v3935_v41 = vadd.f32 %v3934_v40, %v3933_v17 }
 0x791   :  { %v3936_v30 = vmul.f32 0.011904762, %v3935_v41  ;;  %v3937_v6 = vmul.f32 %v3897_v33, %v3897_v33 }
 0x793   :  { %v3938_v4 = vsub.f32 %v3936_v30, %v3937_v6 }
 0x795   :  { %v3939_v29 = vadd.f32 1e-05, %v3938_v4 }
 0x797   :  { %5086 = vrsqrt.f32 %v3939_v29  ;;  %v8163_v29 = vld [vmem:[%s8279_s5 + $0x10] sm:$0xff] }
 0x7a1   :  { %v5087_v56 = vpop.eup %5086 }
 0x7a2   :  { %v3941_v0 = vmul.f32 %v5087_v56, %v4577_v51 }
 0x7a4   :  { %v3945_v57 = vrot.slane %v3941_v0, %v9045_v48  ;;  %v3957_v39 = vmul.f32 %v3941_v0, %v3897_v33 }
 0x7a6   :  { %v3956_v22 = vmul.f32 %v3945_v57, %v3863_v43  ;;  %v3959_v53 = vrot.slane %v3957_v39, 7  ;;  %v3947_v14 = vmul.f32 %v3945_v57, %v8067_v3  ;;  %v3946_v23 = vmul.f32 %v3945_v57, %v8063_v12 }
 0x7a7   :  { %v3948_v20 = vmul.f32 %v3945_v57, %v8077_v54  ;;  %v3949_v19 = vmul.f32 %v3945_v57, %v8084_v1  ;;  %v3950_v37 = vmul.f32 %v3945_v57, %v8091_v58  ;;  %v3951_v16 = vmul.f32 %v3945_v57, %v8098_v34 }
 0x7a8   :  { %v3961_v7 = vsub.f32 %v4577_v51, %v3959_v53  ;;  %v3952_v8 = vmul.f32 %v3945_v57, %v8105_v9  ;;  %v3953_v52 = vmul.f32 %v3945_v57, %v3848_v49  ;;  %v3954_v2 = vmul.f32 %v3945_v57, %v3853_v44  ;;  %v8168_v51 = vld [vmem:[%s8279_s5 + $0x18] sm:$0xff]  ;;  %v8182_v53 = vld [vmem:[%s8279_s5 + $0x28] sm:$0xff] }
 0x7a9   :  { %v3955_v25 = vmul.f32 %v3945_v57, %v3858_v36 }
 0x7aa   :  { %v3965_v43 = vrot.slane %v3961_v7, %v9046_v45 }
 0x7ac   :  { %v3976_v24 = vadd.f32 %v3965_v43, %v3956_v22  ;;  %v3967_v3 = vadd.f32 %v3965_v43, %v3947_v14  ;;  %v3966_v31 = vadd.f32 %v3965_v43, %v3946_v23  ;;  %v3968_v12 = vadd.f32 %v3965_v43, %v3948_v20  ;;  %v8177_v22 = vld [vmem:[%s8279_s5 + $0x20] sm:$0xff] }
 0x7ad   :  { %v3969_v26 = vadd.f32 %v3965_v43, %v3949_v19  ;;  %v3970_v54 = vadd.f32 %v3965_v43, %v3950_v37  ;;  %v3971_v50 = vadd.f32 %v3965_v43, %v3951_v16  ;;  %v3972_v1 = vadd.f32 %v3965_v43, %v3952_v8  ;;  %v8191_v37 = vld [vmem:[%s8279_s5 + $0x30] sm:$0xff]  ;;  %v8196_v16 = vld [vmem:[%s8279_s5 + $0x38] sm:$0xff] }
 0x7ae   :  { %v3978_v58 = vmul.f32 %v3967_v3, %v8778_v47  ;;  %v3977_v34 = vmul.f32 %v3966_v31, %v8776_v18  ;;  %v3979_v27 = vmul.f32 %v3968_v12, %v8947_v42  ;;  %v3973_v36 = vadd.f32 %v3965_v43, %v3953_v52 }
 0x7af   :  { %v3980_v44 = vmul.f32 %v3969_v26, %v8959_v32  ;;  %v3974_v15 = vadd.f32 %v3965_v43, %v3954_v2  ;;  %v3975_v61 = vadd.f32 %v3965_v43, %v3955_v25  ;;  %v3981_v38 = vmul.f32 %v3970_v54, %v8969_v60  ;;  %v8205_v25 = vld [vmem:[%s8279_s5 + $0x40] sm:$0xff]  ;;  %v8210_v43 = vld [vmem:[%s8279_s5 + $0x48] sm:$0xff]  ;;  %v8219_v26 = vld [vmem:[%s8279_s5 + $0x50] sm:$0xff] }
 0x7b0   :  { %v3989_v9 = vmax.f32 %v3978_v58, 0.0  ;;  %v3988_v49 = vmax.f32 %v3977_v34, 0.0  ;;  %v3990_v46 = vmax.f32 %v3979_v27, 0.0  ;;  %v3982_v10 = vmul.f32 %v3971_v50, %v8977_v28 }
 0x7b1   :  { %v3991_v21 = vmax.f32 %v3980_v44, 0.0  ;;  %v3992_v18 = vmax.f32 %v3981_v38, 0.0  ;;  %v3983_v42 = vmul.f32 %v3972_v1, %v8984_v35  ;;  %v3984_v11 = vmul.f32 %v3973_v36, %v8991_v63 }
 0x7b2   :  { %4085 = vperm.xlu1 %5049, %v3989_v9   ;;  %4081 = vperm.xlu0 %5048, %v3988_v49   ;;  %v3993_v47 = vmax.f32 %v3982_v10, 0.0  ;;  %v3985_v5 = vmul.f32 %v3974_v15, %v9010_v62  ;;  %v3986_v40 = vmul.f32 %v3975_v61, %v9028_v59  ;;  %v3987_v60 = vmul.f32 %v3976_v24, %v9038_v55  ;;  %v8151_v62 = vld [vmem:[%s8279_s5 + $0x8] sm:$0xff]  ;;  %v8156_v59 = vld [vmem:[%s8279_s5] sm:$0xff]  ;;  %s5116_s5 = smov 114  }
 0x7b3   :  { %v3994_v32 = vmax.f32 %v3983_v42, 0.0  ;;  %v3995_v17 = vmax.f32 %v3984_v11, 0.0  ;;  %v9058_v35 = vmov 2   ;;  %v9059_v63 = vmov 0  }
 0x7b4   :  { %v3996_v28 = vmax.f32 %v3985_v5, 0.0  ;;  %v3997_v33 = vmax.f32 %v3986_v40, 0.0  ;;  %v3998_v41 = vmax.f32 %v3987_v60, 0.0 }
 0x7b6   :  { %4089 = vperm.xlu1 %5049, %v3990_v46   ;;  %4093 = vperm.xlu0 %5048, %v3991_v21  }
 0x7ba   :  { %4097 = vperm.xlu1 %5049, %v3992_v18   ;;  %4101 = vperm.xlu0 %5048, %v3993_v47  }
 0x7be   :  { %4105 = vperm.xlu1 %5049, %v3994_v32   ;;  %4109 = vperm.xlu0 %5048, %v3995_v17  }
 0x7c2   :  { %4113 = vperm.xlu1 %5049, %v3996_v28   ;;  %4117 = vperm.xlu0 %5048, %v3997_v33  }
 0x7c6   :  { %4121 = vperm.xlu1 %5049, %v3998_v41   ;;  %5050 = vset.pattern.permute.xlu0 %v9058_v35 }
 0x7c7   :  { %4191 = vperm.xlu0 %5050, %v3988_v49  }
 0x7ca   :  { %5051 = vset.pattern.permute.xlu1 %v9058_v35 }
 0x7cb   :  { %4195 = vperm.xlu1 %5051, %v3989_v9   ;;  %4203 = vperm.xlu0 %5050, %v3991_v21  }
 0x7cf   :  { %4199 = vperm.xlu1 %5051, %v3990_v46   ;;  %4211 = vperm.xlu0 %5050, %v3993_v47  }
 0x7d3   :  { %4207 = vperm.xlu1 %5051, %v3992_v18   ;;  %4219 = vperm.xlu0 %5050, %v3995_v17  }
 0x7d7   :  { %4215 = vperm.xlu1 %5051, %v3994_v32   ;;  %4227 = vperm.xlu0 %5050, %v3997_v33  }
 0x7db   :  { %4223 = vperm.xlu1 %5051, %v3996_v28   ;;  %5052 = vset.pattern.permute.xlu0 %v9059_v63 }
 0x7dc   :  { %4016 = vperm.xlu0 %5052, %v3988_v49  }
 0x7df   :  { %4231 = vperm.xlu1 %5051, %v3998_v41  }
 0x7e0   :  { %4031 = vperm.xlu0 %5052, %v3991_v21  }
 0x7e3   :  { %5053 = vset.pattern.permute.xlu1 %v9059_v63 }
 0x7e4   :  { %4021 = vperm.xlu1 %5053, %v3989_v9   ;;  %4041 = vperm.xlu0 %5052, %v3993_v47  }
 0x7e8   :  { %4026 = vperm.xlu1 %5053, %v3990_v46   ;;  %4051 = vperm.xlu0 %5052, %v3995_v17  }
 0x7ec   :  { %4036 = vperm.xlu1 %5053, %v3992_v18   ;;  %4061 = vperm.xlu0 %5052, %v3997_v33  }
 0x7f0   :  { %4046 = vperm.xlu1 %5053, %v3994_v32   ;;  %5079 = vset.pattern.permute.xlu0 %v9058_v35 }
 0x7f4   :  { %4056 = vperm.xlu1 %5053, %v3996_v28  }
 0x7f8   :  { %4066 = vperm.xlu1 %5053, %v3998_v41  }
 0x831   :  { %v4086_v55 = vpop.permute.xlu1 %4085  ;;  %v4082_v30 = vpop.permute.xlu0 %4081 }
 0x832   :  { %v4125_v6 = vmul.f32 %v4086_v55, %v8151_v62  ;;  %v4124_v4 = vmul.f32 %v4082_v30, %v8156_v59 }
 0x834   :  { %4148 = vrot.lane.b32.xlu0 %v4125_v6, %s5115_s28  ;;  %4146 = vrot.lane.b32.xlu1 %v4124_v4, %s5115_s28 }
 0x835   :  { %v4090_v56 = vpop.permute.xlu1 %4089  ;;  %v4094_v0 = vpop.permute.xlu0 %4093 }
 0x836   :  { %v4126_v57 = vmul.f32 %v4090_v56, %v8163_v29  ;;  %v4127_v39 = vmul.f32 %v4094_v0, %v8168_v51 }
 0x838   :  { %4150 = vrot.lane.b32.xlu1 %v4126_v57, %s5115_s28  ;;  %4152 = vrot.lane.b32.xlu0 %v4127_v39, %s5115_s28 }
 0x839   :  { %v4098_v14 = vpop.permute.xlu1 %4097  ;;  %v4102_v23 = vpop.permute.xlu0 %4101 }
 0x83a   :  { %v4128_v20 = vmul.f32 %v4098_v14, %v8177_v22  ;;  %v4129_v19 = vmul.f32 %v4102_v23, %v8182_v53 }
 0x83c   :  { %4154 = vrot.lane.b32.xlu1 %v4128_v20, %s5115_s28  ;;  %4156 = vrot.lane.b32.xlu0 %v4129_v19, %s5115_s28 }
 0x83d   :  { %v4106_v7 = vpop.permute.xlu1 %4105  ;;  %v4110_v8 = vpop.permute.xlu0 %4109 }
 0x83e   :  { %v4130_v52 = vmul.f32 %v4106_v7, %v8191_v37  ;;  %v4131_v2 = vmul.f32 %v4110_v8, %v8196_v16 }
 0x840   :  { %4158 = vrot.lane.b32.xlu1 %v4130_v52, %s5115_s28  ;;  %4160 = vrot.lane.b32.xlu0 %v4131_v2, %s5115_s28 }
 0x841   :  { %v4114_v24 = vpop.permute.xlu1 %4113  ;;  %v4118_v3 = vpop.permute.xlu0 %4117 }
 0x842   :  { %v4132_v31 = vmul.f32 %v4114_v24, %v8205_v25  ;;  %v4133_v12 = vmul.f32 %v4118_v3, %v8210_v43 }
 0x844   :  { %4162 = vrot.lane.b32.xlu0 %v4132_v31, %s5115_s28  ;;  %4164 = vrot.lane.b32.xlu1 %v4133_v12, %s5115_s28 }
 0x845   :  { %v4122_v54 = vpop.permute.xlu1 %4121 }
 0x846   :  { %v4134_v50 = vmul.f32 %v4122_v54, %v8219_v26  ;;  %v4192_v1 = vpop.permute.xlu0 %4191 }
 0x847   :  { %v4234_v27 = vmul.f32 %v4192_v1, %v8156_v59 }
 0x848   :  { %4166 = vrot.lane.b32.xlu0 %v4134_v50, %s5115_s28 }
 0x84a   :  { %v4196_v58 = vpop.permute.xlu1 %4195  ;;  %v4204_v34 = vpop.permute.xlu0 %4203 }
 0x84b   :  { %v4235_v9 = vmul.f32 %v4196_v58, %v8151_v62  ;;  %v4237_v15 = vmul.f32 %v4204_v34, %v8168_v51 }
 0x84d   :  { %v5054_v49 = vpack.i.bf16 %v4235_v9, %v4234_v27 }
 0x84e   :  { %v4200_v44 = vpop.permute.xlu1 %4199  ;;  %v4212_v36 = vpop.permute.xlu0 %4211 }
 0x84f   :  { %v4236_v61 = vmul.f32 %v4200_v44, %v8163_v29  ;;  %5055 = vrot.lane.b32.xlu1 %v5054_v49, %s5116_s5  ;;  %v4239_v10 = vmul.f32 %v4212_v36, %v8182_v53 }
 0x851   :  { %v5059_v46 = vpack.i.bf16 %v4237_v15, %v4236_v61 }
 0x852   :  { %v4208_v21 = vpop.permute.xlu1 %4207  ;;  %v4220_v38 = vpop.permute.xlu0 %4219 }
 0x853   :  { %v4238_v18 = vmul.f32 %v4208_v21, %v8177_v22  ;;  %5060 = vrot.lane.b32.xlu0 %v5059_v46, %s5116_s5  ;;  %v4241_v11 = vmul.f32 %v4220_v38, %v8196_v16 }
 0x855   :  { %v5064_v47 = vpack.i.bf16 %v4239_v10, %v4238_v18 }
 0x856   :  { %v4216_v42 = vpop.permute.xlu1 %4215  ;;  %v4228_v17 = vpop.permute.xlu0 %4227 }
 0x857   :  { %v4240_v32 = vmul.f32 %v4216_v42, %v8191_v37  ;;  %5065 = vrot.lane.b32.xlu1 %v5064_v47, %s5116_s5  ;;  %v4243_v60 = vmul.f32 %v4228_v17, %v8210_v43 }
 0x859   :  { %v5069_v5 = vpack.i.bf16 %v4241_v11, %v4240_v32  ;;  %v5099_v11 = vld [vmem:[#allocation2] sm:$0xff] }
 0x85a   :  { %v4224_v40 = vpop.permute.xlu1 %4223 }
 0x85b   :  { %v4242_v28 = vmul.f32 %v4224_v40, %v8205_v25  ;;  %5070 = vrot.lane.b32.xlu0 %v5069_v5, %s5116_s5  ;;  %v4017_v55 = vpop.permute.xlu0 %4016 }
 0x85c   :  { %v4069_v20 = vmul.f32 %v4017_v55, %v8156_v59 }
 0x85d   :  { %v5074_v33 = vpack.i.bf16 %v4243_v60, %v4242_v28 }
 0x85e   :  { %v4232_v41 = vpop.permute.xlu1 %4231 }
 0x85f   :  { %v4244_v35 = vmul.f32 %v4232_v41, %v8219_v26  ;;  %5075 = vrot.lane.b32.xlu1 %v5074_v33, %s5116_s5  ;;  %v4032_v6 = vpop.permute.xlu0 %4031 }
 0x860   :  { %v4072_v24 = vmul.f32 %v4032_v6, %v8168_v51 }
 0x861   :  { %4358 = vrot.lane.b32.xlu0 %v4244_v35, %s5116_s5 }
 0x863   :  { %v4022_v63 = vpop.permute.xlu1 %4021  ;;  %v4042_v56 = vpop.permute.xlu0 %4041 }
 0x864   :  { %v4070_v19 = vmul.f32 %v4022_v63, %v8151_v62  ;;  %v4074_v59 = vmul.f32 %v4042_v56, %v8182_v53 }
 0x867   :  { %v4027_v30 = vpop.permute.xlu1 %4026  ;;  %v4052_v57 = vpop.permute.xlu0 %4051 }
 0x868   :  { %v4071_v3 = vmul.f32 %v4027_v30, %v8163_v29  ;;  %v4076_v29 = vmul.f32 %v4052_v57, %v8196_v16 }
 0x86b   :  { %v4037_v4 = vpop.permute.xlu1 %4036  ;;  %v4062_v14 = vpop.permute.xlu0 %4061 }
 0x86c   :  { %v4073_v62 = vmul.f32 %v4037_v4, %v8177_v22  ;;  %v4078_v22 = vmul.f32 %v4062_v14, %v8210_v43 }
 0x86f   :  { %v4047_v0 = vpop.permute.xlu1 %4046 }
 0x870   :  { %v4075_v51 = vmul.f32 %v4047_v0, %v8191_v37 }
 0x873   :  { %v4057_v39 = vpop.permute.xlu1 %4056 }
 0x874   :  { %v4077_v53 = vmul.f32 %v4057_v39, %v8205_v25  ;;  %v45_v25 = vld [vmem:[%s8280_s2] sm:$0x3] }
 0x877   :  { %v4067_v23 = vpop.permute.xlu1 %4066 }
 0x878   :  { %v4079_v42 = vmul.f32 %v4067_v23, %v8219_v26 }
 0x8a6   :  { %v4147_v7 = vpop.permute.xlu1 %4146  ;;  %v4149_v8 = vpop.permute.xlu0 %4148 }
 0x8a7   :  { %v4179_v52 = vadd.f32 %v4147_v7, %v4069_v20  ;;  %v4180_v2 = vadd.f32 %v4149_v8, %v4070_v19  ;;  %v4578_v7 = vld [vmem:[%s8278_s4 + $0x8] sm:$0x3] }
 0x8a8   :  { %v4326_v8 = vrot.slane %v4578_v7, %v9046_v45 }
 0x8a9   :  { %v4929_v31 = vpack.c.bf16 %v4180_v2, %v4179_v52  ;;  %v4579_v52 = vld [vmem:[%s8278_s4 + $0xa] sm:$0x3] }
 0x8aa   :  { %v4151_v12 = vpop.permute.xlu1 %4150  ;;  %v4153_v54 = vpop.permute.xlu0 %4152 }
 0x8ab   :  { %v4181_v50 = vadd.f32 %v4151_v12, %v4071_v3  ;;  %v4182_v1 = vadd.f32 %v4153_v54, %v4072_v24  ;;  %4930 = vmatpush3.bf16.msra.mxu1 %v4929_v31  ;;  %v4445_v24 = vrot.slane %v4579_v52, %v9045_v48 }
 0x8ac   :  { %4931 = vmatprep.subr.bf16.mxu1 %v8975_v13 }
 0x8ad   :  { %v4932_v58 = vpack.c.bf16 %v4182_v1, %v4181_v50  ;;  %v4454_v50 = vrot.slane %v4579_v52, %v9046_v45 }
 0x8ae   :  { %v4155_v34 = vpop.permute.xlu1 %4154  ;;  %v4157_v27 = vpop.permute.xlu0 %4156 }
 0x8af   :  { %v4183_v9 = vadd.f32 %v4155_v34, %v4073_v62  ;;  %v4184_v49 = vadd.f32 %v4157_v27, %v4074_v59  ;;  %4933 = vmatpush3.bf16.msra.mxu1 %v4932_v58  ;;  %v4248_v58 = vrot.slane %v4578_v7, %v9045_v48 }
 0x8b0   :  { %4934 = vmatprep.subr.bf16.mxu1 %v8975_v13 }
 0x8b1   :  { %v4935_v44 = vpack.c.bf16 %v4184_v49, %v4183_v9 }
 0x8b2   :  { %v4159_v36 = vpop.permute.xlu1 %4158  ;;  %v4161_v15 = vpop.permute.xlu0 %4160 }
 0x8b3   :  { %v4185_v61 = vadd.f32 %v4159_v36, %v4075_v51  ;;  %v4186_v46 = vadd.f32 %v4161_v15, %v4076_v29  ;;  %4936 = vmatpush3.bf16.msra.mxu1 %v4935_v44 }
 0x8b4   :  { %4937 = vmatprep.subr.bf16.mxu1 %v8975_v13 }
 0x8b5   :  { %v4938_v21 = vpack.c.bf16 %v4186_v46, %v4185_v61 }
 0x8b6   :  { %v4165_v38 = vpop.permute.xlu1 %4164  ;;  %v4163_v10 = vpop.permute.xlu0 %4162 }
 0x8b7   :  { %v4188_v18 = vadd.f32 %v4165_v38, %v4078_v22  ;;  %v4187_v47 = vadd.f32 %v4163_v10, %v4077_v53  ;;  %4939 = vmatpush3.bf16.msra.mxu1 %v4938_v21 }
 0x8b8   :  { %4940 = vmatprep.subr.bf16.mxu1 %v8975_v13 }
 0x8b9   :  { %v4941_v37 = vpack.c.bf16 %v4188_v18, %v4187_v47 }
 0x8ba   :  { %v4167_v16 = vpop.permute.xlu0 %4166 }
 0x8bb   :  { %4942 = vmatpush3.bf16.msra.mxu1 %v4941_v37  ;;  %v4189_v32 = vadd.f32 %v4167_v16, %v4079_v42 }
 0x8bc   :  { %4850 = vmatprep.subr.mxu1 %v5099_v11 }
 0x8bf   :  { %4851 = vmatpush3.msra.mxu1 %v4189_v32 }
 0x8c0   :  { %4943 = vmatprep.subr.bf16.mxu1 %v8975_v13  ;;  %4853 = vmatmul.mubr.msk.f32.vlgmr.msra.gmra.mrb[70].mxu1 %vm4249_vm7, %v45_v25 }
 0x8c1   :  { %v5056_v43 = vpop.permute.xlu1 %5055  ;;  %4877 = vmatprep.mubr.msk.f32.mxu1 %vm5105_vm1, %v5099_v11 }
 0x8c2   :  { %v5058_v17 = vunpack.i.h.bf16 %v5056_v43  ;;  %v5057_v5 = vunpack.i.l.bf16 %v5056_v43 }
 0x8c4   :  { %v4944_v26 = vpack.c.bf16 %v5058_v17, %v5057_v5 }
 0x8c5   :  { %v5061_v40 = vpop.permute.xlu0 %5060 }
 0x8c6   :  { %v5063_v60 = vunpack.i.h.bf16 %v5061_v40  ;;  %v5062_v28 = vunpack.i.l.bf16 %v5061_v40  ;;  %4945 = vmatpush3.bf16.msra.mxu1 %v4944_v26 }
 0x8c7   :  { %4946 = vmatprep.subr.bf16.mxu1 %v8975_v13 }
 0x8c8   :  { %v4947_v33 = vpack.c.bf16 %v5063_v60, %v5062_v28 }
 0x8c9   :  { %v5066_v41 = vpop.permute.xlu1 %5065 }
 0x8ca   :  { %v5068_v35 = vunpack.i.h.bf16 %v5066_v41  ;;  %v5067_v63 = vunpack.i.l.bf16 %v5066_v41  ;;  %4948 = vmatpush3.bf16.msra.mxu1 %v4947_v33 }
 0x8cb   :  { %4949 = vmatprep.subr.bf16.mxu1 %v8975_v13 }
 0x8cc   :  { %v4950_v55 = vpack.c.bf16 %v5068_v35, %v5067_v63 }
 0x8cd   :  { %v5071_v30 = vpop.permute.xlu0 %5070 }
 0x8ce   :  { %v5073_v6 = vunpack.i.h.bf16 %v5071_v30  ;;  %v5072_v4 = vunpack.i.l.bf16 %v5071_v30  ;;  %4951 = vmatpush3.bf16.msra.mxu1 %v4950_v55 }
 0x8cf   :  { %4952 = vmatprep.subr.bf16.mxu1 %v8975_v13 }
 0x8d0   :  { %v4953_v56 = vpack.c.bf16 %v5073_v6, %v5072_v4 }
 0x8d1   :  { %v5076_v0 = vpop.permute.xlu1 %5075 }
 0x8d2   :  { %v5078_v57 = vunpack.i.h.bf16 %v5076_v0  ;;  %v5077_v39 = vunpack.i.l.bf16 %v5076_v0  ;;  %4954 = vmatpush3.bf16.msra.mxu1 %v4953_v56 }
 0x8d3   :  { %4955 = vmatprep.subr.bf16.mxu1 %v8975_v13  ;;  %v4359_v23 = vpop.permute.xlu0 %4358 }
 0x8d4   :  { %v4956_v14 = vpack.c.bf16 %v5078_v57, %v5077_v39 }
 0x8d6   :  { %4957 = vmatpush3.bf16.msra.mxu1 %v4956_v14 }
 0x8d7   :  { %4875 = vmatprep.subr.mxu1 %v5099_v11 }
 0x8da   :  { %4876 = vmatpush3.msra.mxu1 %v4359_v23 }
 0x8db   :  { %4878 = vmatmul.mubr.msk.f32.vlgmr.msra.gmra.mrb[72].mxu1 %vm4249_vm7, %v45_v25 }
 0x993   :  { %v4319_v20 = vpop.f32.mrb[70].mxu1 }
 0x994   :  { %v4854_v19 = vpop.f32.mrb[71].mxu1  ;;  %v4320_v34 = vadd.f32 %v4319_v20, %v4248_v58 }
 0x9ae   :  { %v4437_v13 = vpop.f32.mrb[72].mxu1 }
 0x9af   :  { %v4438_v2 = vadd.f32 %v4437_v13, %v4326_v8  ;;  %v4879_v3 = vpop.f32.mrb[73].mxu1 }
 0x9b1   :  { %v4441_v31 = vmax.f32 %v4438_v2, 0.0 }
 0x9b3   :  { %v4446_v12 = vmul.f32 %v4445_v24, %v4441_v31 }
 0x9b5   :  { %v4448_v54 = vsel %vm4447_vm8, %v4446_v12, 0.0 }
 0x9b6   :  { %4449 = vadd.xlane.f32.xlu1 %v4448_v54 }
 0xa43   :  { %v4450_v1 = vpop.xlane.xlu1 %4449 }
 0xa44   :  { %v4455_v59 = vadd.f32 %v4454_v50, %v4450_v1 }
 0xa46   :  { %5088 = vtanh.f32 %v4455_v59 }
 0xa50   :  { %v5089_v62 = vpop.eup %5088 }
 0xa51   :  { %4458 = vrot.lane.b32.xlu0 %v5089_v62, %s5117_s21 }
 0xac3   :  { %v4459_v27 = vpop.permute.xlu0 %4458 }
 0xac4   :  { %v4462_v9 = vsel %vm4461_vm9, %v4320_v34, %v4459_v27 }
 0xac5   :  { %v4464_v49 = vsel %vm4463_vm10, %v4462_v9, 0.0 }
 0xac6   :  { %4465 = vst [vmem:[%s8281_s6] sm:$0x3] %v4464_v49 }

</bundles_post_ra>
